<compile_context>
chip_gen: v6e
topology: v6e:2x2x1
jax: 0.10.0
libtpu: 0.0.40
codegen_flags: <defaults>
</compile_context>

<pallas_src>
import functools

import jax
import jax.numpy as jnp
from jax.experimental import pallas as pl
from jax.experimental.pallas import tpu as pltpu


def _round_up(v, m):
    return ((v + m - 1) // m) * m


def _largest_divisor_leq(n, cap):
    for d in range(min(n, cap), 0, -1):
        if n % d == 0:
            return d
    return 1


def _vmem_capacity_bytes():
    # Per-generation VMEM (v5e/v6e: 128 MiB, v7x: 64 MiB per TC); safe fallback.
    try:
        return int(pltpu.get_tpu_info().vmem_capacity_bytes)
    except Exception:
        return 64 * 1024 * 1024


# ---------------------------------------------------------------------------
# Fused kernel body
# ---------------------------------------------------------------------------
def _fused_ir_kernel(*refs, has_expand, has_res, th, hb, wo, stride, dilation, rc):
    i = 0
    x_hbm = refs[i]; i += 1
    if has_expand:
        w_exp_ref, s1_ref, b1_ref = refs[i:i + 3]; i += 3
    w_dw_ref, s2_ref, b2_ref, w_proj_ref, s3_ref, b3_ref = refs[i:i + 6]; i += 6
    if has_res:
        res_ref = refs[i]; i += 1
    o_ref = refs[i]; i += 1
    x_slab = refs[i]; i += 1            # (2, hb, wp, cin) bf16, double-buffered
    in_sem = refs[i]; i += 1            # DMA semaphores, one per slot
    h_slab = refs[i] if has_expand else None

    n = pl.program_id(0)
    r = pl.program_id(1)
    nr = pl.num_programs(1)
    slot = r % 2

    wp = x_slab.shape[2]
    cin = x_slab.shape[3]

    def in_copy(row0, s_idx):
        return pltpu.make_async_copy(x_hbm.at[n, pl.ds(row0, hb)],
                                     x_slab.at[s_idx], in_sem.at[s_idx])

    # ---- double-buffered halo'd input slab: HBM -> VMEM --------------------
    @pl.when(r == 0)                    # prime the chain at the start of each batch
    def _():
        in_copy(0, slot).start()

    in_copy(0, slot).wait()             # data for this step (src slice is shape-only)

    @pl.when(r + 1 < nr)                # prefetch (n, r+1) while computing (n, r)
    def _():
        in_copy((r + 1) * (th * stride), 1 - slot).start()

    # ---- stage 1: 1x1 expand + BN + ReLU6 (bf16 MXU, f32 accum / BN) -------
    if has_expand:
        hid = h_slab.shape[2]
        x2d = x_slab[slot].reshape(hb * wp, cin)          # already bf16
        h = jnp.dot(x2d, w_exp_ref[...], preferred_element_type=jnp.float32)
        h = jnp.clip(h * s1_ref[...] + b1_ref[...], 0.0, 6.0)
        h_slab[...] = h.reshape(hb, wp, hid).astype(h_slab.dtype)
    else:
        hid = cin

    # ---- stages 2+3, processed in small output-row chunks ------------------
    cout = o_ref.shape[3]
    wdw_b = w_dw_ref[...].reshape(9, 1, 1, hid)           # hoisted broadcasts
    s2 = s2_ref[...].reshape(1, 1, hid)
    b2 = b2_ref[...].reshape(1, 1, hid)
    s3 = s3_ref[...]
    b3 = b3_ref[...]
    w_proj = w_proj_ref[...]

    def load_rows(base):
        if has_expand:
            if stride == 1:
                return h_slab[pl.ds(base, rc)]
            return h_slab[pl.ds(base, rc, stride=stride)]
        if stride == 1:
            return x_slab[slot, pl.ds(base, rc)]
        return x_slab[slot, pl.ds(base, rc, stride=stride)]

    n_chunks = th // rc
    for c in range(n_chunks):           # static chunk starts; each chunk stores to o_ref
        orow = c * rc

        # depthwise 3x3 + BN + ReLU6 (f32 VPU, taps aligned via XLU roll)
        if stride == 1:
            acc = jnp.zeros((rc, wp, hid), jnp.float32)
        else:
            acc = jnp.zeros((rc, wo, hid), jnp.float32)
        for kh in range(3):
            rows = load_rows(orow * stride + kh * dilation).astype(jnp.float32)
            for kw in range(3):
                w0 = kw * dilation
                if stride == 1:
                    tap = rows if w0 == 0 else pltpu.roll(rows, shift=wp - w0, axis=1)
                else:
                    tap = rows[:, w0:w0 + (wo - 1) * stride + 1:stride, :]
                acc = acc + tap * wdw_b[kh * 3 + kw]
        if stride == 1:
            acc = acc[:, :wo, :]        # trim once, at a fixed (aligned) offset
        y = jnp.clip(acc * s2 + b2, 0.0, 6.0)

        # 1x1 project + BN (+ residual), MXU bf16 with f32 accumulation
        y2d = y.reshape(rc * wo, hid).astype(jnp.bfloat16)
        out = jnp.dot(y2d, w_proj, preferred_element_type=jnp.float32)
        out = out * s3 + b3
        if has_res:
            res = res_ref[0, pl.ds(orow, rc)].reshape(rc * wo, cout)
            out = out + res.astype(jnp.float32)
        o_ref[0, pl.ds(orow, rc)] = out.reshape(rc, wo, cout).astype(o_ref.dtype)


# ---------------------------------------------------------------------------
# Tile sizing (per-generation VMEM budget; counts every live buffer)
# ---------------------------------------------------------------------------
def _pick_row_tile(ho, wp, wo, cin_pad, hid_pad, cout_pad, stride, dilation,
                   has_res, fixed_bytes, budget_bytes):
    best = 1
    for d in range(1, ho + 1):
        if ho % d:
            continue
        hb = (d - 1) * stride + 2 * dilation + 1
        rc = _largest_divisor_leq(d, 8)
        est = (fixed_bytes                              # weights/BN (2x pipeline buffers)
               + 2 * hb * wp * cin_pad * 2              # bf16 input slab, double-buffered
               + hb * wp * hid_pad * 2                  # bf16 hidden slab
               + hb * wp * hid_pad * 4                  # f32 expand matmul result value
               + hb * wp * cin_pad * 2                  # bf16 expand operand value
               + 4 * rc * wp * hid_pad * 4              # per-chunk f32 depthwise working set
               + 2 * d * wo * cout_pad * 4              # f32 output block, 2x buffered
               + (2 * d * wo * cout_pad * 2 if has_res else 0))  # bf16 residual block
        if est <= budget_bytes:
            best = d
    return best


# ---------------------------------------------------------------------------
# Parameter helpers
# ---------------------------------------------------------------------------
def _make_bn_params(key, c, eps=1e-5):
    k1, k2, k3, k4 = jax.random.split(key, 4)
    gamma = 1.0 + 0.1 * jax.random.normal(k1, (c,), jnp.float32)
    beta = 0.1 * jax.random.normal(k2, (c,), jnp.float32)
    mean = 0.05 * jax.random.normal(k3, (c,), jnp.float32)
    var = 0.5 + jnp.abs(jax.random.normal(k4, (c,), jnp.float32))
    scale = gamma / jnp.sqrt(var + eps)
    bias = beta - mean * scale
    return scale[None, :], bias[None, :]


def _pad_cols(a, cols):
    return jnp.pad(a, ((0, 0), (0, cols - a.shape[1])))


def _pad_2d(a, rows, cols):
    return jnp.pad(a, ((0, rows - a.shape[0]), (0, cols - a.shape[1])))


def fixed_padding_nhwc(x, kernel_size, dilation):
    k_eff = kernel_size + (kernel_size - 1) * (dilation - 1)
    pad_total = k_eff - 1
    pad_beg = pad_total // 2
    pad_end = pad_total - pad_beg
    return jnp.pad(x, ((0, 0), (pad_beg, pad_end), (pad_beg, pad_end), (0, 0)))


# ---------------------------------------------------------------------------
# Module
# ---------------------------------------------------------------------------
class InvertedResidualPallas:
    def __init__(self, inplanes, planes, stride, dilation, expand_ratio, key):
        assert stride in (1, 2)
        self.stride = stride
        self.dilation = dilation
        self.inplanes = inplanes
        self.planes = planes
        self.expand_ratio = expand_ratio
        hidden = int(round(expand_ratio * inplanes))
        self.hidden = hidden
        self.has_expand = expand_ratio != 1
        self.use_res_connect = (stride == 1 and inplanes == planes)

        # lane-dense (128-multiple) channel widths
        self.cin_pad = _round_up(inplanes, 128)
        self.hid_pad = _round_up(hidden, 128)
        self.cout_pad = _round_up(planes, 128)

        ks = jax.random.split(key, 6)
        if self.has_expand:
            w = 0.2 * jax.random.normal(ks[0], (inplanes, hidden), jnp.float32)
            self.w_exp = _pad_2d(w, self.cin_pad, self.hid_pad).astype(jnp.bfloat16)
            s, b = _make_bn_params(ks[1], hidden)
            self.s1 = _pad_cols(s, self.hid_pad)
            self.b1 = _pad_cols(b, self.hid_pad)
        wdw = 0.2 * jax.random.normal(ks[2], (9, hidden), jnp.float32)
        self.w_dw = _pad_cols(wdw, self.hid_pad)            # stays f32 (VPU)
        s, b = _make_bn_params(ks[3], hidden)
        self.s2 = _pad_cols(s, self.hid_pad)
        self.b2 = _pad_cols(b, self.hid_pad)
        wpj = 0.2 * jax.random.normal(ks[4], (hidden, planes), jnp.float32)
        self.w_proj = _pad_2d(wpj, self.hid_pad, self.cout_pad).astype(jnp.bfloat16)
        s, b = _make_bn_params(ks[5], planes)
        self.s3 = _pad_cols(s, self.cout_pad)
        self.b3 = _pad_cols(b, self.cout_pad)

    def __call__(self, x_nchw):
        N, Cin, H, W = x_nchw.shape
        assert Cin == self.inplanes
        dil, s = self.dilation, self.stride
        out_dtype = x_nchw.dtype

        # NCHW -> NHWC at the module boundary; bf16 activations halve the
        # HBM<->VMEM traffic (the MXU consumes bf16 anyway).
        x = jnp.transpose(x_nchw, (0, 2, 3, 1)).astype(jnp.bfloat16)
        xc = jnp.pad(x, ((0, 0), (0, 0), (0, 0), (0, self.cin_pad - Cin)))

        Ho = (H - 1) // s + 1
        Wo = (W - 1) // s + 1
        wo_pad = _round_up(Wo, 8)
        wp_pad = _round_up(max(W + 2 * dil, (wo_pad - 1) * s + 2 * dil + 1), 8)

        # fixed_padding (dil zeros each side, kernel_size=3) + extra zero cols
        # on the right so the W axis is sublane-aligned for in-kernel reshapes.
        x_sp = jnp.pad(xc, ((0, 0), (dil, dil), (dil, wp_pad - W - dil), (0, 0)))

        params = []
        if self.has_expand:
            params += [self.w_exp, self.s1, self.b1]
        params += [self.w_dw, self.s2, self.b2, self.w_proj, self.s3, self.b3]
        fixed_bytes = 2 * sum(int(p.size) * p.dtype.itemsize for p in params)

        vmem_cap = _vmem_capacity_bytes()
        budget = max(8 * 1024 * 1024, int(0.40 * vmem_cap))
        vmem_limit = int(0.75 * vmem_cap)

        th = _pick_row_tile(Ho, wp_pad, wo_pad, self.cin_pad, self.hid_pad,
                            self.cout_pad, s, dil, self.use_res_connect,
                            fixed_bytes, budget)
        rc = _largest_divisor_leq(th, 8)
        hb = (th - 1) * s + 2 * dil + 1
        n_r = Ho // th

        def _full(arr):
            shp = arr.shape
            return pl.BlockSpec(shp, lambda n, r: (0,) * len(shp))

        inputs = [x_sp]
        in_specs = [pl.BlockSpec(memory_space=pl.ANY)]   # manual halo'd, double-buffered DMA
        if self.has_expand:
            inputs += [self.w_exp, self.s1, self.b1]
            in_specs += [_full(self.w_exp), _full(self.s1), _full(self.b1)]
        inputs += [self.w_dw, self.s2, self.b2, self.w_proj, self.s3, self.b3]
        in_specs += [_full(self.w_dw), _full(self.s2), _full(self.b2),
                     _full(self.w_proj), _full(self.s3), _full(self.b3)]

        has_res = self.use_res_connect
        if has_res:
            # stride==1 here, so Ho==H, Wo==W; bf16 residual stream, W padded.
            res = jnp.pad(xc, ((0, 0), (0, 0), (0, wo_pad - W), (0, 0)))
            inputs.append(res)
            in_specs.append(pl.BlockSpec((1, th, wo_pad, self.cout_pad),
                                         lambda n, r: (n, r, 0, 0)))

        out_spec = pl.BlockSpec((1, th, wo_pad, self.cout_pad),
                                lambda n, r: (n, r, 0, 0))
        out_shape = jax.ShapeDtypeStruct((N, Ho, wo_pad, self.cout_pad), out_dtype)

        scratch = [pltpu.VMEM((2, hb, wp_pad, self.cin_pad), jnp.bfloat16),
                   pltpu.SemaphoreType.DMA((2,))]
        if self.has_expand:
            scratch.append(pltpu.VMEM((hb, wp_pad, self.hid_pad), jnp.bfloat16))

        kernel = functools.partial(
            _fused_ir_kernel, has_expand=self.has_expand, has_res=has_res,
            th=th, hb=hb, wo=wo_pad, stride=s, dilation=dil, rc=rc)

        out = pl.pallas_call(
            kernel,
            out_shape=out_shape,
            grid_spec=pltpu.PrefetchScalarGridSpec(
                num_scalar_prefetch=0,
                grid=(N, n_r),
                in_specs=in_specs,
                out_specs=out_spec,
                scratch_shapes=scratch),
            compiler_params=pltpu.CompilerParams(
                dimension_semantics=("parallel", "arbitrary"),
                vmem_limit_bytes=vmem_limit),
        )(*inputs)

        out = out[:, :, :Wo, :self.planes]
        return jnp.transpose(out, (0, 3, 1, 2))          # back to NCHW


# ---------------------------------------------------------------------------
# Pure-JAX reference mirroring the kernel's bf16-MXU / f32-VPU math
# ---------------------------------------------------------------------------
def reference_forward(x_nchw, m):
    dil, s = m.dilation, m.stride
    # Mirror the kernel's numerics: bf16 activation streams, f32 accum/BN.
    x = jnp.transpose(x_nchw, (0, 2, 3, 1)).astype(jnp.bfloat16).astype(jnp.float32)
    xc = jnp.pad(x, ((0, 0), (0, 0), (0, 0), (0, m.cin_pad - m.inplanes)))
    h = fixed_padding_nhwc(xc, 3, dil)
    N, Hp, Wp, _ = h.shape
    if m.has_expand:
        z = jnp.dot(h.reshape(-1, m.cin_pad).astype(jnp.bfloat16), m.w_exp,
                    preferred_element_type=jnp.float32)
        z = jnp.clip(z * m.s1 + m.b1, 0.0, 6.0)
        h = z.astype(jnp.bfloat16).astype(jnp.float32).reshape(N, Hp, Wp, m.hid_pad)
    hid = h.shape[-1]
    Ho = (Hp - (2 * dil + 1)) // s + 1
    Wo = (Wp - (2 * dil + 1)) // s + 1
    acc = jnp.zeros((N, Ho, Wo, hid), jnp.float32)
    for kh in range(3):
        for kw in range(3):
            tap = h[:, kh * dil: kh * dil + (Ho - 1) * s + 1: s,
                       kw * dil: kw * dil + (Wo - 1) * s + 1: s, :]
            acc = acc + tap * m.w_dw[kh * 3 + kw].reshape(1, 1, 1, hid)
    y = jnp.clip(acc * m.s2 + m.b2, 0.0, 6.0)
    z = jnp.dot(y.reshape(-1, hid).astype(jnp.bfloat16), m.w_proj,
                preferred_element_type=jnp.float32)
    z = (z * m.s3 + m.b3).reshape(N, Ho, Wo, m.cout_pad)
    if m.use_res_connect:
        z = z + xc
    out = z[..., :m.planes]
    return jnp.transpose(out, (0, 3, 1, 2))


if __name__ == "__main__":
    key = jax.random.PRNGKey(0)
    k_in, k_params = jax.random.split(key)
    # batch=2, inplanes=4, spatial=16x16; stride=1, dilation=1, expand_ratio=6
    x = jax.random.normal(k_in, (2, 4, 16, 16), jnp.float32)
    module = InvertedResidualPallas(inplanes=4, planes=4, stride=1, dilation=1,
                                    expand_ratio=6, key=k_params)
    out = jax.block_until_ready(module(x))
    assert out.shape == (2, 4, 16, 16), out.shape

    ref = jax.block_until_ready(reference_forward(x, module))
    max_err = float(jnp.max(jnp.abs(out - ref)))
    assert jnp.allclose(out, ref, atol=2e-3, rtol=2e-3), \
        f"mismatch vs reference (max abs err {max_err})"
    print("KERNEL_OK")
</pallas_src>

<mosaic_0001>
module attributes {stable_mosaic.version = 11 : i64} {
  func.func @_fused_ir_kernel(%arg0: i32, %arg1: i32, %arg2: memref<2x18x24x128xbf16, #tpu.memory_space<any>>, %arg3: memref<128x128xbf16, #tpu.memory_space<vmem>>, %arg4: memref<1x128xf32, #tpu.memory_space<vmem>>, %arg5: memref<1x128xf32, #tpu.memory_space<vmem>>, %arg6: memref<9x128xf32, #tpu.memory_space<vmem>>, %arg7: memref<1x128xf32, #tpu.memory_space<vmem>>, %arg8: memref<1x128xf32, #tpu.memory_space<vmem>>, %arg9: memref<128x128xbf16, #tpu.memory_space<vmem>>, %arg10: memref<1x128xf32, #tpu.memory_space<vmem>>, %arg11: memref<1x128xf32, #tpu.memory_space<vmem>>, %arg12: memref<1x16x16x128xbf16, #tpu.memory_space<vmem>>, %arg13: memref<1x16x16x128xf32, #tpu.memory_space<vmem>>, %arg14: memref<2x18x24x128xbf16, #tpu.memory_space<vmem>>, %arg15: memref<2x!tpu.dma_semaphore, #tpu.memory_space<semaphore_mem>>, %arg16: memref<18x24x128xbf16, #tpu.memory_space<vmem>>) attributes {dimension_semantics = [#tpu.dimension_semantics<parallel>, #tpu.dimension_semantics<arbitrary>], iteration_bounds = array<i64: 2, 1>, scalar_prefetch = 0 : i64, scratch_operands = 3 : i64, tpu.core_type = #tpu.core_type<tc>, window_params = [{}, {pipeline_mode = #tpu.pipeline_mode<synchronous>, transform_indices = @transform_1, window_bounds = array<i64: 128, 128>}, {pipeline_mode = #tpu.pipeline_mode<synchronous>, transform_indices = @transform_2, window_bounds = array<i64: 1, 128>}, {pipeline_mode = #tpu.pipeline_mode<synchronous>, transform_indices = @transform_3, window_bounds = array<i64: 1, 128>}, {pipeline_mode = #tpu.pipeline_mode<synchronous>, transform_indices = @transform_4, window_bounds = array<i64: 9, 128>}, {pipeline_mode = #tpu.pipeline_mode<synchronous>, transform_indices = @transform_5, window_bounds = array<i64: 1, 128>}, {pipeline_mode = #tpu.pipeline_mode<synchronous>, transform_indices = @transform_6, window_bounds = array<i64: 1, 128>}, {pipeline_mode = #tpu.pipeline_mode<synchronous>, transform_indices = @transform_7, window_bounds = array<i64: 128, 128>}, {pipeline_mode = #tpu.pipeline_mode<synchronous>, transform_indices = @transform_8, window_bounds = array<i64: 1, 128>}, {pipeline_mode = #tpu.pipeline_mode<synchronous>, transform_indices = @transform_9, window_bounds = array<i64: 1, 128>}, {transform_indices = @transform_10, window_bounds = array<i64: 1, 16, 16, 128>}, {transform_indices = @transform_11, window_bounds = array<i64: 1, 16, 16, 128>}]} {
    %c2_i32 = arith.constant 2 : i32
    %c0_i32 = arith.constant 0 : i32
    %0 = arith.cmpi eq, %c2_i32, %c0_i32 : i32
    %c1_i32 = arith.constant 1 : i32
    %1 = arith.select %0, %c1_i32, %c2_i32 : i32
    %2 = arith.remsi %arg1, %1 : i32
    %c0_i32_0 = arith.constant 0 : i32
    %3 = arith.cmpi ne, %2, %c0_i32_0 : i32
    %c0_i32_1 = arith.constant 0 : i32
    %4 = arith.cmpi slt, %2, %c0_i32_1 : i32
    %c0_i32_2 = arith.constant 0 : i32
    %5 = arith.cmpi slt, %1, %c0_i32_2 : i32
    %6 = arith.xori %4, %5 : i1
    %7 = arith.andi %6, %3 : i1
    %8 = arith.addi %2, %1 : i32
    %9 = arith.select %7, %8, %2 : i32
    %c0_i32_3 = arith.constant 0 : i32
    %10 = arith.cmpi eq, %arg1, %c0_i32_3 : i32
    %11 = arith.extui %10 : i1 to i32
    %c0_i32_4 = arith.constant 0 : i32
    %12 = arith.cmpi ne, %11, %c0_i32_4 : i32
    scf.if %12 {
      %c0_i32_86 = arith.constant 0 : i32
      %c0_i32_87 = arith.constant 0 : i32
      %c0_i32_88 = arith.constant 0 : i32
      %217 = tpu.memref_slice %arg2[%arg0, %c0_i32_86, %c0_i32_87, %c0_i32_88] : memref<2x18x24x128xbf16, #tpu.memory_space<any>> -> memref<1x18x24x128xbf16, #tpu.memory_space<any>>
      %218 = tpu.memref_squeeze %217 : memref<1x18x24x128xbf16, #tpu.memory_space<any>> -> memref<18x24x128xbf16, #tpu.memory_space<any>>
      %c0_i32_89 = arith.constant 0 : i32
      %c0_i32_90 = arith.constant 0 : i32
      %c0_i32_91 = arith.constant 0 : i32
      %219 = tpu.memref_slice %arg14[%9, %c0_i32_89, %c0_i32_90, %c0_i32_91] : memref<2x18x24x128xbf16, #tpu.memory_space<vmem>> -> memref<1x18x24x128xbf16, #tpu.memory_space<vmem>>
      %220 = tpu.memref_squeeze %219 : memref<1x18x24x128xbf16, #tpu.memory_space<vmem>> -> memref<18x24x128xbf16, #tpu.memory_space<vmem>>
      %221 = tpu.memref_slice %arg15[%9] : memref<2x!tpu.dma_semaphore, #tpu.memory_space<semaphore_mem>> -> memref<1x!tpu.dma_semaphore, #tpu.memory_space<semaphore_mem>>
      %222 = tpu.memref_squeeze %221 : memref<1x!tpu.dma_semaphore, #tpu.memory_space<semaphore_mem>> -> memref<!tpu.dma_semaphore, #tpu.memory_space<semaphore_mem>>
      tpu.enqueue_dma source(%218 : memref<18x24x128xbf16, #tpu.memory_space<any>>) target(%220 : memref<18x24x128xbf16, #tpu.memory_space<vmem>>) target_semaphore(%222 : memref<!tpu.dma_semaphore, #tpu.memory_space<semaphore_mem>>)
    } else {
    }
    %c0_i32_5 = arith.constant 0 : i32
    %c0_i32_6 = arith.constant 0 : i32
    %c0_i32_7 = arith.constant 0 : i32
    %13 = tpu.memref_slice %arg2[%arg0, %c0_i32_5, %c0_i32_6, %c0_i32_7] : memref<2x18x24x128xbf16, #tpu.memory_space<any>> -> memref<1x18x24x128xbf16, #tpu.memory_space<any>>
    %14 = tpu.memref_squeeze %13 : memref<1x18x24x128xbf16, #tpu.memory_space<any>> -> memref<18x24x128xbf16, #tpu.memory_space<any>>
    %c0_i32_8 = arith.constant 0 : i32
    %c0_i32_9 = arith.constant 0 : i32
    %c0_i32_10 = arith.constant 0 : i32
    %15 = tpu.memref_slice %arg14[%9, %c0_i32_8, %c0_i32_9, %c0_i32_10] : memref<2x18x24x128xbf16, #tpu.memory_space<vmem>> -> memref<1x18x24x128xbf16, #tpu.memory_space<vmem>>
    %16 = tpu.memref_squeeze %15 : memref<1x18x24x128xbf16, #tpu.memory_space<vmem>> -> memref<18x24x128xbf16, #tpu.memory_space<vmem>>
    %17 = tpu.memref_slice %arg15[%9] : memref<2x!tpu.dma_semaphore, #tpu.memory_space<semaphore_mem>> -> memref<1x!tpu.dma_semaphore, #tpu.memory_space<semaphore_mem>>
    %18 = tpu.memref_squeeze %17 : memref<1x!tpu.dma_semaphore, #tpu.memory_space<semaphore_mem>> -> memref<!tpu.dma_semaphore, #tpu.memory_space<semaphore_mem>>
    tpu.wait_dma2 semaphore(%18 : memref<!tpu.dma_semaphore, #tpu.memory_space<semaphore_mem>>) src(%14 : memref<18x24x128xbf16, #tpu.memory_space<any>>) dst(%16 : memref<18x24x128xbf16, #tpu.memory_space<vmem>>)
    %c1_i32_11 = arith.constant 1 : i32
    %19 = arith.addi %arg1, %c1_i32_11 : i32
    %c1_i32_12 = arith.constant 1 : i32
    %20 = arith.cmpi slt, %19, %c1_i32_12 : i32
    %21 = arith.extui %20 : i1 to i32
    %c0_i32_13 = arith.constant 0 : i32
    %22 = arith.cmpi ne, %21, %c0_i32_13 : i32
    scf.if %22 {
      %c1_i32_86 = arith.constant 1 : i32
      %217 = arith.addi %arg1, %c1_i32_86 : i32
      %c16_i32 = arith.constant 16 : i32
      %218 = arith.muli %217, %c16_i32 : i32
      %c1_i32_87 = arith.constant 1 : i32
      %219 = arith.subi %c1_i32_87, %9 : i32
      %c0_i32_88 = arith.constant 0 : i32
      %c0_i32_89 = arith.constant 0 : i32
      %220 = tpu.memref_slice %arg2[%arg0, %218, %c0_i32_88, %c0_i32_89] : memref<2x18x24x128xbf16, #tpu.memory_space<any>> -> memref<1x18x24x128xbf16, #tpu.memory_space<any>>
      %221 = tpu.memref_squeeze %220 : memref<1x18x24x128xbf16, #tpu.memory_space<any>> -> memref<18x24x128xbf16, #tpu.memory_space<any>>
      %c0_i32_90 = arith.constant 0 : i32
      %c0_i32_91 = arith.constant 0 : i32
      %c0_i32_92 = arith.constant 0 : i32
      %222 = tpu.memref_slice %arg14[%219, %c0_i32_90, %c0_i32_91, %c0_i32_92] : memref<2x18x24x128xbf16, #tpu.memory_space<vmem>> -> memref<1x18x24x128xbf16, #tpu.memory_space<vmem>>
      %223 = tpu.memref_squeeze %222 : memref<1x18x24x128xbf16, #tpu.memory_space<vmem>> -> memref<18x24x128xbf16, #tpu.memory_space<vmem>>
      %224 = tpu.memref_slice %arg15[%219] : memref<2x!tpu.dma_semaphore, #tpu.memory_space<semaphore_mem>> -> memref<1x!tpu.dma_semaphore, #tpu.memory_space<semaphore_mem>>
      %225 = tpu.memref_squeeze %224 : memref<1x!tpu.dma_semaphore, #tpu.memory_space<semaphore_mem>> -> memref<!tpu.dma_semaphore, #tpu.memory_space<semaphore_mem>>
      tpu.enqueue_dma source(%221 : memref<18x24x128xbf16, #tpu.memory_space<any>>) target(%223 : memref<18x24x128xbf16, #tpu.memory_space<vmem>>) target_semaphore(%225 : memref<!tpu.dma_semaphore, #tpu.memory_space<semaphore_mem>>)
    } else {
    }
    %23 = arith.index_cast %9 : i32 to index
    %c0 = arith.constant 0 : index
    %c0_14 = arith.constant 0 : index
    %c0_15 = arith.constant 0 : index
    %24 = vector.load %arg14[%23, %c0, %c0_14, %c0_15] : memref<2x18x24x128xbf16, #tpu.memory_space<vmem>>, vector<1x18x24x128xbf16>
    %25 = vector.shape_cast %24 : vector<1x18x24x128xbf16> to vector<18x24x128xbf16>
    %26 = vector.shape_cast %25 : vector<18x24x128xbf16> to vector<432x128xbf16>
    %c0_16 = arith.constant 0 : index
    %c0_17 = arith.constant 0 : index
    %27 = vector.load %arg3[%c0_16, %c0_17] : memref<128x128xbf16, #tpu.memory_space<vmem>>, vector<128x128xbf16>
    %cst = arith.constant dense<0.000000e+00> : vector<432x128xf32>
    %28 = tpu.matmul %26, %27, %cst {dimension_numbers = #tpu.dot_dimension_numbers<[1], [0], [0], [1], [0, 0, 1, 1], [], []>} : vector<432x128xbf16>, vector<128x128xbf16>, vector<432x128xf32> -> vector<432x128xf32>
    %c0_18 = arith.constant 0 : index
    %c0_19 = arith.constant 0 : index
    %29 = vector.load %arg4[%c0_18, %c0_19] : memref<1x128xf32, #tpu.memory_space<vmem>>, vector<1x128xf32>
    %30 = vector.broadcast %29 : vector<1x128xf32> to vector<432x128xf32>
    %31 = arith.mulf %28, %30 : vector<432x128xf32>
    %c0_20 = arith.constant 0 : index
    %c0_21 = arith.constant 0 : index
    %32 = vector.load %arg5[%c0_20, %c0_21] : memref<1x128xf32, #tpu.memory_space<vmem>>, vector<1x128xf32>
    %33 = vector.broadcast %32 : vector<1x128xf32> to vector<432x128xf32>
    %34 = arith.addf %31, %33 : vector<432x128xf32>
    %cst_22 = arith.constant 0.000000e+00 : f32
    %cst_23 = arith.constant 6.000000e+00 : f32
    %35 = vector.broadcast %cst_22 : f32 to vector<432x128xf32>
    %36 = arith.maximumf %35, %34 : vector<432x128xf32>
    %37 = vector.broadcast %cst_23 : f32 to vector<432x128xf32>
    %38 = arith.minimumf %37, %36 : vector<432x128xf32>
    %39 = vector.shape_cast %38 : vector<432x128xf32> to vector<18x24x128xf32>
    %40 = arith.truncf %39 : vector<18x24x128xf32> to vector<18x24x128xbf16>
    %c0_24 = arith.constant 0 : index
    %c0_25 = arith.constant 0 : index
    %c0_26 = arith.constant 0 : index
    %41 = vector.load %arg16[%c0_24, %c0_25, %c0_26] : memref<18x24x128xbf16, #tpu.memory_space<vmem>>, vector<18x24x128xbf16>
    tpu.vector_store %arg16[%c0_24, %c0_25, %c0_26], %40 {strides = array<i32>} : memref<18x24x128xbf16, #tpu.memory_space<vmem>>, vector<18x24x128xbf16>,
    %c0_27 = arith.constant 0 : index
    %c0_28 = arith.constant 0 : index
    %42 = vector.load %arg6[%c0_27, %c0_28] : memref<9x128xf32, #tpu.memory_space<vmem>>, vector<9x128xf32>
    %43 = vector.shape_cast %42 : vector<9x128xf32> to vector<9x1x1x128xf32>
    %c0_29 = arith.constant 0 : index
    %c0_30 = arith.constant 0 : index
    %44 = vector.load %arg7[%c0_29, %c0_30] : memref<1x128xf32, #tpu.memory_space<vmem>>, vector<1x128xf32>
    %45 = vector.shape_cast %44 : vector<1x128xf32> to vector<1x1x128xf32>
    %c0_31 = arith.constant 0 : index
    %c0_32 = arith.constant 0 : index
    %46 = vector.load %arg8[%c0_31, %c0_32] : memref<1x128xf32, #tpu.memory_space<vmem>>, vector<1x128xf32>
    %47 = vector.shape_cast %46 : vector<1x128xf32> to vector<1x1x128xf32>
    %c0_33 = arith.constant 0 : index
    %c0_34 = arith.constant 0 : index
    %48 = vector.load %arg10[%c0_33, %c0_34] : memref<1x128xf32, #tpu.memory_space<vmem>>, vector<1x128xf32>
    %c0_35 = arith.constant 0 : index
    %c0_36 = arith.constant 0 : index
    %49 = vector.load %arg11[%c0_35, %c0_36] : memref<1x128xf32, #tpu.memory_space<vmem>>, vector<1x128xf32>
    %c0_37 = arith.constant 0 : index
    %c0_38 = arith.constant 0 : index
    %50 = vector.load %arg9[%c0_37, %c0_38] : memref<128x128xbf16, #tpu.memory_space<vmem>>, vector<128x128xbf16>
    %cst_39 = arith.constant 0.000000e+00 : f32
    %51 = vector.broadcast %cst_39 : f32 to vector<8x24x128xf32>
    %c0_40 = arith.constant 0 : index
    %c0_41 = arith.constant 0 : index
    %c0_42 = arith.constant 0 : index
    %52 = vector.load %arg16[%c0_40, %c0_41, %c0_42] : memref<18x24x128xbf16, #tpu.memory_space<vmem>>, vector<8x24x128xbf16>
    %53 = arith.extf %52 : vector<8x24x128xbf16> to vector<8x24x128xf32>
    %54 = vector.extract_strided_slice %43 {offsets = [0, 0, 0, 0], sizes = [1, 1, 1, 128], strides = [1, 1, 1, 1]} : vector<9x1x1x128xf32> to vector<1x1x1x128xf32>
    %55 = vector.shape_cast %54 : vector<1x1x1x128xf32> to vector<1x1x128xf32>
    %56 = vector.broadcast %55 : vector<1x1x128xf32> to vector<8x24x128xf32>
    %57 = arith.mulf %53, %56 : vector<8x24x128xf32>
    %58 = arith.addf %51, %57 : vector<8x24x128xf32>
    %c23_i32 = arith.constant 23 : i32
    %59 = tpu.dynamic_rotate %53 by %c23_i32 dim 1 : vector<8x24x128xf32>, i32 -> vector<8x24x128xf32>
    %60 = vector.extract_strided_slice %43 {offsets = [1, 0, 0, 0], sizes = [1, 1, 1, 128], strides = [1, 1, 1, 1]} : vector<9x1x1x128xf32> to vector<1x1x1x128xf32>
    %61 = vector.shape_cast %60 : vector<1x1x1x128xf32> to vector<1x1x128xf32>
    %62 = vector.broadcast %61 : vector<1x1x128xf32> to vector<8x24x128xf32>
    %63 = arith.mulf %59, %62 : vector<8x24x128xf32>
    %64 = arith.addf %58, %63 : vector<8x24x128xf32>
    %c22_i32 = arith.constant 22 : i32
    %65 = tpu.dynamic_rotate %53 by %c22_i32 dim 1 : vector<8x24x128xf32>, i32 -> vector<8x24x128xf32>
    %66 = vector.extract_strided_slice %43 {offsets = [2, 0, 0, 0], sizes = [1, 1, 1, 128], strides = [1, 1, 1, 1]} : vector<9x1x1x128xf32> to vector<1x1x1x128xf32>
    %67 = vector.shape_cast %66 : vector<1x1x1x128xf32> to vector<1x1x128xf32>
    %68 = vector.broadcast %67 : vector<1x1x128xf32> to vector<8x24x128xf32>
    %69 = arith.mulf %65, %68 : vector<8x24x128xf32>
    %70 = arith.addf %64, %69 : vector<8x24x128xf32>
    %c1 = arith.constant 1 : index
    %c0_43 = arith.constant 0 : index
    %c0_44 = arith.constant 0 : index
    %71 = vector.load %arg16[%c1, %c0_43, %c0_44] : memref<18x24x128xbf16, #tpu.memory_space<vmem>>, vector<8x24x128xbf16>
    %72 = arith.extf %71 : vector<8x24x128xbf16> to vector<8x24x128xf32>
    %73 = vector.extract_strided_slice %43 {offsets = [3, 0, 0, 0], sizes = [1, 1, 1, 128], strides = [1, 1, 1, 1]} : vector<9x1x1x128xf32> to vector<1x1x1x128xf32>
    %74 = vector.shape_cast %73 : vector<1x1x1x128xf32> to vector<1x1x128xf32>
    %75 = vector.broadcast %74 : vector<1x1x128xf32> to vector<8x24x128xf32>
    %76 = arith.mulf %72, %75 : vector<8x24x128xf32>
    %77 = arith.addf %70, %76 : vector<8x24x128xf32>
    %c23_i32_45 = arith.constant 23 : i32
    %78 = tpu.dynamic_rotate %72 by %c23_i32_45 dim 1 : vector<8x24x128xf32>, i32 -> vector<8x24x128xf32>
    %79 = vector.extract_strided_slice %43 {offsets = [4, 0, 0, 0], sizes = [1, 1, 1, 128], strides = [1, 1, 1, 1]} : vector<9x1x1x128xf32> to vector<1x1x1x128xf32>
    %80 = vector.shape_cast %79 : vector<1x1x1x128xf32> to vector<1x1x128xf32>
    %81 = vector.broadcast %80 : vector<1x1x128xf32> to vector<8x24x128xf32>
    %82 = arith.mulf %78, %81 : vector<8x24x128xf32>
    %83 = arith.addf %77, %82 : vector<8x24x128xf32>
    %c22_i32_46 = arith.constant 22 : i32
    %84 = tpu.dynamic_rotate %72 by %c22_i32_46 dim 1 : vector<8x24x128xf32>, i32 -> vector<8x24x128xf32>
    %85 = vector.extract_strided_slice %43 {offsets = [5, 0, 0, 0], sizes = [1, 1, 1, 128], strides = [1, 1, 1, 1]} : vector<9x1x1x128xf32> to vector<1x1x1x128xf32>
    %86 = vector.shape_cast %85 : vector<1x1x1x128xf32> to vector<1x1x128xf32>
    %87 = vector.broadcast %86 : vector<1x1x128xf32> to vector<8x24x128xf32>
    %88 = arith.mulf %84, %87 : vector<8x24x128xf32>
    %89 = arith.addf %83, %88 : vector<8x24x128xf32>
    %c2 = arith.constant 2 : index
    %c0_47 = arith.constant 0 : index
    %c0_48 = arith.constant 0 : index
    %90 = vector.load %arg16[%c2, %c0_47, %c0_48] : memref<18x24x128xbf16, #tpu.memory_space<vmem>>, vector<8x24x128xbf16>
    %91 = arith.extf %90 : vector<8x24x128xbf16> to vector<8x24x128xf32>
    %92 = vector.extract_strided_slice %43 {offsets = [6, 0, 0, 0], sizes = [1, 1, 1, 128], strides = [1, 1, 1, 1]} : vector<9x1x1x128xf32> to vector<1x1x1x128xf32>
    %93 = vector.shape_cast %92 : vector<1x1x1x128xf32> to vector<1x1x128xf32>
    %94 = vector.broadcast %93 : vector<1x1x128xf32> to vector<8x24x128xf32>
    %95 = arith.mulf %91, %94 : vector<8x24x128xf32>
    %96 = arith.addf %89, %95 : vector<8x24x128xf32>
    %c23_i32_49 = arith.constant 23 : i32
    %97 = tpu.dynamic_rotate %91 by %c23_i32_49 dim 1 : vector<8x24x128xf32>, i32 -> vector<8x24x128xf32>
    %98 = vector.extract_strided_slice %43 {offsets = [7, 0, 0, 0], sizes = [1, 1, 1, 128], strides = [1, 1, 1, 1]} : vector<9x1x1x128xf32> to vector<1x1x1x128xf32>
    %99 = vector.shape_cast %98 : vector<1x1x1x128xf32> to vector<1x1x128xf32>
    %100 = vector.broadcast %99 : vector<1x1x128xf32> to vector<8x24x128xf32>
    %101 = arith.mulf %97, %100 : vector<8x24x128xf32>
    %102 = arith.addf %96, %101 : vector<8x24x128xf32>
    %c22_i32_50 = arith.constant 22 : i32
    %103 = tpu.dynamic_rotate %91 by %c22_i32_50 dim 1 : vector<8x24x128xf32>, i32 -> vector<8x24x128xf32>
    %104 = vector.extract_strided_slice %43 {offsets = [8, 0, 0, 0], sizes = [1, 1, 1, 128], strides = [1, 1, 1, 1]} : vector<9x1x1x128xf32> to vector<1x1x1x128xf32>
    %105 = vector.shape_cast %104 : vector<1x1x1x128xf32> to vector<1x1x128xf32>
    %106 = vector.broadcast %105 : vector<1x1x128xf32> to vector<8x24x128xf32>
    %107 = arith.mulf %103, %106 : vector<8x24x128xf32>
    %108 = arith.addf %102, %107 : vector<8x24x128xf32>
    %109 = vector.extract_strided_slice %108 {offsets = [0, 0, 0], sizes = [8, 16, 128], strides = [1, 1, 1]} : vector<8x24x128xf32> to vector<8x16x128xf32>
    %110 = vector.broadcast %45 : vector<1x1x128xf32> to vector<8x16x128xf32>
    %111 = arith.mulf %109, %110 : vector<8x16x128xf32>
    %112 = vector.broadcast %47 : vector<1x1x128xf32> to vector<8x16x128xf32>
    %113 = arith.addf %111, %112 : vector<8x16x128xf32>
    %cst_51 = arith.constant 0.000000e+00 : f32
    %cst_52 = arith.constant 6.000000e+00 : f32
    %114 = vector.broadcast %cst_51 : f32 to vector<8x16x128xf32>
    %115 = arith.maximumf %114, %113 : vector<8x16x128xf32>
    %116 = vector.broadcast %cst_52 : f32 to vector<8x16x128xf32>
    %117 = arith.minimumf %116, %115 : vector<8x16x128xf32>
    %118 = vector.shape_cast %117 : vector<8x16x128xf32> to vector<128x128xf32>
    %119 = arith.truncf %118 : vector<128x128xf32> to vector<128x128xbf16>
    %cst_53 = arith.constant dense<0.000000e+00> : vector<128x128xf32>
    %120 = tpu.matmul %119, %50, %cst_53 {dimension_numbers = #tpu.dot_dimension_numbers<[1], [0], [0], [1], [0, 0, 1, 1], [], []>} : vector<128x128xbf16>, vector<128x128xbf16>, vector<128x128xf32> -> vector<128x128xf32>
    %121 = vector.broadcast %48 : vector<1x128xf32> to vector<128x128xf32>
    %122 = arith.mulf %120, %121 : vector<128x128xf32>
    %123 = vector.broadcast %49 : vector<1x128xf32> to vector<128x128xf32>
    %124 = arith.addf %122, %123 : vector<128x128xf32>
    %c0_54 = arith.constant 0 : index
    %c0_55 = arith.constant 0 : index
    %c0_56 = arith.constant 0 : index
    %c0_57 = arith.constant 0 : index
    %125 = vector.load %arg12[%c0_54, %c0_55, %c0_56, %c0_57] : memref<1x16x16x128xbf16, #tpu.memory_space<vmem>>, vector<1x8x16x128xbf16>
    %126 = vector.shape_cast %125 : vector<1x8x16x128xbf16> to vector<8x16x128xbf16>
    %127 = vector.shape_cast %126 : vector<8x16x128xbf16> to vector<128x128xbf16>
    %128 = arith.extf %127 : vector<128x128xbf16> to vector<128x128xf32>
    %129 = arith.addf %124, %128 : vector<128x128xf32>
    %130 = vector.shape_cast %129 : vector<128x128xf32> to vector<8x16x128xf32>
    %c0_58 = arith.constant 0 : index
    %c0_59 = arith.constant 0 : index
    %c0_60 = arith.constant 0 : index
    %c0_61 = arith.constant 0 : index
    %131 = vector.load %arg13[%c0_58, %c0_59, %c0_60, %c0_61] : memref<1x16x16x128xf32, #tpu.memory_space<vmem>>, vector<1x8x16x128xf32>
    %132 = vector.shape_cast %131 : vector<1x8x16x128xf32> to vector<8x16x128xf32>
    %133 = vector.shape_cast %130 : vector<8x16x128xf32> to vector<1x8x16x128xf32>
    tpu.vector_store %arg13[%c0_58, %c0_59, %c0_60, %c0_61], %133 {strides = array<i32>} : memref<1x16x16x128xf32, #tpu.memory_space<vmem>>, vector<1x8x16x128xf32>,
    %cst_62 = arith.constant 0.000000e+00 : f32
    %134 = vector.broadcast %cst_62 : f32 to vector<8x24x128xf32>
    %c8 = arith.constant 8 : index
    %c0_63 = arith.constant 0 : index
    %c0_64 = arith.constant 0 : index
    %135 = vector.load %arg16[%c8, %c0_63, %c0_64] : memref<18x24x128xbf16, #tpu.memory_space<vmem>>, vector<8x24x128xbf16>
    %136 = arith.extf %135 : vector<8x24x128xbf16> to vector<8x24x128xf32>
    %137 = vector.extract_strided_slice %43 {offsets = [0, 0, 0, 0], sizes = [1, 1, 1, 128], strides = [1, 1, 1, 1]} : vector<9x1x1x128xf32> to vector<1x1x1x128xf32>
    %138 = vector.shape_cast %137 : vector<1x1x1x128xf32> to vector<1x1x128xf32>
    %139 = vector.broadcast %138 : vector<1x1x128xf32> to vector<8x24x128xf32>
    %140 = arith.mulf %136, %139 : vector<8x24x128xf32>
    %141 = arith.addf %134, %140 : vector<8x24x128xf32>
    %c23_i32_65 = arith.constant 23 : i32
    %142 = tpu.dynamic_rotate %136 by %c23_i32_65 dim 1 : vector<8x24x128xf32>, i32 -> vector<8x24x128xf32>
    %143 = vector.extract_strided_slice %43 {offsets = [1, 0, 0, 0], sizes = [1, 1, 1, 128], strides = [1, 1, 1, 1]} : vector<9x1x1x128xf32> to vector<1x1x1x128xf32>
    %144 = vector.shape_cast %143 : vector<1x1x1x128xf32> to vector<1x1x128xf32>
    %145 = vector.broadcast %144 : vector<1x1x128xf32> to vector<8x24x128xf32>
    %146 = arith.mulf %142, %145 : vector<8x24x128xf32>
    %147 = arith.addf %141, %146 : vector<8x24x128xf32>
    %c22_i32_66 = arith.constant 22 : i32
    %148 = tpu.dynamic_rotate %136 by %c22_i32_66 dim 1 : vector<8x24x128xf32>, i32 -> vector<8x24x128xf32>
    %149 = vector.extract_strided_slice %43 {offsets = [2, 0, 0, 0], sizes = [1, 1, 1, 128], strides = [1, 1, 1, 1]} : vector<9x1x1x128xf32> to vector<1x1x1x128xf32>
    %150 = vector.shape_cast %149 : vector<1x1x1x128xf32> to vector<1x1x128xf32>
    %151 = vector.broadcast %150 : vector<1x1x128xf32> to vector<8x24x128xf32>
    %152 = arith.mulf %148, %151 : vector<8x24x128xf32>
    %153 = arith.addf %147, %152 : vector<8x24x128xf32>
    %c9 = arith.constant 9 : index
    %c0_67 = arith.constant 0 : index
    %c0_68 = arith.constant 0 : index
    %154 = vector.load %arg16[%c9, %c0_67, %c0_68] : memref<18x24x128xbf16, #tpu.memory_space<vmem>>, vector<8x24x128xbf16>
    %155 = arith.extf %154 : vector<8x24x128xbf16> to vector<8x24x128xf32>
    %156 = vector.extract_strided_slice %43 {offsets = [3, 0, 0, 0], sizes = [1, 1, 1, 128], strides = [1, 1, 1, 1]} : vector<9x1x1x128xf32> to vector<1x1x1x128xf32>
    %157 = vector.shape_cast %156 : vector<1x1x1x128xf32> to vector<1x1x128xf32>
    %158 = vector.broadcast %157 : vector<1x1x128xf32> to vector<8x24x128xf32>
    %159 = arith.mulf %155, %158 : vector<8x24x128xf32>
    %160 = arith.addf %153, %159 : vector<8x24x128xf32>
    %c23_i32_69 = arith.constant 23 : i32
    %161 = tpu.dynamic_rotate %155 by %c23_i32_69 dim 1 : vector<8x24x128xf32>, i32 -> vector<8x24x128xf32>
    %162 = vector.extract_strided_slice %43 {offsets = [4, 0, 0, 0], sizes = [1, 1, 1, 128], strides = [1, 1, 1, 1]} : vector<9x1x1x128xf32> to vector<1x1x1x128xf32>
    %163 = vector.shape_cast %162 : vector<1x1x1x128xf32> to vector<1x1x128xf32>
    %164 = vector.broadcast %163 : vector<1x1x128xf32> to vector<8x24x128xf32>
    %165 = arith.mulf %161, %164 : vector<8x24x128xf32>
    %166 = arith.addf %160, %165 : vector<8x24x128xf32>
    %c22_i32_70 = arith.constant 22 : i32
    %167 = tpu.dynamic_rotate %155 by %c22_i32_70 dim 1 : vector<8x24x128xf32>, i32 -> vector<8x24x128xf32>
    %168 = vector.extract_strided_slice %43 {offsets = [5, 0, 0, 0], sizes = [1, 1, 1, 128], strides = [1, 1, 1, 1]} : vector<9x1x1x128xf32> to vector<1x1x1x128xf32>
    %169 = vector.shape_cast %168 : vector<1x1x1x128xf32> to vector<1x1x128xf32>
    %170 = vector.broadcast %169 : vector<1x1x128xf32> to vector<8x24x128xf32>
    %171 = arith.mulf %167, %170 : vector<8x24x128xf32>
    %172 = arith.addf %166, %171 : vector<8x24x128xf32>
    %c10 = arith.constant 10 : index
    %c0_71 = arith.constant 0 : index
    %c0_72 = arith.constant 0 : index
    %173 = vector.load %arg16[%c10, %c0_71, %c0_72] : memref<18x24x128xbf16, #tpu.memory_space<vmem>>, vector<8x24x128xbf16>
    %174 = arith.extf %173 : vector<8x24x128xbf16> to vector<8x24x128xf32>
    %175 = vector.extract_strided_slice %43 {offsets = [6, 0, 0, 0], sizes = [1, 1, 1, 128], strides = [1, 1, 1, 1]} : vector<9x1x1x128xf32> to vector<1x1x1x128xf32>
    %176 = vector.shape_cast %175 : vector<1x1x1x128xf32> to vector<1x1x128xf32>
    %177 = vector.broadcast %176 : vector<1x1x128xf32> to vector<8x24x128xf32>
    %178 = arith.mulf %174, %177 : vector<8x24x128xf32>
    %179 = arith.addf %172, %178 : vector<8x24x128xf32>
    %c23_i32_73 = arith.constant 23 : i32
    %180 = tpu.dynamic_rotate %174 by %c23_i32_73 dim 1 : vector<8x24x128xf32>, i32 -> vector<8x24x128xf32>
    %181 = vector.extract_strided_slice %43 {offsets = [7, 0, 0, 0], sizes = [1, 1, 1, 128], strides = [1, 1, 1, 1]} : vector<9x1x1x128xf32> to vector<1x1x1x128xf32>
    %182 = vector.shape_cast %181 : vector<1x1x1x128xf32> to vector<1x1x128xf32>
    %183 = vector.broadcast %182 : vector<1x1x128xf32> to vector<8x24x128xf32>
    %184 = arith.mulf %180, %183 : vector<8x24x128xf32>
    %185 = arith.addf %179, %184 : vector<8x24x128xf32>
    %c22_i32_74 = arith.constant 22 : i32
    %186 = tpu.dynamic_rotate %174 by %c22_i32_74 dim 1 : vector<8x24x128xf32>, i32 -> vector<8x24x128xf32>
    %187 = vector.extract_strided_slice %43 {offsets = [8, 0, 0, 0], sizes = [1, 1, 1, 128], strides = [1, 1, 1, 1]} : vector<9x1x1x128xf32> to vector<1x1x1x128xf32>
    %188 = vector.shape_cast %187 : vector<1x1x1x128xf32> to vector<1x1x128xf32>
    %189 = vector.broadcast %188 : vector<1x1x128xf32> to vector<8x24x128xf32>
    %190 = arith.mulf %186, %189 : vector<8x24x128xf32>
    %191 = arith.addf %185, %190 : vector<8x24x128xf32>
    %192 = vector.extract_strided_slice %191 {offsets = [0, 0, 0], sizes = [8, 16, 128], strides = [1, 1, 1]} : vector<8x24x128xf32> to vector<8x16x128xf32>
    %193 = vector.broadcast %45 : vector<1x1x128xf32> to vector<8x16x128xf32>
    %194 = arith.mulf %192, %193 : vector<8x16x128xf32>
    %195 = vector.broadcast %47 : vector<1x1x128xf32> to vector<8x16x128xf32>
    %196 = arith.addf %194, %195 : vector<8x16x128xf32>
    %cst_75 = arith.constant 0.000000e+00 : f32
    %cst_76 = arith.constant 6.000000e+00 : f32
    %197 = vector.broadcast %cst_75 : f32 to vector<8x16x128xf32>
    %198 = arith.maximumf %197, %196 : vector<8x16x128xf32>
    %199 = vector.broadcast %cst_76 : f32 to vector<8x16x128xf32>
    %200 = arith.minimumf %199, %198 : vector<8x16x128xf32>
    %201 = vector.shape_cast %200 : vector<8x16x128xf32> to vector<128x128xf32>
    %202 = arith.truncf %201 : vector<128x128xf32> to vector<128x128xbf16>
    %cst_77 = arith.constant dense<0.000000e+00> : vector<128x128xf32>
    %203 = tpu.matmul %202, %50, %cst_77 {dimension_numbers = #tpu.dot_dimension_numbers<[1], [0], [0], [1], [0, 0, 1, 1], [], []>} : vector<128x128xbf16>, vector<128x128xbf16>, vector<128x128xf32> -> vector<128x128xf32>
    %204 = vector.broadcast %48 : vector<1x128xf32> to vector<128x128xf32>
    %205 = arith.mulf %203, %204 : vector<128x128xf32>
    %206 = vector.broadcast %49 : vector<1x128xf32> to vector<128x128xf32>
    %207 = arith.addf %205, %206 : vector<128x128xf32>
    %c0_78 = arith.constant 0 : index
    %c8_79 = arith.constant 8 : index
    %c0_80 = arith.constant 0 : index
    %c0_81 = arith.constant 0 : index
    %208 = vector.load %arg12[%c0_78, %c8_79, %c0_80, %c0_81] : memref<1x16x16x128xbf16, #tpu.memory_space<vmem>>, vector<1x8x16x128xbf16>
    %209 = vector.shape_cast %208 : vector<1x8x16x128xbf16> to vector<8x16x128xbf16>
    %210 = vector.shape_cast %209 : vector<8x16x128xbf16> to vector<128x128xbf16>
    %211 = arith.extf %210 : vector<128x128xbf16> to vector<128x128xf32>
    %212 = arith.addf %207, %211 : vector<128x128xf32>
    %213 = vector.shape_cast %212 : vector<128x128xf32> to vector<8x16x128xf32>
    %c0_82 = arith.constant 0 : index
    %c8_83 = arith.constant 8 : index
    %c0_84 = arith.constant 0 : index
    %c0_85 = arith.constant 0 : index
    %214 = vector.load %arg13[%c0_82, %c8_83, %c0_84, %c0_85] : memref<1x16x16x128xf32, #tpu.memory_space<vmem>>, vector<1x8x16x128xf32>
    %215 = vector.shape_cast %214 : vector<1x8x16x128xf32> to vector<8x16x128xf32>
    %216 = vector.shape_cast %213 : vector<8x16x128xf32> to vector<1x8x16x128xf32>
    tpu.vector_store %arg13[%c0_82, %c8_83, %c0_84, %c0_85], %216 {strides = array<i32>} : memref<1x16x16x128xf32, #tpu.memory_space<vmem>>, vector<1x8x16x128xf32>,
    return
  }
  func.func @transform_1(%arg0: i32, %arg1: i32) -> (i32, i32) {
    %c0_i32 = arith.constant 0 : i32
    %c0_i32_0 = arith.constant 0 : i32
    %c0_i32_1 = arith.constant 0 : i32
    return %c0_i32, %c0_i32_0 : i32, i32
  }
  func.func @transform_2(%arg0: i32, %arg1: i32) -> (i32, i32) {
    %c0_i32 = arith.constant 0 : i32
    %c0_i32_0 = arith.constant 0 : i32
    %c0_i32_1 = arith.constant 0 : i32
    return %c0_i32, %c0_i32_0 : i32, i32
  }
  func.func @transform_3(%arg0: i32, %arg1: i32) -> (i32, i32) {
    %c0_i32 = arith.constant 0 : i32
    %c0_i32_0 = arith.constant 0 : i32
    %c0_i32_1 = arith.constant 0 : i32
    return %c0_i32, %c0_i32_0 : i32, i32
  }
  func.func @transform_4(%arg0: i32, %arg1: i32) -> (i32, i32) {
    %c0_i32 = arith.constant 0 : i32
    %c0_i32_0 = arith.constant 0 : i32
    %c0_i32_1 = arith.constant 0 : i32
    return %c0_i32, %c0_i32_0 : i32, i32
  }
  func.func @transform_5(%arg0: i32, %arg1: i32) -> (i32, i32) {
    %c0_i32 = arith.constant 0 : i32
    %c0_i32_0 = arith.constant 0 : i32
    %c0_i32_1 = arith.constant 0 : i32
    return %c0_i32, %c0_i32_0 : i32, i32
  }
  func.func @transform_6(%arg0: i32, %arg1: i32) -> (i32, i32) {
    %c0_i32 = arith.constant 0 : i32
    %c0_i32_0 = arith.constant 0 : i32
    %c0_i32_1 = arith.constant 0 : i32
    return %c0_i32, %c0_i32_0 : i32, i32
  }
  func.func @transform_7(%arg0: i32, %arg1: i32) -> (i32, i32) {
    %c0_i32 = arith.constant 0 : i32
    %c0_i32_0 = arith.constant 0 : i32
    %c0_i32_1 = arith.constant 0 : i32
    return %c0_i32, %c0_i32_0 : i32, i32
  }
  func.func @transform_8(%arg0: i32, %arg1: i32) -> (i32, i32) {
    %c0_i32 = arith.constant 0 : i32
    %c0_i32_0 = arith.constant 0 : i32
    %c0_i32_1 = arith.constant 0 : i32
    return %c0_i32, %c0_i32_0 : i32, i32
  }
  func.func @transform_9(%arg0: i32, %arg1: i32) -> (i32, i32) {
    %c0_i32 = arith.constant 0 : i32
    %c0_i32_0 = arith.constant 0 : i32
    %c0_i32_1 = arith.constant 0 : i32
    return %c0_i32, %c0_i32_0 : i32, i32
  }
  func.func @transform_10(%arg0: i32, %arg1: i32) -> (i32, i32, i32, i32) {
    %c0_i32 = arith.constant 0 : i32
    %c0_i32_0 = arith.constant 0 : i32
    %c0_i32_1 = arith.constant 0 : i32
    return %arg0, %arg1, %c0_i32, %c0_i32_0 : i32, i32, i32, i32
  }
  func.func @transform_11(%arg0: i32, %arg1: i32) -> (i32, i32, i32, i32) {
    %c0_i32 = arith.constant 0 : i32
    %c0_i32_0 = arith.constant 0 : i32
    %c0_i32_1 = arith.constant 0 : i32
    return %arg0, %arg1, %c0_i32, %c0_i32_0 : i32, i32, i32, i32
  }
}

</mosaic_0001>

<bundles_post_ra>
// kernel: tpu_custom_call.1
= control target key start
LH: loop header
LB: loop body
LE: loop exit
PB: predicated region body
PF: predicated region fallthrough
CT: control target
= control target key end

     0   :  { %s7052_s0 = inlined_call_operand.hbm [shape: bf16[2,18,24,128], index: 0, kind: input, shape index: {}]   ;;  %s7053_s1 = inlined_call_operand.hbm [shape: bf16[128,128], index: 1, kind: input, shape index: {}]   ;;  %s7054_s2 = inlined_call_operand.vmem [shape: f32[1,128], index: 2, kind: input, shape index: {}]   ;;  %s7055_s3 = inlined_call_operand.vmem [shape: f32[1,128], index: 3, kind: input, shape index: {}]   ;;  %s7056_s4 = inlined_call_operand.hbm [shape: f32[9,128], index: 4, kind: input, shape index: {}]   ;;  %s7057_s5 = inlined_call_operand.vmem [shape: f32[1,128], index: 5, kind: input, shape index: {}]   ;;  %s7058_s6 = inlined_call_operand.vmem [shape: f32[1,128], index: 6, kind: input, shape index: {}]   ;;  %s7059_s7 = inlined_call_operand.hbm [shape: bf16[128,128], index: 7, kind: input, shape index: {}]   ;;  %s7060_s8 = inlined_call_operand.vmem [shape: f32[1,128], index: 8, kind: input, shape index: {}]   ;;  %s7061_s9 = inlined_call_operand.vmem [shape: f32[1,128], index: 9, kind: input, shape index: {}]   ;;  %s7062_s10 = inlined_call_operand.hbm [shape: bf16[2,16,16,128], index: 10, kind: input, shape index: {}]   ;;  %s7063_s11 = inlined_call_operand.hbm [shape: f32[2,16,16,128], index: 11, kind: output, shape index: {}]  }
   0x1   :  { %7072 = sst [smem:[#allocation30_spill]] %s7053_s1 }
   0x2   :  { %7073 = sst [smem:[#allocation31_spill]] %s7056_s4 }
   0x3   :  { %7074 = sst [smem:[#allocation32_spill]] %s7059_s7 }
   0x4   :  { %7075 = sst [smem:[#allocation33_spill]] %s7063_s11 }
   0x5   :  { %16 = vsyncpa [#allocation6], 0 }
   0x6   :  { %17 = vsyncpa [#allocation9], 0 }
   0x7   :  { %18 = vsyncpa [#allocation12], 0 }
   0x8   :  { %20 = vsyncpa [#allocation12 + $0x1], 0 }
   0x9   :  { %21 = vsyncpa [#allocation7], 0 }
   0xa   :  { %23 = vsyncpa [#allocation7 + $0x1], 0  ;;  %s5268_s17 = smov 0   ;;  %s5270_s18 = smov 0  }
   0xb   :  { %s5272_s19 = smov 0   ;;  %s5274_s20 = smov 0  }
   0xc   :  { %s5276_s21 = smov 0   ;;  %s5278_s22 = smov 0  }
   0xd LB: > { %7076 = sst [smem:[#allocation25_spill]] %s5172_s17  ;;  %s3742_s23 = sadd.s32 4294967295, %s5192_s22   ;;  %s5192_s22 = sphi %s5278_s22, %s29_s22   ;;  %s5188_s21 = sphi %s5276_s21, %s7103_s21   ;;  %s5184_s20 = sphi %s5274_s20, %s7102_s20   ;;  %s5180_s19 = sphi %s5272_s19, %s7106_s19   ;;  %s5176_s18 = sphi %s5270_s18, %s7105_s18   ;;  %s5172_s17 = sphi %s5268_s17, %s7104_s17  }
   0xe   : > { %7077 = sst [smem:[#allocation26_spill]] %s5188_s21  ;;  %s3743_s24 = sadd.s32 4294967294, %s5192_s22  }
   0xf   : > { %p252_p0 = scmp.ne.s32.totalorder %s5176_s18, %s5172_s17  ;;  %p5302_p1 = scmp.eq.s32.totalorder %s3742_s23, 0 }
  0x10   : > { %p5306_p2 = scmp.eq.s32.totalorder %s3742_s23, 1  ;;  %p284_p3 = scmp.eq.s32.totalorder %s3743_s24, 1 }
  0x11   : > { %p5312_p4 = por %p5302_p1, %p252_p0  ;;  %p3744_p5 = scmp.ge.s32.totalorder %s5192_s22, 1 }
  0x12   : > { %p5317_p6 = por %p284_p3, %p252_p0  ;;  %p291_p7 = scmp.lt.s32.totalorder %s5192_s22, 3 }
  0x13   : > { %s7080_s27 = scalar_select %p5312_p4, 1, 0 }
  0x14   : > { %s7081_s28 = scalar_select %p5317_p6, 1, 0 }
  0x15   : > { %p5322_p8 = pnand %p3744_p5, %p291_p7  ;;  %s5194_s30 = smov [#allocation8]  }
  0x16   : > { %7082 = sst [smem:[#allocation27_spill]] %s7081_s28  ;;  %s322_s12 = sshll.u32 %s5194_s30, 4  ;;  %s323_s12 = int_to_ptr.vmem [resolvable:$true] %s322_s12 }
  0x17   : > { %p4833_p9 = pneg %p5322_p8  ;;  %s5195_s14 = smov [#allocation5]  }
  0x18   : > { %s303_s15 = sshll.u32 %s5195_s14, 4  ;;  %s4985_s16 = scalar_lea.vmem %s323_s12, 256  ;;  %s304_s15 = int_to_ptr.vmem [resolvable:$true] %s303_s15 }
  0x19   : > { %p5331_p11 = pnand %p4833_p9, %p5302_p1  ;;  %p4986_p13 = scmp.ne.s32.totalorder %s323_s12, %s4985_s16 }
  0x1a   : > { %p4993_p5 = scmp.lt.s32.totalorder %s323_s12, %s323_s12  ;;  %p4994_p7 = scmp.lt.s32.totalorder %s4985_s16, %s4985_s16 }
  0x1b   : > { %p4976_p12 = pneg %p5331_p11 }
  0x1c   : > { %p4995_p10 = por %p4994_p7, %p4993_p5 }
  0x1d   : > { %p4988_p0 = pnand %p4986_p13, %p4976_p12 }
  0x1f   : > { %p4989_p3 = pneg %p4988_p0 }
  0x21   : > { %p4996_p6 = pnand %p4995_p10, %p4989_p3 }
  0x23   : > { %4999 = shalt.err (!%p4996_p6)
}
  0x24   : > { %s5196_s23 = smov 128   ;;  %s5197_s24 = smov 8  }
  0x25   : > { %s7085_s4 = sld [smem:[#allocation31_spill]]  ;;  %s5011_s28 = scalar_lea.vmem %s304_s15, 1024 }
  0x26   : > { %p5012_p9 = scmp.ne.s32.totalorder %s304_s15, %s5011_s28  ;;  %p5019_p4 = scmp.lt.s32.totalorder %s304_s15, %s304_s15 }
  0x27   : > { %p5020_p5 = scmp.lt.s32.totalorder %s5011_s28, %s5011_s28 }
  0x28   : > { %p5014_p13 = pnand %p5012_p9, %p4976_p12 }
  0x29   : > { %p5021_p10 = por %p5020_p5, %p5019_p4 }
  0x2a   : > { %p5015_p0 = pneg %p5014_p13 }
  0x2b   : > { %4839 = dma.hbm_to_vmem [thread:$0]  (!%p5331_p11), %s7085_s4, 256, %s323_s12, [#allocation9], %s5196_s23, %s5196_s23, %s5197_s24  }
  0x2c   : > { %p5022_p6 = pnand %p5021_p10, %p5015_p0 }
  0x2e   : > { %5025 = shalt.err (!%p5022_p6)
}
  0x2f   : > { %s7067_s16 = smov 64   ;;  %s7068_s17 = smov 4  }
  0x30   : > { %s7086_s1 = sld [smem:[#allocation30_spill]]  ;;  %s5200_s24 = smov [#allocation10]  }
  0x31   : > { %s341_s30 = sshll.u32 %s5200_s24, 4  ;;  %s342_s30 = int_to_ptr.vmem [resolvable:$true] %s341_s30 }
  0x32   : > { %s5037_s14 = scalar_lea.vmem %s342_s30, 1024  ;;  %p5045_p9 = scmp.lt.s32.totalorder %s342_s30, %s342_s30 }
  0x33   : > { %p5038_p3 = scmp.ne.s32.totalorder %s342_s30, %s5037_s14  ;;  %p5046_p13 = scmp.lt.s32.totalorder %s5037_s14, %s5037_s14 }
  0x35   : > { %p5040_p4 = pnand %p5038_p3, %p4976_p12  ;;  %p5047_p0 = por %p5046_p13, %p5045_p9 }
  0x36   : > { %4836 = dma.hbm_to_vmem [thread:$0]  (!%p5331_p11), %s7086_s1, 1024, %s304_s15, [#allocation6], %s7067_s16, %s7067_s16, %s7068_s17  }
  0x37   : > { %p5041_p7 = pneg %p5040_p4 }
  0x39   : > { %p5048_p5 = pnand %p5047_p0, %p5041_p7 }
  0x3b   : > { %5051 = shalt.err (!%p5048_p5)
}
  0x3c   : > { %s7087_s7 = sld [smem:[#allocation32_spill]]  ;;  %s41_s12 = sadd.s32 1, %s5188_s21 }
  0x3d   : > { %p43_p12 = scmp.ge.s32.totalorder %s41_s12, 2  ;;  %s239_s13 = sadd.s32 1, %s5180_s19 }
  0x3e   : > { %p246_p10 = scmp.ne.s32.totalorder %s5180_s19, %s5176_s18  ;;  %p247_p6 = scmp.eq.s32.totalorder %s5192_s22, 0 }
  0x3f   : > { %s7108_s12 = smov (%p43_p12, %s41_s12), 0 }
  0x40   : > { %7088 = sst [smem:[#allocation28_spill]] %s7108_s12  ;;  %p5374_p3 = por %p247_p6, %p246_p10 }
  0x41   : > { %p5380_p4 = por %p5306_p2, %p246_p10  ;;  %s234_s14 = ssub.s32 %s5188_s21, %s7108_s12 }
  0x42   : > { %4842 = dma.hbm_to_vmem [thread:$0]  (!%p5331_p11), %s7087_s7, 1024, %s342_s30, [#allocation9], %s7067_s16, %s7067_s16, %s7068_s17  }
  0x43   : > { %p4854_p11 = scmp.lt.s32.totalorder %s5192_s22, 2  ;;  %p237_p7 = scmp.eq.s32.totalorder %s234_s14, 0 }
  0x44   : > { %s361_s30 = sand.u32 1, %s5180_s19   ;;  %s3903_s16 = sshll.u32 %s5188_s21, 11 }
  0x45   : > { %s3749_s28 = sshll.u32 %s361_s30, 7  ;;  %s374_s4 = scalar_lea.hbm %s7062_s10, %s3903_s16 }
  0x46   : > { %s5389_s15 = scalar_select %p237_p7, %s5180_s19, %s239_s13  }
  0x47   : > { %s365_s7 = scalar_lea.vmem [#allocation11], %s3749_s28  ;;  %p5397_p2 = pnand %p4854_p11, %p5374_p3 }
  0x48   : > { %s375_s11 = sshll.u32 %s365_s7, 4  ;;  %s362_s12 = scalar_lea.sflag [#allocation12], %s361_s30  ;;  %s376_s11 = int_to_ptr.vmem [resolvable:$true] %s375_s11 }
  0x49   : > { %p5054_p9 = pneg %p5397_p2  ;;  %s5065_s14 = scalar_lea.vmem %s376_s11, 2048 }
  0x4a   : > { %p5066_p13 = scmp.ne.s32.totalorder %s376_s11, %s5065_s14  ;;  %s5201_s13 = smov [#allocation11]  }
  0x4b   : > { %s5070_s21 = sshll.u32 %s5201_s13, 4  ;;  %s5071_s21 = int_to_ptr.vmem [resolvable:$false] %s5070_s21 }
  0x4c   : > { %p5068_p0 = pnand %p5066_p13, %p5054_p9  ;;  %s5072_s1 = scalar_lea.vmem %s5071_s21, 4096 }
  0x4d   : > { %p5073_p12 = scmp.lt.s32.totalorder %s376_s11, %s5071_s21  ;;  %p5074_p10 = scmp.lt.s32.totalorder %s5072_s1, %s5065_s14 }
  0x4e   : > { %p5069_p5 = pneg %p5068_p0 }
  0x4f   : > { %p5075_p6 = por %p5074_p10, %p5073_p12 }
  0x51   : > { %p5076_p7 = pnand %p5075_p6, %p5069_p5 }
  0x53   : > { %5079 = shalt.err (!%p5076_p7)
}
  0x54   : > { %s7092_s7 = smov 4   ;;  %s7093_s17 = smov 64  }
  0x55   : > { %4846 = dma.hbm_to_vmem [thread:$0]  (!%p5397_p2), %s374_s4, 2048, %s376_s11, %s362_s12, %s7093_s17, %s7093_s17, %s7092_s7  }
  0x56   : > { %387 = sbr.rel (%p5322_p8) target bundleno = 900 (0x384), region = 60 }
  0x5b   : > { %5153 = dma.done.wait (%p5302_p1), [#allocation6], 1024  }
  0x5c   : > { %5155 = vsyncadd (%p5302_p1), [#allocation6], 4294966272 }
  0x5d   : > { %5157 = dma.done.wait (%p5302_p1), [#allocation9], 1280  }
  0x5e   : > { %5159 = vsyncadd (%p5302_p1), [#allocation9], 4294966016  ;;  %s5419_s21 = sand.u32 1, %s5176_s18   ;;  %p7094_p8 = scmp.ne.s32.totalorder %s7080_s27, 0 }
  0x5f   : > { %s3756_s4 = sshll.u32 %s5419_s21, 7  ;;  %s402_s11 = scalar_lea.sflag [#allocation12], %s5419_s21 }
  0x60   : > { %s5423_s29 = scalar_lea.vmem [#allocation11], %s3756_s4 }
  0x61   : > { %5161 = dma.done.wait (%p7094_p8), %s402_s11, 2048  }
  0x62   : > { %5163 = vsyncadd (%p7094_p8), %s402_s11, 4294965248  ;;  %s3757_s16 = sshll.u32 %s5419_s21, 8  ;;  %s3904_s25 = smul.u32 3456, %s5184_s20 }
  0x63   : > { %s5202_s28 = smov [#allocation2]   ;;  %s5082_s7 = scalar_lea.hbm %s7052_s0, 6912 }
  0x64   : > { %s463_s30 = scalar_lea.hbm %s7052_s0, %s3904_s25  ;;  %s475_s26 = sshll.u32 %s5202_s28, 4  ;;  %s476_s26 = int_to_ptr.vmem [resolvable:$true] %s475_s26 }
  0x65   : > { %s5080_s14 = scalar_lea.hbm %s463_s30, 3456  ;;  %p5083_p3 = scmp.lt.s32.totalorder %s463_s30, %s7052_s0 }
  0x66   : > { %p5081_p1 = scmp.ne.s32.totalorder %s463_s30, %s5080_s14  ;;  %p5084_p11 = scmp.lt.s32.totalorder %s5082_s7, %s5080_s14 }
  0x68   : > { %p5085_p2 = por %p5084_p11, %p5083_p3 }
  0x6a   : > { %p5086_p9 = pnand %p5085_p2, %p5081_p1 }
  0x6c   : > { %5089 = shalt.err (!%p5086_p9)  }
  0x6d   : > { %s5090_s4 = scalar_lea.vmem %s476_s26, 3456  ;;  %s5094_s11 = scalar_lea.vmem %s476_s26, 6912 }
  0x6e   : > { %p5091_p13 = scmp.ne.s32.totalorder %s476_s26, %s5090_s4  ;;  %p5095_p0 = scmp.lt.s32.totalorder %s476_s26, %s476_s26 }
  0x6f   : > { %p5096_p5 = scmp.lt.s32.totalorder %s5094_s11, %s5090_s4 }
  0x71   : > { %p5097_p12 = por %p5096_p5, %p5095_p0 }
  0x73   : > { %p5098_p10 = pnand %p5097_p12, %p5091_p13 }
  0x75   : > { %5101 = shalt.err (!%p5098_p10)  }
  0x76   : > { %478 = dma.hbm_to_vmem [thread:$0]  %s463_s30, 3456, %s476_s26, [#allocation3] }
  0x77   : > { %s5440_s25 = scalar_lea.vmem [#allocation13], %s3757_s16 }
  0x78   : > { %5164 = dma.done.wait [#allocation3], 3456 }
  0x79   : > { %5165 = vsyncadd [#allocation3], 4294963840  ;;  %v5203_v0 = vmov 0.0   ;;  %vm5204_vm0 = vmmov 0   ;;  %v4919_v1 = vld [vmem:[#allocation5 + $0x38] sm:$0xff]   ;;  %v4920_v2 = vld [vmem:[#allocation5 + $0x30] sm:$0xff]   ;;  %v1632_v44 = vlaneseq }
  0x7a   : > { %4613 = vmatprep.subr.bf16.mxu0 %v5203_v0  ;;  %4629 = vmatprep.mubr.msk.bf16.mxu0 %vm5204_vm0, %v5203_v0  ;;  %v4921_v3 = vld [vmem:[#allocation5 + $0x28] sm:$0xff]   ;;  %v4922_v4 = vld [vmem:[#allocation5 + $0x20] sm:$0xff]   ;;  %v4923_v5 = vld [vmem:[#allocation5 + $0x18] sm:$0xff]   ;;  %s3594_s17 = sshll.u32 %s5440_s25, 4  ;;  %s7097_s11 = sld [smem:[#allocation33_spill]]  ;;  %s7002_s17 = int_to_ptr.vmem [resolvable:$true] %s3594_s17 }
  0x7b   : > { %4801 = vmatprep.subr.bf16.mxu1 %v5203_v0  ;;  %4701 = vmatprep.mubr.msk.bf16.mxu1 %vm5204_vm0, %v5203_v0  ;;  %v4924_v6 = vld [vmem:[#allocation5 + $0x10] sm:$0xff]   ;;  %v4925_v7 = vld [vmem:[#allocation5 + $0x8] sm:$0xff]   ;;  %v4926_v8 = vld [vmem:[#allocation5] sm:$0xff]   ;;  %v5543_v49 = vshrl.u32 %v1632_v44, 7  ;;  %s3578_s12 = scalar_lea.sflag [#allocation7], %s5419_s21  ;;  %s5205_s23 = smov [#allocation13]  }
  0x7c   : > { %4614 = vmatpush3.bf16.msra.mxu0 %v4919_v1  ;;  %4809 = vmatpush3.bf16.msra.mxu1 %v4919_v1  ;;  %v4927_v9 = vld [vmem:[#allocation2] sm:$0xff]   ;;  %v4937_v10 = vld [vmem:[#allocation2 + $0x90] sm:$0xff]   ;;  %v4928_v11 = vld [vmem:[#allocation2 + $0x8] sm:$0xff]   ;;  %s5106_s30 = sshll.u32 %s5205_s23, 4  ;;  %s5107_s30 = int_to_ptr.vmem [resolvable:$false] %s5106_s30 }
  0x7d   : > { %4615 = vmatprep.subr.bf16.mxu0 %v5203_v0  ;;  %4802 = vmatprep.subr.bf16.mxu1 %v5203_v0  ;;  %v4939_v12 = vld [vmem:[#allocation2 + $0x98] sm:$0xff]   ;;  %v4929_v13 = vld [vmem:[#allocation2 + $0x10] sm:$0xff]   ;;  %v4941_v14 = vld [vmem:[#allocation2 + $0xa0] sm:$0xff]   ;;  %v1634_v57 = vsub.s32 0, %v5543_v49  ;;  %v1713_v1 = vsub.s32 1, %v5543_v49  ;;  %vm1694_vm1 = vcmp.lt.s32.totalorder %v5543_v49, 7  ;;  %p5109_p1 = scmp.lt.s32.totalorder %s7002_s17, %s5107_s30 }
  0x7e   : > { %v4930_v15 = vld [vmem:[#allocation2 + $0x18] sm:$0xff]   ;;  %v4943_v16 = vld [vmem:[#allocation2 + $0xa8] sm:$0xff]   ;;  %v4931_v17 = vld [vmem:[#allocation2 + $0x20] sm:$0xff]   ;;  %vm1771_vm2 = vcmp.lt.s32.totalorder %v5543_v49, 6  ;;  %s5108_s28 = scalar_lea.vmem %s5107_s30, 8192 }
  0x7f   : > { %v4945_v18 = vld [vmem:[#allocation2 + $0xb0] sm:$0xff]   ;;  %v4932_v19 = vld [vmem:[#allocation2 + $0x28] sm:$0xff]   ;;  %v4947_v20 = vld [vmem:[#allocation2 + $0xb8] sm:$0xff]  }
  0x80   : > { %4616 = vmatpush3.bf16.msra.mxu0 %v4920_v2  ;;  %4810 = vmatpush3.bf16.msra.mxu1 %v4920_v2  ;;  %v4933_v21 = vld [vmem:[#allocation2 + $0x30] sm:$0xff]   ;;  %v4949_v22 = vld [vmem:[#allocation2 + $0xc0] sm:$0xff]   ;;  %v4934_v23 = vld [vmem:[#allocation2 + $0x38] sm:$0xff]  }
  0x81   : > { %4617 = vmatprep.subr.bf16.mxu0 %v5203_v0  ;;  %4803 = vmatprep.subr.bf16.mxu1 %v5203_v0  ;;  %v4951_v24 = vld [vmem:[#allocation2 + $0xc8] sm:$0xff]   ;;  %v4935_v25 = vld [vmem:[#allocation2 + $0x40] sm:$0xff]   ;;  %v4953_v26 = vld [vmem:[#allocation2 + $0xd0] sm:$0xff]  }
  0x82   : > { %v4936_v27 = vld [vmem:[#allocation2 + $0x48] sm:$0xff]   ;;  %v4938_v28 = vld [vmem:[#allocation2 + $0x50] sm:$0xff]   ;;  %v4940_v29 = vld [vmem:[#allocation2 + $0x58] sm:$0xff]  }
  0x83   : > { %v4942_v30 = vld [vmem:[#allocation2 + $0x60] sm:$0xff]   ;;  %v4944_v31 = vld [vmem:[#allocation2 + $0x68] sm:$0xff]   ;;  %v5506_v32 = vld [vmem:[#allocation10 + $0x38] sm:$0xff]  }
  0x84   : > { %4618 = vmatpush3.bf16.msra.mxu0 %v4921_v3  ;;  %4811 = vmatpush3.bf16.msra.mxu1 %v4921_v3  ;;  %v4946_v33 = vld [vmem:[#allocation2 + $0x70] sm:$0xff]   ;;  %v5510_v34 = vld [vmem:[#allocation10 + $0x30] sm:$0xff]   ;;  %v5516_v35 = vld [vmem:[#allocation10 + $0x28] sm:$0xff]  }
  0x85   : > { %4619 = vmatprep.subr.bf16.mxu0 %v5203_v0  ;;  %4804 = vmatprep.subr.bf16.mxu1 %v5203_v0  ;;  %v4948_v36 = vld [vmem:[#allocation2 + $0x78] sm:$0xff]   ;;  %v5526_v38 = vld [vmem:[#allocation10 + $0x18] sm:$0xff]   ;;  %v4950_v39 = vld [vmem:[#allocation2 + $0x80] sm:$0xff]  }
  0x86   : > { %v5520_v37 = vld [vmem:[#allocation10 + $0x20] sm:$0xff]   ;;  %v4959_v40 = vld [vmem:[#allocation10 + $0x10] sm:$0xff]   ;;  %v4960_v41 = vld [vmem:[#allocation10 + $0x8] sm:$0xff]  }
  0x87   : > { %v4952_v42 = vld [vmem:[#allocation2 + $0x88] sm:$0xff]   ;;  %v4961_v43 = vld [vmem:[#allocation10] sm:$0xff]   ;;  %v5536_v45 = vld [vmem:[%s7054_s2] ss:$0 sm:$0xff] }
  0x88   : > { %4620 = vmatpush3.bf16.msra.mxu0 %v4922_v4  ;;  %4812 = vmatpush3.bf16.msra.mxu1 %v4922_v4  ;;  %v5541_v47 = vld [vmem:[%s7055_s3] ss:$0 sm:$0xff]  ;;  %v1562_v61 = vld [vmem:[#allocation8] sm:$0xff] }
  0x89   : > { %4621 = vmatprep.subr.bf16.mxu0 %v5203_v0  ;;  %4805 = vmatprep.subr.bf16.mxu1 %v5203_v0 }
  0x8c   : > { %4622 = vmatpush3.bf16.msra.mxu0 %v4923_v5  ;;  %4813 = vmatpush3.bf16.msra.mxu1 %v4923_v5 }
  0x8d   : > { %4623 = vmatprep.subr.bf16.mxu0 %v5203_v0  ;;  %4806 = vmatprep.subr.bf16.mxu1 %v5203_v0 }
  0x90   : > { %4624 = vmatpush3.bf16.msra.mxu0 %v4924_v6  ;;  %4814 = vmatpush3.bf16.msra.mxu1 %v4924_v6 }
  0x91   : > { %4625 = vmatprep.subr.bf16.mxu0 %v5203_v0  ;;  %4807 = vmatprep.subr.bf16.mxu1 %v5203_v0 }
  0x94   : > { %4626 = vmatpush3.bf16.msra.mxu0 %v4925_v7  ;;  %4815 = vmatpush3.bf16.msra.mxu1 %v4925_v7  ;;  %v5555_v7 = vrot.slane %v1562_v61, %v1634_v57 }
  0x95   : > { %4627 = vmatprep.subr.bf16.mxu0 %v5203_v0  ;;  %4808 = vmatprep.subr.bf16.mxu1 %v5203_v0 }
  0x98   : > { %4628 = vmatpush3.bf16.msra.mxu0 %v4926_v8  ;;  %4816 = vmatpush3.bf16.msra.mxu1 %v4926_v8  ;;  %v1790_v8 = vsub.s32 2, %v5543_v49 }
  0x99   : > { %4737 = vmatprep.subr.bf16.mxu1 %v5506_v32 }
  0x9b   : > { %4630 = vmatmul.mubr.bf16.vlgmr.msra.gmra.mxu0 %v4927_v9  ;;  %4702 = vmatmul.mubr.bf16.vlgmr.msra.gmra.mxu1 %v4937_v10 }
  0x9c   : > { %4633 = vmatprep.mubr.msk.bf16.mxu0 %vm5204_vm0, %v5203_v0  ;;  %4705 = vmatprep.mubr.msk.bf16.mxu1 %vm5204_vm0, %v5203_v0 }
  0x9d   : > { %4738 = vmatpush3.bf16.msra.mxu1 %v5506_v32 }
  0x9e   : > { %4739 = vmatprep.subr.bf16.mxu1 %v5510_v34 }
  0xa1   : > { %4740 = vmatpush3.bf16.msra.mxu1 %v5510_v34 }
  0xa2   : > { %4741 = vmatprep.subr.bf16.mxu1 %v5516_v35 }
  0xa3   : > { %4634 = vmatmul.mubr.bf16.gmra.mxu0 %v4928_v11  ;;  %4706 = vmatmul.mubr.bf16.gmra.mxu1 %v4939_v12 }
  0xa4   : > { %4637 = vmatprep.mubr.msk.bf16.mxu0 %vm5204_vm0, %v5203_v0  ;;  %4709 = vmatprep.mubr.msk.bf16.mxu1 %vm5204_vm0, %v5203_v0 }
  0xa5   : > { %4742 = vmatpush3.bf16.msra.mxu1 %v5516_v35 }
  0xa6   : > { %4743 = vmatprep.subr.bf16.mxu1 %v5520_v37 }
  0xa9   : > { %4744 = vmatpush3.bf16.msra.mxu1 %v5520_v37 }
  0xaa   : > { %4745 = vmatprep.subr.bf16.mxu1 %v5526_v38 }
  0xab   : > { %4638 = vmatmul.mubr.bf16.gmra.mxu0 %v4929_v13  ;;  %4710 = vmatmul.mubr.bf16.gmra.mxu1 %v4941_v14 }
  0xac   : > { %4641 = vmatprep.mubr.msk.bf16.mxu0 %vm5204_vm0, %v5203_v0  ;;  %4713 = vmatprep.mubr.msk.bf16.mxu1 %vm5204_vm0, %v5203_v0 }
  0xad   : > { %4746 = vmatpush3.bf16.msra.mxu1 %v5526_v38 }
  0xae   : > { %4747 = vmatprep.subr.bf16.mxu1 %v4959_v40 }
  0xb1   : > { %4748 = vmatpush3.bf16.msra.mxu1 %v4959_v40 }
  0xb2   : > { %4749 = vmatprep.subr.bf16.mxu1 %v4960_v41 }
  0xb3   : > { %4642 = vmatmul.mubr.bf16.gmra.mxu0 %v4930_v15  ;;  %4714 = vmatmul.mubr.bf16.gmra.mxu1 %v4943_v16  ;;  %v5561_v16 = vrot.slane %v1562_v61, %v1713_v1 }
  0xb4   : > { %4645 = vmatprep.mubr.msk.bf16.mxu0 %vm5204_vm0, %v5203_v0  ;;  %4717 = vmatprep.mubr.msk.bf16.mxu1 %vm5204_vm0, %v5203_v0 }
  0xb5   : > { %4750 = vmatpush3.bf16.msra.mxu1 %v4960_v41 }
  0xb6   : > { %4751 = vmatprep.subr.bf16.mxu1 %v4961_v43 }
  0xb9   : > { %4752 = vmatpush3.bf16.msra.mxu1 %v4961_v43 }
  0xba   : > { %4769 = vmatprep.subr.bf16.mxu1 %v5506_v32 }
  0xbb   : > { %4646 = vmatmul.mubr.bf16.gmra.mxu0 %v4931_v17  ;;  %4718 = vmatmul.mubr.bf16.gmra.mxu1 %v4945_v18  ;;  %v1875_v17 = vsub.s32 3, %v5543_v49  ;;  %v1951_v18 = vsub.s32 4, %v5543_v49 }
  0xbc   : > { %4649 = vmatprep.mubr.msk.bf16.mxu0 %vm5204_vm0, %v5203_v0  ;;  %4721 = vmatprep.mubr.msk.bf16.mxu1 %vm5204_vm0, %v5203_v0 }
  0xbd   : > { %v5574_v40 = vrot.slane %v1562_v61, %v1875_v17 }
  0xc3   : > { %4650 = vmatmul.mubr.bf16.gmra.mxu0 %v4932_v19  ;;  %4722 = vmatmul.mubr.bf16.gmra.mxu1 %v4947_v20 }
  0xc4   : > { %4653 = vmatprep.mubr.msk.bf16.mxu0 %vm5204_vm0, %v5203_v0  ;;  %4725 = vmatprep.mubr.msk.bf16.mxu1 %vm5204_vm0, %v5203_v0 }
  0xcb   : > { %4654 = vmatmul.mubr.bf16.gmra.mxu0 %v4933_v21  ;;  %4726 = vmatmul.mubr.bf16.gmra.mxu1 %v4949_v22 }
  0xcc   : > { %4657 = vmatprep.mubr.msk.bf16.mxu0 %vm5204_vm0, %v5203_v0  ;;  %4729 = vmatprep.mubr.msk.bf16.mxu1 %vm5204_vm0, %v5203_v0 }
  0xd3   : > { %4658 = vmatmul.mubr.bf16.gmra.mxu0 %v4934_v23  ;;  %4730 = vmatmul.mubr.bf16.gmra.mxu1 %v4951_v24 }
  0xd4   : > { %4661 = vmatprep.mubr.msk.bf16.mxu0 %vm5204_vm0, %v5203_v0  ;;  %4733 = vmatprep.mubr.msk.bf16.mxu1 %vm5204_vm0, %v5203_v0 }
  0xdb   : > { %4662 = vmatmul.mubr.bf16.gmra.mxu0 %v4935_v25  ;;  %4734 = vmatmul.mubr.bf16.gmra.mxu1 %v4953_v26  ;;  %v2027_v25 = vsub.s32 5, %v5543_v49  ;;  %v2112_v26 = vsub.s32 6, %v5543_v49 }
  0xdc   : > { %4665 = vmatprep.mubr.msk.bf16.mxu0 %vm5204_vm0, %v5203_v0 }
  0xe3   : > { %4666 = vmatmul.mubr.bf16.gmra.mxu0 %v4936_v27  ;;  %v2188_v27 = vsub.s32 7, %v5543_v49 }
  0xe4   : > { %4669 = vmatprep.mubr.msk.bf16.mxu0 %vm5204_vm0, %v5203_v0 }
  0xeb   : > { %4670 = vmatmul.mubr.bf16.gmra.mxu0 %v4938_v28 }
  0xec   : > { %4673 = vmatprep.mubr.msk.bf16.mxu0 %vm5204_vm0, %v5203_v0 }
  0xf3   : > { %4674 = vmatmul.mubr.bf16.gmra.mxu0 %v4940_v29 }
  0xf4   : > { %4677 = vmatprep.mubr.msk.bf16.mxu0 %vm5204_vm0, %v5203_v0 }
  0xfb   : > { %4678 = vmatmul.mubr.bf16.gmra.mxu0 %v4942_v30 }
  0xfc   : > { %4681 = vmatprep.mubr.msk.bf16.mxu0 %vm5204_vm0, %v5203_v0 }
 0x103   : > { %4682 = vmatmul.mubr.bf16.gmra.mxu0 %v4944_v31 }
 0x104   : > { %4685 = vmatprep.mubr.msk.bf16.mxu0 %vm5204_vm0, %v5203_v0 }
 0x10b   : > { %4686 = vmatmul.mubr.bf16.gmra.mxu0 %v4946_v33 }
 0x10c   : > { %4689 = vmatprep.mubr.msk.bf16.mxu0 %vm5204_vm0, %v5203_v0 }
 0x113   : > { %4690 = vmatmul.mubr.bf16.gmra.mxu0 %v4948_v36 }
 0x114   : > { %4693 = vmatprep.mubr.msk.bf16.mxu0 %vm5204_vm0, %v5203_v0 }
 0x11b   : > { %4694 = vmatmul.mubr.bf16.gmra.mxu0 %v4950_v39  ;;  %v5572_v39 = vrot.slane %v1562_v61, %v1790_v8 }
 0x11c   : > { %4697 = vmatprep.mubr.msk.bf16.mxu0 %vm5204_vm0, %v5203_v0 }
 0x123   : > { %4698 = vmatmul.mubr.bf16.gmra.mxu0 %v4952_v42 }
 0x15b   : > { %v829_v46 = vpop.f32.mrf.mxu0  ;;  %v973_v48 = vpop.f32.mrf.mxu1 }
 0x15c   : > { %v1051_v50 = vmul.f32 %v5536_v45, %v829_v46  ;;  %v1087_v51 = vmul.f32 %v5536_v45, %v973_v48 }
 0x15d   : > { %v4631_v52 = vpop.f32.mrf.mxu0  ;;  %v4703_v53 = vpop.f32.mrf.mxu1 }
 0x15e   : > { %v1112_v54 = vadd.f32 %v5541_v47, %v1051_v50  ;;  %v1148_v55 = vadd.f32 %v5541_v47, %v1087_v51  ;;  %v5580_v50 = vrot.slane %v1562_v61, %v1951_v18  ;;  %v5582_v52 = vrot.slane %v1562_v61, %v2027_v25 }
 0x15f   : > { %v832_v56 = vpop.f32.mrf.mxu0  ;;  %v976_v58 = vpop.f32.mrf.mxu1  ;;  %v5584_v53 = vrot.slane %v1562_v61, %v2112_v26 }
 0x160   : > { %v1052_v59 = vmul.f32 %v5536_v45, %v832_v56  ;;  %v1202_v60 = vmax.f32 %v1148_v55, 0.0  ;;  %v1088_v62 = vmul.f32 %v5536_v45, %v976_v58  ;;  %v1166_v63 = vmax.f32 %v1112_v54, 0.0 }
 0x161   : > { %v4632_v0 = vpop.f32.mrf.mxu0  ;;  %v4704_v2 = vpop.f32.mrf.mxu1  ;;  %v5586_v54 = vrot.slane %v1562_v61, %v2188_v27 }
 0x162   : > { %v1113_v3 = vadd.f32 %v5541_v47, %v1052_v59  ;;  %v1149_v4 = vadd.f32 %v5541_v47, %v1088_v62  ;;  %v1256_v6 = vmin.f32 %v1202_v60, 6.0  ;;  %v1220_v14 = vmin.f32 %v1166_v63, 6.0 }
 0x163   : > { %v837_v5 = vpop.f32.mrf.mxu0  ;;  %v981_v9 = vpop.f32.mrf.mxu1 }
 0x164   : > { %v1167_v10 = vmax.f32 %v1113_v3, 0.0  ;;  %v1053_v11 = vmul.f32 %v5536_v45, %v837_v5  ;;  %v1203_v12 = vmax.f32 %v1149_v4, 0.0  ;;  %v1089_v13 = vmul.f32 %v5536_v45, %v981_v9 }
 0x165   : > { %v4635_v15 = vpop.f32.mrf.mxu0  ;;  %v4707_v19 = vpop.f32.mrf.mxu1 }
 0x166   : > { %v1221_v20 = vmin.f32 %v1167_v10, 6.0  ;;  %v1114_v21 = vadd.f32 %v5541_v47, %v1053_v11  ;;  %v1257_v22 = vmin.f32 %v1203_v12, 6.0  ;;  %v1150_v23 = vadd.f32 %v5541_v47, %v1089_v13 }
 0x167   : > { %v840_v24 = vpop.f32.mrf.mxu0  ;;  %v984_v28 = vpop.f32.mrf.mxu1 }
 0x168   : > { %v3963_v29 = vpack.c.bf16 %v1221_v20, %v1220_v14  ;;  %v1168_v30 = vmax.f32 %v1114_v21, 0.0  ;;  %v1054_v31 = vmul.f32 %v5536_v45, %v840_v24  ;;  %v4053_v33 = vpack.c.bf16 %v1257_v22, %v1256_v6 }
 0x169   : > { %v4636_v36 = vpop.f32.mrf.mxu0  ;;  %v1204_v41 = vmax.f32 %v1150_v23, 0.0  ;;  %v1090_v42 = vmul.f32 %v5536_v45, %v984_v28  ;;  %v4708_v43 = vpop.f32.mrf.mxu1 }
 0x16a   : > { %v1115_v44 = vadd.f32 %v5541_v47, %v1054_v31  ;;  %v4097_v46 = vunpack.c.l.bf16 %v3963_v29  ;;  %v5578_v48 = vunpack.c.h.bf16 %v3963_v29  ;;  %4456 = vst [vmem:[#allocation4 + $0x90] sm:$0xff] %v4053_v33   ;;  %v1222_v57 = vmin.f32 %v1168_v30, 6.0 }
 0x16b   : > { %v845_v51 = vpop.f32.mrf.mxu0  ;;  %v1151_v55 = vadd.f32 %v5541_v47, %v1090_v42  ;;  %v989_v56 = vpop.f32.mrf.mxu1  ;;  %v1258_v60 = vmin.f32 %v1204_v41, 6.0 }
 0x16c   : > { %v1169_v58 = vmax.f32 %v1115_v44, 0.0  ;;  %v1055_v59 = vmul.f32 %v5536_v45, %v845_v51  ;;  %v1668_v63 = vrot.slane %v4097_v46, 1  ;;  %v1676_v0 = vrot.slane %v5578_v48, 1 }
 0x16d   : > { %v4639_v62 = vpop.f32.mrf.mxu0  ;;  %v1747_v1 = vrot.slane %v4097_v46, 2  ;;  %v1755_v2 = vrot.slane %v5578_v48, 2  ;;  %v4711_v3 = vpop.f32.mrf.mxu1  ;;  %v1205_v5 = vmax.f32 %v1151_v55, 0.0  ;;  %v1091_v6 = vmul.f32 %v5536_v45, %v989_v56 }
 0x16e   : > { %v1223_v4 = vmin.f32 %v1169_v58, 6.0  ;;  %v1116_v61 = vadd.f32 %v5541_v47, %v1055_v59  ;;  %v1636_v9 = vmul.f32 %v4097_v46, %v5555_v7  ;;  %v1637_v10 = vmul.f32 %v5578_v48, %v5555_v7 }
 0x16f   : > { %v848_v8 = vpop.f32.mrf.mxu0  ;;  %v1703_v11 = vsel %vm1694_vm1, %v1668_v63, %v1676_v0  ;;  %v1780_v12 = vsel %vm1771_vm2, %v1747_v1, %v1755_v2  ;;  %v992_v13 = vpop.f32.mrf.mxu1  ;;  %v1259_v21 = vmin.f32 %v1205_v5, 6.0  ;;  %v1152_v22 = vadd.f32 %v5541_v47, %v1091_v6 }
 0x170   : > { %v3968_v14 = vpack.c.bf16 %v1223_v4, %v1222_v57  ;;  %v1170_v15 = vmax.f32 %v1116_v61, 0.0  ;;  %v1056_v17 = vmul.f32 %v5536_v45, %v848_v8  ;;  %v1715_v18 = vmul.f32 %v5561_v16, %v1703_v11 }
 0x171   : > { %v4640_v19 = vpop.f32.mrf.mxu0  ;;  %v1792_v20 = vmul.f32 %v5572_v39, %v1780_v12  ;;  %v1092_v23 = vmul.f32 %v5536_v45, %v992_v13  ;;  %v4712_v24 = vpop.f32.mrf.mxu1  ;;  %v4058_v31 = vpack.c.bf16 %v1259_v21, %v1258_v60  ;;  %v1206_v33 = vmax.f32 %v1152_v22, 0.0 }
 0x172   : > { %4439 = vst [vmem:[#allocation4 + $0x8] sm:$0xff] %v3968_v14   ;;  %v1224_v25 = vmin.f32 %v1170_v15, 6.0  ;;  %v1117_v26 = vadd.f32 %v5541_v47, %v1056_v17  ;;  %v4101_v27 = vunpack.c.l.bf16 %v3968_v14  ;;  %v5607_v28 = vunpack.c.h.bf16 %v3968_v14 }
 0x173   : > { %v853_v29 = vpop.f32.mrf.mxu0  ;;  %v1731_v30 = vadd.f32 %v1715_v18, %v1636_v9  ;;  %v1153_v36 = vadd.f32 %v5541_v47, %v1092_v23  ;;  %v997_v41 = vpop.f32.mrf.mxu1  ;;  %4457 = vst [vmem:[#allocation4 + $0x98] sm:$0xff] %v4058_v31   ;;  %v1260_v63 = vmin.f32 %v1206_v33, 6.0 }
 0x174   : > { %v1171_v42 = vmax.f32 %v1117_v26, 0.0  ;;  %v1057_v43 = vmul.f32 %v5536_v45, %v853_v29  ;;  %v1669_v44 = vrot.slane %v5607_v28, 1  ;;  %v1684_v46 = vrot.slane %v4101_v27, 1 }
 0x175   : > { %v4643_v48 = vpop.f32.mrf.mxu0  ;;  %v1763_v51 = vrot.slane %v4101_v27, 2  ;;  %v1808_v55 = vadd.f32 %v1792_v20, %v1731_v30  ;;  %v5614_v56 = vmul.f32 %v5607_v28, %v5555_v7  ;;  %v1748_v57 = vrot.slane %v5607_v28, 2  ;;  %v4715_v58 = vpop.f32.mrf.mxu1 }
 0x176   : > { %v1225_v59 = vmin.f32 %v1171_v42, 6.0  ;;  %v1118_v60 = vadd.f32 %v5541_v47, %v1057_v43  ;;  %v1695_v62 = vsel %vm1694_vm1, %v1676_v0, %v1684_v46  ;;  %v1207_v61 = vmax.f32 %v1153_v36, 0.0 }
 0x177   : > { %v856_v1 = vpop.f32.mrf.mxu0  ;;  %v1716_v3 = vmul.f32 %v5561_v16, %v1695_v62  ;;  %v1772_v4 = vsel %vm1771_vm2, %v1755_v2, %v1763_v51  ;;  %v1093_v5 = vmul.f32 %v5536_v45, %v997_v41  ;;  %v1000_v6 = vpop.f32.mrf.mxu1 }
 0x178   : > { %v3973_v8 = vpack.c.bf16 %v1225_v59, %v1224_v25  ;;  %v1172_v9 = vmax.f32 %v1118_v60, 0.0  ;;  %v1058_v11 = vmul.f32 %v5536_v45, %v856_v1  ;;  %v1793_v12 = vmul.f32 %v5572_v39, %v1772_v4 }
 0x179   : > { %v4644_v13 = vpop.f32.mrf.mxu0  ;;  %v1732_v14 = vadd.f32 %v1716_v3, %v1637_v10  ;;  %v1825_v0 = vld [vmem:[#allocation4 + $0xc] sm:$0xf]  ;;  %v1261_v15 = vmin.f32 %v1207_v61, 6.0  ;;  %v5627_v17 = vadd.f32 %v5541_v47, %v1093_v5  ;;  %v5630_v18 = vmul.f32 %v5536_v45, %v1000_v6  ;;  %v4716_v2 = vpop.f32.mrf.mxu1 }
 0x17a   : > { %v1226_v19 = vmin.f32 %v1172_v9, 6.0  ;;  %v1119_v20 = vadd.f32 %v5541_v47, %v1058_v11  ;;  %v4145_v21 = vunpack.c.l.bf16 %v3973_v8  ;;  %v4146_v22 = vunpack.c.h.bf16 %v3973_v8 }
 0x17b   : > { %v861_v23 = vpop.f32.mrf.mxu0  ;;  %v1809_v24 = vadd.f32 %v1793_v12, %v1732_v14  ;;  %v1849_v25 = vunpack.c.l.bf16 %v1825_v0  ;;  %v4063_v26 = vpack.c.bf16 %v1261_v15, %v1260_v63  ;;  %v1208_v10 = vmax.f32 %v5627_v17, 0.0  ;;  %v5634_v27 = vpop.f32.mrf.mxu1 }
 0x17c   : > { %v1173_v29 = vmax.f32 %v1119_v20, 0.0  ;;  %v1059_v30 = vmul.f32 %v5536_v45, %v861_v23  ;;  %v1878_v31 = vmul.f32 %v4145_v21, %v5574_v40  ;;  %v1917_v33 = vrot.slane %v4145_v21, 1 }
 0x17d   : > { %v4647_v36 = vpop.f32.mrf.mxu0  ;;  %v1877_v41 = vmul.f32 %v5574_v40, %v1849_v25  ;;  %v1909_v42 = vrot.slane %v1849_v25, 1  ;;  %v1925_v43 = vrot.slane %v4146_v22, 1  ;;  %v1985_v46 = vrot.slane %v1849_v25, 2  ;;  %4458 = vst [vmem:[#allocation4 + $0xa0] sm:$0xff] %v4063_v26   ;;  %v4719_v48 = vpop.f32.mrf.mxu1 }
 0x17e   : > { %v1227_v51 = vmin.f32 %v1173_v29, 6.0  ;;  %v1120_v58 = vadd.f32 %v5541_v47, %v1059_v30  ;;  %v1894_v59 = vadd.f32 %v1878_v31, %v1809_v24  ;;  %v5640_v60 = vrot.slane %v4145_v21, 2 }
 0x17f   : > { %v864_v62 = vpop.f32.mrf.mxu0  ;;  %v1893_v63 = vadd.f32 %v1877_v41, %v1808_v55  ;;  %v1933_v1 = vsel %vm1694_vm1, %v1917_v33, %v1925_v43  ;;  %v1941_v3 = vsel %vm1694_vm1, %v1909_v42, %v1917_v33  ;;  %v2001_v4 = vrot.slane %v4146_v22, 2  ;;  %v5646_v61 = vpop.f32.mrf.mxu1 }
 0x180   : > { %v3978_v5 = vpack.c.bf16 %v1227_v51, %v1226_v19  ;;  %v1174_v6 = vmax.f32 %v1120_v58, 0.0  ;;  %v1060_v8 = vmul.f32 %v5536_v45, %v864_v62  ;;  %v1953_v9 = vmul.f32 %v5580_v50, %v1941_v3 }
 0x181   : > { %v4648_v11 = vpop.f32.mrf.mxu0  ;;  %v1954_v12 = vmul.f32 %v5580_v50, %v1933_v1  ;;  %v5654_v55 = vsel %vm1771_vm2, %v5640_v60, %v2001_v4  ;;  %v2017_v13 = vsel %vm1771_vm2, %v1985_v46, %v5640_v60  ;;  %v1639_v14 = vmul.f32 %v4145_v21, %v5555_v7  ;;  %v4720_v0 = vpop.f32.mrf.mxu1 }
 0x182   : > { %v1228_v15 = vmin.f32 %v1174_v6, 6.0  ;;  %v1121_v2 = vadd.f32 %v5541_v47, %v1060_v8  ;;  %v1969_v19 = vadd.f32 %v1953_v9, %v1893_v63  ;;  %v2029_v20 = vmul.f32 %v5582_v52, %v2017_v13 }
 0x183   : > { %v869_v22 = vpop.f32.mrf.mxu0  ;;  %v1970_v23 = vadd.f32 %v1954_v12, %v1894_v59  ;;  %v2030_v24 = vmul.f32 %v5582_v52, %v5654_v55  ;;  %v5664_v25 = vunpack.c.l.bf16 %v3978_v5  ;;  %v5666_v26 = vunpack.c.h.bf16 %v3978_v5  ;;  %v5668_v29 = vpop.f32.mrf.mxu1  ;;  %v5688_v12 = vld [vmem:[#allocation8 + $0x8] ss:$0 sm:$0xff] }
 0x184   : > { %v1175_v30 = vmax.f32 %v1121_v2, 0.0  ;;  %v1061_v21 = vmul.f32 %v5536_v45, %v869_v22  ;;  %v2045_v31 = vadd.f32 %v2029_v20, %v1969_v19  ;;  %v1704_v36 = vsel %vm1694_vm1, %v1669_v44, %v1917_v33 }
 0x185   : > { %v4651_v41 = vpop.f32.mrf.mxu0  ;;  %v2046_v42 = vadd.f32 %v2030_v24, %v1970_v23  ;;  %v2114_v43 = vmul.f32 %v5664_v25, %v5584_v53  ;;  %v2115_v46 = vmul.f32 %v5666_v26, %v5584_v53  ;;  %v2146_v48 = vrot.slane %v5664_v25, 1  ;;  %v4723_v51 = vpop.f32.mrf.mxu1 }
 0x186   : > { %v1229_v58 = vmin.f32 %v1175_v30, 6.0  ;;  %v1122_v59 = vadd.f32 %v5541_v47, %v1061_v21  ;;  %v2154_v62 = vrot.slane %v5666_v26, 1  ;;  %v2222_v63 = vrot.slane %v5664_v25, 2 }
 0x187   : > { %v872_v3 = vpop.f32.mrf.mxu0  ;;  %v2130_v44 = vadd.f32 %v2114_v43, %v2045_v31  ;;  %v2131_v33 = vadd.f32 %v2115_v46, %v2046_v42  ;;  %v2230_v4 = vrot.slane %v5666_v26, 2  ;;  %v1717_v5 = vmul.f32 %v5561_v16, %v1704_v36  ;;  %v5685_v6 = vpop.f32.mrf.mxu1 }
 0x188   : > { %v3983_v8 = vpack.c.bf16 %v1229_v58, %v1228_v15  ;;  %v1176_v9 = vmax.f32 %v1122_v59, 0.0  ;;  %v1062_v11 = vmul.f32 %v5536_v45, %v872_v3  ;;  %v5692_v13 = vsel %vm1694_vm1, %v2146_v48, %v2154_v62  ;;  %v5718_v48 = vld [vmem:[%s7057_s5] ss:$0 sm:$0xff] }
 0x189   : > { %v4652_v0 = vpop.f32.mrf.mxu0  ;;  %v2190_v2 = vmul.f32 %v5586_v54, %v5692_v13  ;;  %v5698_v19 = vsel %vm1771_vm2, %v2222_v63, %v2230_v4  ;;  %v1718_v20 = vmul.f32 %v1933_v1, %v5561_v16  ;;  %v1733_v15 = vadd.f32 %v1717_v5, %v5614_v56  ;;  %v4724_v22 = vpop.f32.mrf.mxu1  ;;  %v5728_v5 = vld [vmem:[%s7058_s6] ss:$0 sm:$0xff] }
 0x18a   : > { %v1230_v23 = vmin.f32 %v1176_v9, 6.0  ;;  %v1123_v24 = vadd.f32 %v5541_v47, %v1062_v11  ;;  %v4193_v30 = vunpack.c.l.bf16 %v3983_v8  ;;  %v5703_v21 = vunpack.c.h.bf16 %v3983_v8 }
 0x18b   : > { %v877_v31 = vpop.f32.mrf.mxu0  ;;  %v2206_v36 = vadd.f32 %v2190_v2, %v2130_v44  ;;  %v2266_v41 = vmul.f32 %v5688_v12, %v5698_v19  ;;  %v1734_v42 = vadd.f32 %v1718_v20, %v1639_v14  ;;  %v1781_v1 = vsel %vm1771_vm2, %v1748_v57, %v5640_v60  ;;  %v5712_v56 = vpop.f32.mrf.mxu1 }
 0x18c   : > { %v1177_v43 = vmax.f32 %v1123_v24, 0.0  ;;  %v1063_v46 = vmul.f32 %v5536_v45, %v877_v31  ;;  %v2147_v51 = vrot.slane %v5703_v21, 1  ;;  %v2162_v58 = vrot.slane %v4193_v30, 1 }
 0x18d   : > { %v4655_v14 = vpop.f32.mrf.mxu0  ;;  %v2238_v59 = vrot.slane %v4193_v30, 2  ;;  %v2282_v63 = vadd.f32 %v2266_v41, %v2206_v36  ;;  %v1794_v28 = vmul.f32 %v5572_v39, %v1781_v1  ;;  %v1795_v57 = vmul.f32 %v5654_v55, %v5572_v39  ;;  %v4727_v60 = vpop.f32.mrf.mxu1 }
 0x18e   : > { %v1231_v3 = vmin.f32 %v1177_v43, 6.0  ;;  %v1124_v44 = vadd.f32 %v5541_v47, %v1063_v46  ;;  %v5732_v8 = vsel %vm1694_vm1, %v2154_v62, %v2162_v58  ;;  %v1879_v9 = vmul.f32 %v5664_v25, %v5574_v40 }
 0x18f   : > { %v880_v11 = vpop.f32.mrf.mxu0  ;;  %v2191_v55 = vmul.f32 %v5586_v54, %v5732_v8  ;;  %v5740_v0 = vsel %vm1771_vm2, %v2230_v4, %v2238_v59  ;;  %v2304_v2 = vmul.f32 %v5718_v48, %v2282_v63  ;;  %v1810_v20 = vadd.f32 %v1794_v28, %v1733_v15  ;;  %v5743_v22 = vpop.f32.mrf.mxu1 }
 0x190   : > { %v5745_v24 = vpack.c.bf16 %v1231_v3, %v1230_v23  ;;  %v1178_v62 = vmax.f32 %v1124_v44, 0.0  ;;  %v1064_v30 = vmul.f32 %v5536_v45, %v880_v11  ;;  %v2267_v31 = vmul.f32 %v5688_v12, %v5740_v0 }
 0x191   : > { %v4656_v36 = vpop.f32.mrf.mxu0  ;;  %v2207_v41 = vadd.f32 %v2191_v55, %v2131_v33  ;;  %v2326_v1 = vadd.f32 %v5728_v5, %v2304_v2  ;;  %v1811_v43 = vadd.f32 %v1795_v57, %v1734_v42  ;;  %v1880_v4 = vmul.f32 %v5666_v26, %v5574_v40  ;;  %v4728_v46 = vpop.f32.mrf.mxu1 }
 0x192   : > { %v1232_v15 = vmin.f32 %v1178_v62, 6.0  ;;  %v1125_v58 = vadd.f32 %v5541_v47, %v1064_v30  ;;  %v1895_v23 = vadd.f32 %v1879_v9, %v1810_v20  ;;  %v1955_v14 = vmul.f32 %v5692_v13, %v5580_v50 }
 0x193   : > { %v885_v59 = vpop.f32.mrf.mxu0  ;;  %v2283_v63 = vadd.f32 %v2267_v31, %v2207_v41  ;;  %v2342_v28 = vmax.f32 %v2326_v1, 0.0  ;;  %v1896_v60 = vadd.f32 %v1880_v4, %v1811_v43  ;;  %v1956_v33 = vmul.f32 %v5732_v8, %v5580_v50  ;;  %v5758_v3 = vpop.f32.mrf.mxu1 }
 0x194   : > { %v1179_v42 = vmax.f32 %v1125_v58, 0.0  ;;  %v1065_v57 = vmul.f32 %v5536_v45, %v885_v59  ;;  %v1971_v44 = vadd.f32 %v1955_v14, %v1895_v23  ;;  %v2031_v11 = vmul.f32 %v5698_v19, %v5582_v52 }
 0x195   : > { %v4659_v9 = vpop.f32.mrf.mxu0  ;;  %v2305_v55 = vmul.f32 %v5718_v48, %v2283_v63  ;;  %v2358_v2 = vmin.f32 %v2342_v28, 6.0  ;;  %v1972_v20 = vadd.f32 %v1956_v33, %v1896_v60  ;;  %v2032_v62 = vmul.f32 %v5740_v0, %v5582_v52  ;;  %v4731_v30 = vpop.f32.mrf.mxu1 }
 0x196   : > { %v1233_v31 = vmin.f32 %v1179_v42, 6.0  ;;  %v1126_v36 = vadd.f32 %v5541_v47, %v1065_v57  ;;  %v2047_v41 = vadd.f32 %v2031_v11, %v1971_v44  ;;  %v5768_v1 = vunpack.c.l.bf16 %v5745_v24 }
 0x197   : > { %v888_v43 = vpop.f32.mrf.mxu0  ;;  %v2327_v4 = vadd.f32 %v5728_v5, %v2305_v55  ;;  %v2048_v46 = vadd.f32 %v2032_v62, %v1972_v20  ;;  %v4198_v58 = vunpack.c.h.bf16 %v5745_v24  ;;  %v2116_v23 = vmul.f32 %v5703_v21, %v5584_v53  ;;  %v5774_v14 = vpop.f32.mrf.mxu1 }
 0x198   : > { %v5776_v59 = vpack.c.bf16 %v1233_v31, %v1232_v15  ;;  %v1180_v63 = vmax.f32 %v1126_v36, 0.0  ;;  %v1066_v28 = vmul.f32 %v5536_v45, %v888_v43  ;;  %v2117_v60 = vmul.f32 %v5768_v1, %v5584_v53 }
 0x199   : > { %v4660_v33 = vpop.f32.mrf.mxu0  ;;  %v2343_v42 = vmax.f32 %v2327_v4, 0.0  ;;  %v2132_v57 = vadd.f32 %v2116_v23, %v2047_v41  ;;  %v2155_v44 = vrot.slane %v5768_v1, 1  ;;  %v2163_v11 = vrot.slane %v4198_v58, 1  ;;  %v4732_v24 = vpop.f32.mrf.mxu1 }
 0x19a   : > { %4444 = vst [vmem:[#allocation4 + $0x30] sm:$0xff] %v5776_v59   ;;  %v1234_v9 = vmin.f32 %v1180_v63, 6.0  ;;  %v1127_v55 = vadd.f32 %v5541_v47, %v1066_v28  ;;  %v2133_v15 = vadd.f32 %v2117_v60, %v2048_v46  ;;  %v2223_v20 = vrot.slane %v5703_v21, 2 }
 0x19b   : > { %v893_v62 = vpop.f32.mrf.mxu0  ;;  %v2359_v30 = vmin.f32 %v2343_v42, 6.0  ;;  %v5787_v31 = vsel %vm1694_vm1, %v2155_v44, %v2163_v11  ;;  %v5793_v36 = vsel %vm1694_vm1, %v2147_v51, %v2155_v44  ;;  %v2231_v41 = vrot.slane %v5768_v1, 2  ;;  %v5796_v43 = vpop.f32.mrf.mxu1 }
 0x19c   : > { %7095 = vst [vmem:[#allocation29_spill] sm:$0xff] %v5796_v43  ;;  %v1181_v4 = vmax.f32 %v1127_v55, 0.0  ;;  %v1067_v46 = vmul.f32 %v5536_v45, %v893_v62  ;;  %v2192_v23 = vmul.f32 %v5586_v54, %v5793_v36  ;;  %v2193_v63 = vmul.f32 %v5586_v54, %v5787_v31 }
 0x19d   : > { %v4663_v28 = vpop.f32.mrf.mxu0  ;;  %v2374_v60 = vpack.c.bf16 %v2359_v30, %v2358_v2  ;;  %v2239_v33 = vrot.slane %v4198_v58, 2  ;;  %v5805_v51 = vsel %vm1771_vm2, %v2223_v20, %v2231_v41  ;;  %v5809_v42 = vmin.f32 %v1208_v10, 6.0  ;;  %v4735_v44 = vpop.f32.mrf.mxu1 }
 0x19e   : > { %v1235_v11 = vmin.f32 %v1181_v4, 6.0  ;;  %v1128_v24 = vadd.f32 %v5541_v47, %v1067_v46  ;;  %v2208_v55 = vadd.f32 %v2192_v23, %v2132_v57  ;;  %v2209_v62 = vadd.f32 %v2193_v63, %v2133_v15 }
 0x19f   : > { %v896_v43 = vpop.f32.mrf.mxu0  ;;  %4753 = vmatprep.mubr.bf16.mxu1 %v2374_v60  ;;  %v5814_v2 = vsel %vm1771_vm2, %v2231_v41, %v2239_v33  ;;  %v2268_v58 = vmul.f32 %v5688_v12, %v5805_v51  ;;  %v1640_v17 = vmul.f32 %v5664_v25, %v5555_v7  ;;  %v1641_v10 = vmul.f32 %v5666_v26, %v5555_v7  ;;  %v5822_v20 = vpop.f32.mrf.mxu1 }
 0x1a0   : > { %v5824_v30 = vpack.c.bf16 %v1235_v11, %v1234_v9  ;;  %v1182_v57 = vmax.f32 %v1128_v24, 0.0  ;;  %v1068_v15 = vmul.f32 %v5536_v45, %v896_v43  ;;  %v2269_v41 = vmul.f32 %v5688_v12, %v5814_v2 }
 0x1a1   : > { %v4664_v4 = vpop.f32.mrf.mxu0  ;;  %v2284_v46 = vadd.f32 %v2268_v58, %v2208_v55  ;;  %v1719_v23 = vmul.f32 %v5692_v13, %v5561_v16  ;;  %v1720_v25 = vmul.f32 %v5732_v8, %v5561_v16  ;;  %v1796_v26 = vmul.f32 %v5698_v19, %v5572_v39  ;;  %v4736_v63 = vpop.f32.mrf.mxu1 }
 0x1a2   : > { %4445 = vst [vmem:[#allocation4 + $0x38] sm:$0xff] %v5824_v30   ;;  %v1236_v9 = vmin.f32 %v1182_v57, 6.0  ;;  %v1129_v43 = vadd.f32 %v5541_v47, %v1068_v15  ;;  %v2285_v28 = vadd.f32 %v2269_v41, %v2209_v62  ;;  %v1797_v60 = vmul.f32 %v5740_v0, %v5572_v39 }
 0x1a3   : > { %v901_v33 = vpop.f32.mrf.mxu0  ;;  %v2306_v44 = vmul.f32 %v5718_v48, %v2284_v46  ;;  %v1735_v13 = vadd.f32 %v1719_v23, %v1640_v17  ;;  %v1736_v11 = vadd.f32 %v1720_v25, %v1641_v10  ;;  %v1881_v8 = vmul.f32 %v5703_v21, %v5574_v40 }
 0x1a4   : > { %v1183_v24 = vmax.f32 %v1129_v43, 0.0  ;;  %v1069_v19 = vmul.f32 %v5536_v45, %v901_v33  ;;  %v2307_v55 = vmul.f32 %v5718_v48, %v2285_v28  ;;  %v1882_v58 = vmul.f32 %v5768_v1, %v5574_v40 }
 0x1a5   : > { %v4667_v62 = vpop.f32.mrf.mxu0  ;;  %v2328_v57 = vadd.f32 %v5728_v5, %v2306_v44  ;;  %v1812_v0 = vadd.f32 %v1796_v26, %v1735_v13  ;;  %v1813_v15 = vadd.f32 %v1797_v60, %v1736_v11  ;;  %v1957_v17 = vmul.f32 %v5793_v36, %v5580_v50 }
 0x1a6   : > { %v1237_v10 = vmin.f32 %v1183_v24, 6.0  ;;  %v1130_v41 = vadd.f32 %v5541_v47, %v1069_v19  ;;  %v2329_v4 = vadd.f32 %v5728_v5, %v2307_v55  ;;  %v1958_v46 = vmul.f32 %v5787_v31, %v5580_v50 }
 0x1a7   : > { %v904_v23 = vpop.f32.mrf.mxu0  ;;  %v2344_v25 = vmax.f32 %v2328_v57, 0.0  ;;  %v1897_v63 = vadd.f32 %v1881_v8, %v1812_v0  ;;  %v1898_v43 = vadd.f32 %v1882_v58, %v1813_v15  ;;  %v2033_v28 = vmul.f32 %v5805_v51, %v5582_v52 }
 0x1a8   : > { %v5855_v26 = vpack.c.bf16 %v1237_v10, %v1236_v9  ;;  %v1184_v60 = vmax.f32 %v1130_v41, 0.0  ;;  %v1070_v33 = vmul.f32 %v5536_v45, %v904_v23  ;;  %v2345_v44 = vmax.f32 %v2329_v4, 0.0 }
 0x1a9   : > { %v4668_v13 = vpop.f32.mrf.mxu0  ;;  %v2360_v11 = vmin.f32 %v2344_v25, 6.0  ;;  %v1973_v24 = vadd.f32 %v1957_v17, %v1897_v63  ;;  %v1974_v19 = vadd.f32 %v1958_v46, %v1898_v43  ;;  %v2034_v55 = vmul.f32 %v5814_v2, %v5582_v52 }
 0x1aa   : > { %4446 = vst [vmem:[#allocation4 + $0x40] sm:$0xff] %v5855_v26   ;;  %v1238_v8 = vmin.f32 %v1184_v60, 6.0  ;;  %v1131_v58 = vadd.f32 %v5541_v47, %v1070_v33  ;;  %v2361_v62 = vmin.f32 %v2345_v44, 6.0  ;;  %v5863_v9 = vunpack.c.l.bf16 %v5776_v59 }
 0x1ab   : > { %v909_v57 = vpop.f32.mrf.mxu0  ;;  %v2049_v0 = vadd.f32 %v2033_v28, %v1973_v24  ;;  %v2050_v15 = vadd.f32 %v2034_v55, %v1974_v19  ;;  %v5866_v10 = vunpack.c.h.bf16 %v5776_v59  ;;  %v4205_v17 = vunpack.c.l.bf16 %v5824_v30 }
 0x1ac   : > { %v1185_v41 = vmax.f32 %v1131_v58, 0.0  ;;  %v1071_v4 = vmul.f32 %v5536_v45, %v909_v57  ;;  %v2375_v46 = vpack.c.bf16 %v2361_v62, %v2360_v11  ;;  %v2118_v23 = vmul.f32 %v5863_v9, %v5584_v53 }
 0x1ad   : > { %v4671_v25 = vpop.f32.mrf.mxu0  ;;  %v2119_v63 = vmul.f32 %v5866_v10, %v5584_v53  ;;  %v2148_v43 = vrot.slane %v5863_v9, 1  ;;  %v2156_v28 = vrot.slane %v5866_v10, 1  ;;  %v2164_v60 = vrot.slane %v4205_v17, 1 }
 0x1ae   : > { %v1239_v59 = vmin.f32 %v1185_v41, 6.0  ;;  %v1132_v33 = vadd.f32 %v5541_v47, %v1071_v4  ;;  %4754 = vmatmul.mubr.bf16.vlgmr.msra.gmra.mxu1 %v2375_v46  ;;  %v2134_v44 = vadd.f32 %v2118_v23, %v2049_v0  ;;  %v2224_v13 = vrot.slane %v5863_v9, 2 }
 0x1af   : > { %v912_v11 = vpop.f32.mrf.mxu0  ;;  %v2135_v24 = vadd.f32 %v2119_v63, %v2050_v15  ;;  %v5880_v19 = vsel %vm1694_vm1, %v2156_v28, %v2164_v60  ;;  %v5884_v55 = vsel %vm1694_vm1, %v2148_v43, %v2156_v28  ;;  %v2232_v58 = vrot.slane %v5866_v10, 2  ;;  %4770 = vmatpush3.bf16.msra.mxu1 %v5506_v32 }
 0x1b0   : > { %v4008_v62 = vpack.c.bf16 %v1239_v59, %v1238_v8  ;;  %v1186_v57 = vmax.f32 %v1132_v33, 0.0  ;;  %v1072_v0 = vmul.f32 %v5536_v45, %v912_v11  ;;  %v2194_v41 = vmul.f32 %v5586_v54, %v5884_v55  ;;  %4771 = vmatprep.subr.bf16.mxu1 %v5510_v34 }
 0x1b1   : > { %v4672_v15 = vpop.f32.mrf.mxu0  ;;  %v2195_v4 = vmul.f32 %v5586_v54, %v5880_v19  ;;  %v2240_v46 = vrot.slane %v4205_v17, 2  ;;  %v5896_v23 = vsel %vm1771_vm2, %v2224_v13, %v2232_v58  ;;  %v1155_v32 = vadd.f32 %v5541_v47, %v5630_v18 }
 0x1b2   : > { %4447 = vst [vmem:[#allocation4 + $0x48] sm:$0xff] %v4008_v62   ;;  %v1240_v8 = vmin.f32 %v1186_v57, 6.0  ;;  %v1133_v25 = vadd.f32 %v5541_v47, %v1072_v0  ;;  %v2210_v63 = vadd.f32 %v2194_v41, %v2134_v44  ;;  %v2270_v43 = vmul.f32 %v5688_v12, %v5896_v23 }
 0x1b3   : > { %v917_v28 = vpop.f32.mrf.mxu0  ;;  %v2211_v60 = vadd.f32 %v2195_v4, %v2135_v24  ;;  %v5905_v17 = vsel %vm1771_vm2, %v2232_v58, %v2240_v46  ;;  %v1209_v59 = vmax.f32 %v1155_v32, 0.0  ;;  %v1095_v33 = vmul.f32 %v5536_v45, %v5634_v27  ;;  %4772 = vmatpush3.bf16.msra.mxu1 %v5510_v34 }
 0x1b4   : > { %v1187_v18 = vmax.f32 %v1133_v25, 0.0  ;;  %v1073_v13 = vmul.f32 %v5536_v45, %v917_v28  ;;  %v2271_v44 = vmul.f32 %v5688_v12, %v5905_v17  ;;  %v2286_v11 = vadd.f32 %v2270_v43, %v2210_v63  ;;  %4773 = vmatprep.subr.bf16.mxu1 %v5516_v35 }
 0x1b5   : > { %v4675_v24 = vpop.f32.mrf.mxu0  ;;  %v1263_v62 = vmin.f32 %v1209_v59, 6.0  ;;  %v1156_v58 = vadd.f32 %v5541_v47, %v1095_v33  ;;  %v1642_v57 = vmul.f32 %v5703_v21, %v5555_v7  ;;  %v1643_v27 = vmul.f32 %v5768_v1, %v5555_v7 }
 0x1b6   : > { %v1241_v34 = vmin.f32 %v1187_v18, 6.0  ;;  %v1134_v0 = vadd.f32 %v5541_v47, %v1073_v13  ;;  %v2287_v41 = vadd.f32 %v2271_v44, %v2211_v60  ;;  %v2308_v15 = vmul.f32 %v5718_v48, %v2286_v11 }
 0x1b7   : > { %v920_v4 = vpop.f32.mrf.mxu0  ;;  %v4068_v46 = vpack.c.bf16 %v1263_v62, %v5809_v42  ;;  %v1210_v32 = vmax.f32 %v1156_v58, 0.0  ;;  %v1721_v25 = vmul.f32 %v5793_v36, %v5561_v16  ;;  %v1722_v63 = vmul.f32 %v5787_v31, %v5561_v16  ;;  %4774 = vmatpush3.bf16.msra.mxu1 %v5516_v35 }
 0x1b8   : > { %v5927_v21 = vpack.c.bf16 %v1241_v34, %v1240_v8  ;;  %v1188_v1 = vmax.f32 %v1134_v0, 0.0  ;;  %v1074_v43 = vmul.f32 %v5536_v45, %v920_v4  ;;  %v2309_v28 = vmul.f32 %v5718_v48, %v2287_v41  ;;  %4775 = vmatprep.subr.bf16.mxu1 %v5520_v37 }
 0x1b9   : > { %v4676_v60 = vpop.f32.mrf.mxu0  ;;  %v2330_v42 = vadd.f32 %v5728_v5, %v2308_v15  ;;  %4459 = vst [vmem:[#allocation4 + $0xa8] sm:$0xff] %v4068_v46   ;;  %v5933_v59 = vmin.f32 %v1210_v32, 6.0  ;;  %v1737_v36 = vadd.f32 %v1721_v25, %v1642_v57  ;;  %v1738_v33 = vadd.f32 %v1722_v63, %v1643_v27 }
 0x1ba   : > { %4448 = vst [vmem:[#allocation4 + $0x50] sm:$0xff] %v5927_v21   ;;  %v1242_v35 = vmin.f32 %v1188_v1, 6.0  ;;  %v1135_v31 = vadd.f32 %v5541_v47, %v1074_v43  ;;  %v2331_v8 = vadd.f32 %v5728_v5, %v2309_v28  ;;  %v1798_v18 = vmul.f32 %v5805_v51, %v5572_v39  ;;  %v4963_v28 = vld [vmem:[#allocation10 + $0x10] sm:$0xff]  }
 0x1bb   : > { %v925_v13 = vpop.f32.mrf.mxu0  ;;  %v2346_v44 = vmax.f32 %v2330_v42, 0.0  ;;  %v1799_v11 = vmul.f32 %v5814_v2, %v5572_v39  ;;  %v1883_v24 = vmul.f32 %v5863_v9, %v5574_v40  ;;  %v1884_v62 = vmul.f32 %v5866_v10, %v5574_v40  ;;  %4776 = vmatpush3.bf16.msra.mxu1 %v5520_v37 }
 0x1bc   : > { %v1189_v58 = vmax.f32 %v1135_v31, 0.0  ;;  %v1075_v57 = vmul.f32 %v5536_v45, %v925_v13  ;;  %v2347_v27 = vmax.f32 %v2331_v8, 0.0  ;;  %v1814_v34 = vadd.f32 %v1798_v18, %v1737_v36  ;;  %4777 = vmatprep.subr.bf16.mxu1 %v5526_v38 }
 0x1bd   : > { %v4679_v51 = vpop.f32.mrf.mxu0  ;;  %v2362_v0 = vmin.f32 %v2346_v44, 6.0  ;;  %v1815_v41 = vadd.f32 %v1799_v11, %v1738_v33  ;;  %v1959_v2 = vmul.f32 %v5884_v55, %v5580_v50  ;;  %v1960_v9 = vmul.f32 %v5880_v19, %v5580_v50  ;;  %v4962_v55 = vld [vmem:[#allocation10 + $0x18] sm:$0xff]   ;;  %v5970_v33 = vld [vmem:[%s7055_s3] ss:$0 sm:$0xff] }
 0x1be   : > { %v1243_v15 = vmin.f32 %v1189_v58, 6.0  ;;  %v1136_v10 = vadd.f32 %v5541_v47, %v1075_v57  ;;  %v2363_v37 = vmin.f32 %v2347_v27, 6.0  ;;  %v1899_v4 = vadd.f32 %v1883_v24, %v1814_v34  ;;  %v5980_v24 = vld [vmem:[%s7054_s2] ss:$0 sm:$0xff] }
 0x1bf   : > { %v928_v46 = vpop.f32.mrf.mxu0  ;;  %v1900_v32 = vadd.f32 %v1884_v62, %v1815_v41  ;;  %v2035_v25 = vmul.f32 %v5896_v23, %v5582_v52  ;;  %v2036_v38 = vmul.f32 %v5905_v17, %v5582_v52  ;;  %v5959_v63 = vunpack.c.h.bf16 %v5824_v30  ;;  %4778 = vmatpush3.bf16.msra.mxu1 %v4962_v55  ;;  %v4966_v27 = vld [vmem:[#allocation10 + $0x8] sm:$0xff]  }
 0x1c0   : > { %v5961_v1 = vpack.c.bf16 %v1243_v15, %v1242_v35  ;;  %v1190_v19 = vmax.f32 %v1136_v10, 0.0  ;;  %v1076_v47 = vmul.f32 %v5536_v45, %v928_v46  ;;  %v2376_v43 = vpack.c.bf16 %v2363_v37, %v2362_v0  ;;  %4779 = vmatprep.subr.bf16.mxu1 %v4963_v28 }
 0x1c1   : > { %v4680_v60 = vpop.f32.mrf.mxu0  ;;  %v1975_v42 = vadd.f32 %v1959_v2, %v1899_v4  ;;  %v1976_v36 = vadd.f32 %v1960_v9, %v1900_v32  ;;  %v4209_v23 = vunpack.c.l.bf16 %v5855_v26  ;;  %v4210_v17 = vunpack.c.h.bf16 %v5855_v26 }
 0x1c2   : > { %4449 = vst [vmem:[#allocation4 + $0x58] sm:$0xff] %v5961_v1   ;;  %v1244_v30 = vmin.f32 %v1190_v19, 6.0  ;;  %v1137_v45 = vadd.f32 %v5970_v33, %v1076_v47  ;;  %4757 = vmatprep.mubr.bf16.mxu1 %v2376_v43  ;;  %v2120_v35 = vmul.f32 %v5959_v63, %v5584_v53  ;;  %v2149_v31 = vrot.slane %v5959_v63, 1 }
 0x1c3   : > { %v933_v8 = vpop.f32.mrf.mxu0  ;;  %v2051_v18 = vadd.f32 %v2035_v25, %v1975_v42  ;;  %v2052_v13 = vadd.f32 %v2036_v38, %v1976_v36  ;;  %v2121_v26 = vmul.f32 %v4209_v23, %v5584_v53  ;;  %v2157_v44 = vrot.slane %v4209_v23, 1  ;;  %4780 = vmatpush3.bf16.msra.mxu1 %v4963_v28  ;;  %v4967_v28 = vld [vmem:[#allocation10] sm:$0xff]  }
 0x1c4   : > { %v1191_v11 = vmax.f32 %v1137_v45, 0.0  ;;  %v1077_v62 = vmul.f32 %v5980_v24, %v933_v8  ;;  %v2165_v58 = vrot.slane %v4210_v17, 1  ;;  %v2225_v57 = vrot.slane %v5959_v63, 2  ;;  %4781 = vmatprep.subr.bf16.mxu1 %v4966_v27 }
 0x1c5   : > { %v4683_v34 = vpop.f32.mrf.mxu0  ;;  %v2136_v51 = vadd.f32 %v2120_v35, %v2051_v18  ;;  %v2137_v0 = vadd.f32 %v2121_v26, %v2052_v13  ;;  %v2181_v41 = vsel %vm1694_vm1, %v2149_v31, %v2157_v44  ;;  %v2233_v2 = vrot.slane %v4209_v23, 2 }
 0x1c6   : > { %v1245_v9 = vmin.f32 %v1191_v11, 6.0  ;;  %v1138_v15 = vadd.f32 %v5970_v33, %v1077_v62  ;;  %v2173_v10 = vsel %vm1694_vm1, %v2157_v44, %v2165_v58  ;;  %v2196_v37 = vmul.f32 %v5586_v54, %v2181_v41 }
 0x1c7   : > { %v936_v4 = vpop.f32.mrf.mxu0  ;;  %v2197_v46 = vmul.f32 %v5586_v54, %v2173_v10  ;;  %v2241_v32 = vrot.slane %v4210_v17, 2  ;;  %v2257_v25 = vsel %vm1771_vm2, %v2225_v57, %v2233_v2  ;;  %v1096_v38 = vmul.f32 %v5980_v24, %v5646_v61  ;;  %4782 = vmatpush3.bf16.msra.mxu1 %v4966_v27 }
 0x1c8   : > { %v4023_v55 = vpack.c.bf16 %v1245_v9, %v1244_v30  ;;  %v1192_v19 = vmax.f32 %v1138_v15, 0.0  ;;  %v1078_v47 = vmul.f32 %v5980_v24, %v936_v4  ;;  %v2212_v43 = vadd.f32 %v2196_v37, %v2136_v51  ;;  %4783 = vmatprep.subr.bf16.mxu1 %v4967_v28 }
 0x1c9   : > { %v2213_v60 = vadd.f32 %v2197_v46, %v2137_v0  ;;  %v2249_v42 = vsel %vm1771_vm2, %v2233_v2, %v2241_v32  ;;  %v2272_v36 = vmul.f32 %v5688_v12, %v2257_v25  ;;  %v1157_v23 = vadd.f32 %v5970_v33, %v1096_v38  ;;  %v4684_v17 = vpop.f32.mrf.mxu0  ;;  %v4470_v32 = vld [vmem:[#allocation4 + $0x30] sm:$0xff]  }
 0x1ca   : > { %4450 = vst [vmem:[#allocation4 + $0x60] sm:$0xff] %v4023_v55   ;;  %v1246_v45 = vmin.f32 %v1192_v19, 6.0  ;;  %v1139_v61 = vadd.f32 %v5970_v33, %v1078_v47  ;;  %v2273_v30 = vmul.f32 %v5688_v12, %v2249_v42  ;;  %v1097_v35 = vmul.f32 %v5980_v24, %v5668_v29  ;;  %v6024_v47 = vld [vmem:[#allocation4 + $0x38] sm:$0xff]  }
 0x1cb   : > { %v2288_v8 = vadd.f32 %v2272_v36, %v2212_v43  ;;  %v1211_v18 = vmax.f32 %v1157_v23, 0.0  ;;  %v941_v13 = vpop.f32.mrf.mxu0  ;;  %v1098_v26 = vmul.f32 %v5980_v24, %v5685_v6  ;;  %v1099_v44 = vmul.f32 %v5980_v24, %v5712_v56  ;;  %4784 = vmatpush3.bf16.msra.mxu1 %v4967_v28 }
 0x1cc   : > { %v1193_v11 = vmax.f32 %v1139_v61, 0.0  ;;  %v2289_v62 = vadd.f32 %v2273_v30, %v2213_v60  ;;  %v1079_v58 = vmul.f32 %v5980_v24, %v941_v13  ;;  %v1158_v27 = vadd.f32 %v5970_v33, %v1097_v35 }
 0x1cd   : > { %v2310_v34 = vmul.f32 %v5718_v48, %v2288_v8  ;;  %v1265_v51 = vmin.f32 %v1211_v18, 6.0  ;;  %v4687_v29 = vpop.f32.mrf.mxu0  ;;  %v1159_v0 = vadd.f32 %v5970_v33, %v1098_v26  ;;  %v1160_v41 = vadd.f32 %v5970_v33, %v1099_v44 }
 0x1ce   : > { %v1247_v2 = vmin.f32 %v1193_v11, 6.0  ;;  %v2311_v6 = vmul.f32 %v5718_v48, %v2289_v62  ;;  %v1140_v56 = vadd.f32 %v5970_v33, %v1079_v58  ;;  %v1212_v9 = vmax.f32 %v1158_v27, 0.0 }
 0x1cf   : > { %v2332_v15 = vadd.f32 %v5728_v5, %v2310_v34  ;;  %v4073_v10 = vpack.c.bf16 %v1265_v51, %v5933_v59  ;;  %v944_v37 = vpop.f32.mrf.mxu0  ;;  %v1213_v4 = vmax.f32 %v1159_v0, 0.0  ;;  %v1214_v46 = vmax.f32 %v1160_v41, 0.0 }
 0x1d0   : > { %v6021_v25 = vpack.c.bf16 %v1247_v2, %v1246_v45  ;;  %v2333_v38 = vadd.f32 %v5728_v5, %v2311_v6  ;;  %v1194_v55 = vmax.f32 %v1140_v56, 0.0  ;;  %v1266_v19 = vmin.f32 %v1212_v9, 6.0  ;;  %v4482_v6 = vld [vmem:[#allocation4 + $0x40] sm:$0xff]  }
 0x1d1   : > { %v2348_v43 = vmax.f32 %v2332_v15, 0.0  ;;  %4460 = vst [vmem:[#allocation4 + $0xb0] sm:$0xff] %v4073_v10   ;;  %v1080_v28 = vmul.f32 %v5980_v24, %v944_v37  ;;  %v1267_v60 = vmin.f32 %v1213_v4, 6.0  ;;  %v4688_v42 = vpop.f32.mrf.mxu0  ;;  %v6027_v36 = vmin.f32 %v1214_v46, 6.0 }
 0x1d2   : > { %4451 = vst [vmem:[#allocation4 + $0x68] sm:$0xff] %v6021_v25   ;;  %v2349_v59 = vmax.f32 %v2333_v38, 0.0  ;;  %v1248_v23 = vmin.f32 %v1194_v55, 6.0  ;;  %v4121_v17 = vunpack.c.l.bf16 %v4470_v32  ;;  %v4122_v45 = vunpack.c.h.bf16 %v4470_v32 }
 0x1d3   : > { %v2364_v61 = vmin.f32 %v2348_v43, 6.0  ;;  %v1141_v30 = vadd.f32 %v5970_v33, %v1080_v28  ;;  %v4078_v35 = vpack.c.bf16 %v1267_v60, %v1266_v19  ;;  %v949_v8 = vpop.f32.mrf.mxu0  ;;  %v4125_v18 = vunpack.c.l.bf16 %v6024_v47 }
 0x1d4   : > { %v2365_v13 = vmin.f32 %v2349_v59, 6.0  ;;  %v1081_v26 = vmul.f32 %v5980_v24, %v949_v8  ;;  %v1644_v44 = vmul.f32 %v4121_v17, %v5555_v7  ;;  %v1645_v11 = vmul.f32 %v4122_v45, %v5555_v7  ;;  %v4492_v8 = vld [vmem:[#allocation4 + $0x48] sm:$0xff]  }
 0x1d5   : > { %v1195_v62 = vmax.f32 %v1141_v30, 0.0  ;;  %4461 = vst [vmem:[#allocation4 + $0xb8] sm:$0xff] %v4078_v35   ;;  %v4691_v58 = vpop.f32.mrf.mxu0  ;;  %v1672_v27 = vrot.slane %v4121_v17, 1  ;;  %v1680_v34 = vrot.slane %v4122_v45, 1  ;;  %v1688_v51 = vrot.slane %v4125_v18, 1 }
 0x1d6   : > { %v2377_v29 = vpack.c.bf16 %v2365_v13, %v2364_v61  ;;  %v1142_v0 = vadd.f32 %v5970_v33, %v1081_v26  ;;  %v1751_v41 = vrot.slane %v4121_v17, 2  ;;  %v1759_v2 = vrot.slane %v4122_v45, 2 }
 0x1d7   : > { %v1249_v56 = vmin.f32 %v1195_v62, 6.0  ;;  %v952_v9 = vpop.f32.mrf.mxu0  ;;  %v1699_v15 = vsel %vm1694_vm1, %v1680_v34, %v1688_v51  ;;  %v1707_v10 = vsel %vm1694_vm1, %v1672_v27, %v1680_v34  ;;  %v1767_v37 = vrot.slane %v4125_v18, 2 }
 0x1d8   : > { %4758 = vmatmul.mubr.bf16.gmra.mxu1 %v2377_v29  ;;  %v1196_v4 = vmax.f32 %v1142_v0, 0.0  ;;  %v1082_v46 = vmul.f32 %v5980_v24, %v952_v9  ;;  %v1723_v32 = vmul.f32 %v5561_v16, %v1707_v10  ;;  %v1724_v38 = vmul.f32 %v5561_v16, %v1699_v15 }
 0x1d9   : > { %v6043_v55 = vpack.c.bf16 %v1249_v56, %v1248_v23  ;;  %v1776_v19 = vsel %vm1771_vm2, %v1759_v2, %v1767_v37  ;;  %v1784_v43 = vsel %vm1771_vm2, %v1751_v41, %v1759_v2  ;;  %v6049_v28 = vunpack.c.l.bf16 %v4482_v6  ;;  %v4692_v60 = vpop.f32.mrf.mxu0 }
 0x1da   : > { %v1250_v42 = vmin.f32 %v1196_v4, 6.0  ;;  %v1143_v59 = vadd.f32 %v5970_v33, %v1082_v46  ;;  %v1739_v17 = vadd.f32 %v1723_v32, %v1644_v44  ;;  %v1740_v45 = vadd.f32 %v1724_v38, %v1645_v11 }
 0x1db   : > { %v1800_v61 = vmul.f32 %v5572_v39, %v1784_v43  ;;  %v1801_v30 = vmul.f32 %v5572_v39, %v1776_v19  ;;  %v4170_v23 = vunpack.c.h.bf16 %v4482_v6  ;;  %v1885_v35 = vmul.f32 %v5959_v63, %v5574_v40  ;;  %v957_v18 = vpop.f32.mrf.mxu0 }
 0x1dc   : > { %v1197_v13 = vmax.f32 %v1143_v59, 0.0  ;;  %v1886_v26 = vmul.f32 %v6049_v28, %v5574_v40  ;;  %v6059_v62 = vrot.slane %v6049_v28, 1  ;;  %v6062_v44 = vrot.slane %v6049_v28, 2 }
 0x1dd   : > { %v1816_v11 = vadd.f32 %v1800_v61, %v1739_v17  ;;  %v1817_v58 = vadd.f32 %v1801_v30, %v1740_v45  ;;  %v1929_v27 = vrot.slane %v4170_v23, 1  ;;  %v2005_v34 = vrot.slane %v4170_v23, 2  ;;  %v4695_v51 = vpop.f32.mrf.mxu0 }
 0x1de   : > { %v1251_v29 = vmin.f32 %v1197_v13, 6.0  ;;  %v1945_v0 = vsel %vm1694_vm1, %v2149_v31, %v6059_v62  ;;  %v2021_v41 = vsel %vm1771_vm2, %v2225_v57, %v6062_v44  ;;  %v6074_v2 = vunpack.c.l.bf16 %v4492_v8 }
 0x1df   : > { %v1901_v6 = vadd.f32 %v1885_v35, %v1816_v11  ;;  %v1902_v56 = vadd.f32 %v1886_v26, %v1817_v58  ;;  %v6079_v9 = vsel %vm1694_vm1, %v6059_v62, %v1929_v27  ;;  %v1961_v15 = vmul.f32 %v5580_v50, %v1945_v0  ;;  %v960_v10 = vpop.f32.mrf.mxu0 }
 0x1e0   : > { %v6082_v37 = vpack.c.bf16 %v1251_v29, %v1250_v42  ;;  %v1962_v63 = vmul.f32 %v5580_v50, %v6079_v9  ;;  %v6089_v31 = vsel %vm1771_vm2, %v6062_v44, %v2005_v34  ;;  %v2037_v57 = vmul.f32 %v5582_v52, %v2021_v41 }
 0x1e1   : > { %v1977_v4 = vadd.f32 %v1961_v15, %v1901_v6  ;;  %v2038_v46 = vmul.f32 %v5582_v52, %v6089_v31  ;;  %v6094_v32 = vunpack.c.h.bf16 %v4492_v8  ;;  %v4217_v38 = vunpack.c.l.bf16 %v5927_v21  ;;  %v4696_v19 = vpop.f32.mrf.mxu0 }
 0x1e2   : > { %4453 = vst [vmem:[#allocation4 + $0x78] sm:$0xff] %v6082_v37   ;;  %v1978_v43 = vadd.f32 %v1962_v63, %v1902_v56  ;;  %v2122_v60 = vmul.f32 %v6074_v2, %v5584_v53  ;;  %v2150_v42 = vrot.slane %v6074_v2, 1  ;;  %v2226_v59 = vrot.slane %v6074_v2, 2 }
 0x1e3   : > { %v2053_v17 = vadd.f32 %v2037_v57, %v1977_v4  ;;  %v2123_v45 = vmul.f32 %v6094_v32, %v5584_v53  ;;  %v6105_v61 = vrot.slane %v6094_v32, 1  ;;  %v2166_v30 = vrot.slane %v4217_v38, 1  ;;  %v6107_v23 = vpop.f32.mrf.mxu0 }
 0x1e4   : > { %v2054_v35 = vadd.f32 %v2038_v46, %v1978_v43  ;;  %v6110_v8 = vrot.slane %v6094_v32, 2  ;;  %v2242_v13 = vrot.slane %v4217_v38, 2  ;;  %v1100_v26 = vmul.f32 %v5980_v24, %v5743_v22 }
 0x1e5   : > { %v2138_v11 = vadd.f32 %v2122_v60, %v2053_v17  ;;  %v2174_v58 = vsel %vm1694_vm1, %v6105_v61, %v2166_v30  ;;  %v6120_v27 = vsel %vm1694_vm1, %v2150_v42, %v6105_v61  ;;  %v1083_v34 = vmul.f32 %v5980_v24, %v957_v18  ;;  %v4699_v51 = vpop.f32.mrf.mxu0 }
 0x1e6   : > { %v2139_v29 = vadd.f32 %v2123_v45, %v2054_v35  ;;  %v2198_v0 = vmul.f32 %v5586_v54, %v6120_v27  ;;  %v2199_v41 = vmul.f32 %v5586_v54, %v2174_v58  ;;  %v2250_v22 = vsel %vm1771_vm2, %v6110_v8, %v2242_v13 }
 0x1e7   : > { %v6132_v6 = vsel %vm1771_vm2, %v2226_v59, %v6110_v8  ;;  %v2275_v56 = vmul.f32 %v5688_v12, %v2250_v22  ;;  %v1161_v18 = vadd.f32 %v5970_v33, %v1100_v26  ;;  %v1144_v15 = vadd.f32 %v5970_v33, %v1083_v34  ;;  %v6137_v63 = vpop.f32.mrf.mxu0 }
 0x1e8   : > { %v2214_v57 = vadd.f32 %v2198_v0, %v2138_v11  ;;  %v2215_v4 = vadd.f32 %v2199_v41, %v2139_v29  ;;  %v2274_v46 = vmul.f32 %v5688_v12, %v6132_v6  ;;  %v1101_v38 = vmul.f32 %v5980_v24, %v5758_v3 }
 0x1e9   : > { %v1215_v19 = vmax.f32 %v1161_v18, 0.0  ;;  %v1198_v43 = vmax.f32 %v1144_v15, 0.0  ;;  %v1084_v60 = vmul.f32 %v5980_v24, %v960_v10  ;;  %v4126_v42 = vunpack.c.h.bf16 %v6024_v47  ;;  %v4700_v59 = vpop.f32.mrf.mxu0 }
 0x1ea   : > { %v2290_v17 = vadd.f32 %v2274_v46, %v2214_v57  ;;  %v2291_v45 = vadd.f32 %v2275_v56, %v2215_v4  ;;  %v1162_v30 = vadd.f32 %v5970_v33, %v1101_v38  ;;  %v1647_v35 = vmul.f32 %v6049_v28, %v5555_v7 }
 0x1eb   : > { %v1269_v13 = vmin.f32 %v1215_v19, 6.0  ;;  %v1252_v26 = vmin.f32 %v1198_v43, 6.0  ;;  %v1145_v12 = vadd.f32 %v5970_v33, %v1084_v60  ;;  %v1646_v3 = vmul.f32 %v4126_v42, %v5555_v7 }
 0x1ec   : > { %v2312_v11 = vmul.f32 %v5718_v48, %v2290_v17  ;;  %v2313_v10 = vmul.f32 %v5718_v48, %v2291_v45  ;;  %v1216_v58 = vmax.f32 %v1162_v30, 0.0  ;;  %v1673_v47 = vrot.slane %v4126_v42, 1  ;;  %v6162_v48 = vld [vmem:[#allocation4 + $0x50] sm:$0xff]  }
 0x1ed   : > { %v4083_v34 = vpack.c.bf16 %v1269_v13, %v6027_v36  ;;  %v1199_v51 = vmax.f32 %v1145_v12, 0.0  ;;  %v1726_v29 = vmul.f32 %v6079_v9, %v5561_v16  ;;  %v1752_v0 = vrot.slane %v4126_v42, 2 }
 0x1ee   : > { %v2334_v28 = vadd.f32 %v5728_v5, %v2312_v11  ;;  %v2335_v41 = vadd.f32 %v5728_v5, %v2313_v10  ;;  %v6157_v22 = vmin.f32 %v1216_v58, 6.0  ;;  %v1708_v56 = vsel %vm1694_vm1, %v1673_v47, %v6059_v62 }
 0x1ef   : > { %4462 = vst [vmem:[#allocation4 + $0xc0] sm:$0xff] %v4083_v34   ;;  %v1253_v18 = vmin.f32 %v1199_v51, 6.0  ;;  %v1725_v36 = vmul.f32 %v5561_v16, %v1708_v56  ;;  %v1742_v15 = vadd.f32 %v1726_v29, %v1647_v35  ;;  %v1785_v9 = vsel %vm1771_vm2, %v1752_v0, %v6062_v44 }
 0x1f0   : > { %v2350_v57 = vmax.f32 %v2334_v28, 0.0  ;;  %v2351_v4 = vmax.f32 %v2335_v41, 0.0  ;;  %v1802_v5 = vmul.f32 %v5572_v39, %v1785_v9  ;;  %v1803_v46 = vmul.f32 %v6089_v31, %v5572_v39 }
 0x1f1   : > { %v6171_v38 = vpack.c.bf16 %v1253_v18, %v1252_v26  ;;  %v1741_v62 = vadd.f32 %v1725_v36, %v1646_v3  ;;  %v4177_v19 = vunpack.c.l.bf16 %v6162_v48  ;;  %v1887_v43 = vmul.f32 %v6074_v2, %v5574_v40 }
 0x1f2   : > { %v2366_v60 = vmin.f32 %v2350_v57, 6.0  ;;  %v2367_v42 = vmin.f32 %v2351_v4, 6.0  ;;  %v1819_v59 = vadd.f32 %v1803_v46, %v1742_v15  ;;  %v1888_v44 = vmul.f32 %v6094_v32, %v5574_v40 }
 0x1f3   : > { %v1818_v17 = vadd.f32 %v1802_v5, %v1741_v62  ;;  %v1930_v45 = vrot.slane %v4177_v19, 1  ;;  %v1963_v30 = vmul.f32 %v6120_v27, %v5580_v50  ;;  %v2006_v31 = vrot.slane %v4177_v19, 2 }
 0x1f4   : > { %v2378_v35 = vpack.c.bf16 %v2367_v42, %v2366_v60  ;;  %v1904_v13 = vadd.f32 %v1888_v44, %v1819_v59  ;;  %v2039_v26 = vmul.f32 %v6132_v6, %v5582_v52  ;;  %v4218_v12 = vunpack.c.h.bf16 %v5927_v21  ;;  %v6213_v60 = vld [vmem:[#allocation8 + $0x8] ss:$0 sm:$0xff] }
 0x1f5   : > { %v1903_v3 = vadd.f32 %v1887_v43, %v1818_v17  ;;  %v6186_v11 = vsel %vm1694_vm1, %v6105_v61, %v1930_v45  ;;  %v6191_v10 = vsel %vm1771_vm2, %v6110_v8, %v2006_v31  ;;  %v4221_v58 = vunpack.c.l.bf16 %v5961_v1 }
 0x1f6   : > { %4761 = vmatprep.mubr.bf16.mxu1 %v2378_v35  ;;  %v1964_v47 = vmul.f32 %v5580_v50, %v6186_v11  ;;  %v2040_v21 = vmul.f32 %v5582_v52, %v6191_v10  ;;  %v4222_v34 = vunpack.c.h.bf16 %v5961_v1  ;;  %v2124_v51 = vmul.f32 %v4218_v12, %v5584_v53 }
 0x1f7   : > { %v1979_v61 = vadd.f32 %v1963_v30, %v1903_v3  ;;  %v2125_v29 = vmul.f32 %v4221_v58, %v5584_v53  ;;  %v2151_v0 = vrot.slane %v4218_v12, 1  ;;  %v2159_v28 = vrot.slane %v4221_v58, 1  ;;  %v7096_v30 = vld [vmem:[#allocation29_spill] sm:$0xff] }
 0x1f8   : > { %v1980_v8 = vadd.f32 %v1964_v47, %v1904_v13  ;;  %v2167_v41 = vrot.slane %v4222_v34, 1  ;;  %v2227_v56 = vrot.slane %v4218_v12, 2  ;;  %v2235_v18 = vrot.slane %v4221_v58, 2 }
 0x1f9   : > { %v2055_v36 = vadd.f32 %v2039_v26, %v1979_v61  ;;  %v2183_v15 = vsel %vm1694_vm1, %v2151_v0, %v2159_v28  ;;  %v2243_v9 = vrot.slane %v4222_v34, 2  ;;  %v1102_v57 = vmul.f32 %v5980_v24, %v5774_v14 }
 0x1fa   : > { %v2056_v1 = vadd.f32 %v2040_v21, %v1980_v8  ;;  %v2175_v4 = vsel %vm1694_vm1, %v2159_v28, %v2167_v41  ;;  %v2200_v5 = vmul.f32 %v5586_v54, %v2183_v15  ;;  %v2259_v46 = vsel %vm1771_vm2, %v2227_v56, %v2235_v18 }
 0x1fb   : > { %v2140_v62 = vadd.f32 %v2124_v51, %v2055_v36  ;;  %v2201_v19 = vmul.f32 %v5586_v54, %v2175_v4  ;;  %v2251_v43 = vsel %vm1771_vm2, %v2235_v18, %v2243_v9  ;;  %v2276_v42 = vmul.f32 %v6213_v60, %v2259_v46  ;;  %v4485_v4 = vld [vmem:[#allocation4 + $0x58] sm:$0xff]  }
 0x1fc   : > { %v2141_v14 = vadd.f32 %v2125_v29, %v2056_v1  ;;  %v2277_v59 = vmul.f32 %v6213_v60, %v2251_v43  ;;  %v1163_v44 = vadd.f32 %v5970_v33, %v1102_v57  ;;  %v1085_v17 = vmul.f32 %v5980_v24, %v6107_v23 }
 0x1fd   : > { %v2216_v45 = vadd.f32 %v2200_v5, %v2140_v62  ;;  %v1103_v31 = vmul.f32 %v5980_v24, %v7096_v30  ;;  %v1086_v35 = vmul.f32 %v5980_v24, %v6137_v63  ;;  %v1104_v13 = vmul.f32 %v5980_v24, %v5822_v20  ;;  %v6237_v24 = vld [vmem:[%s7057_s5] ss:$0 sm:$0xff]  ;;  %v4495_v5 = vld [vmem:[#allocation4 + $0x60] sm:$0xff]  }
 0x1fe   : > { %v2217_v26 = vadd.f32 %v2201_v19, %v2141_v14  ;;  %v1217_v12 = vmax.f32 %v1163_v44, 0.0  ;;  %v1146_v3 = vadd.f32 %v5970_v33, %v1085_v17  ;;  %v1648_v58 = vmul.f32 %v6074_v2, %v5555_v7 }
 0x1ff   : > { %v2292_v47 = vadd.f32 %v2276_v42, %v2216_v45  ;;  %v1164_v23 = vadd.f32 %v5970_v33, %v1103_v31  ;;  %v1147_v21 = vadd.f32 %v5970_v33, %v1086_v35  ;;  %v1165_v34 = vadd.f32 %v5970_v33, %v1104_v13 }
 0x200   : > { %v2293_v51 = vadd.f32 %v2277_v59, %v2217_v26  ;;  %v1271_v61 = vmin.f32 %v1217_v12, 6.0  ;;  %v1200_v63 = vmax.f32 %v1146_v3, 0.0  ;;  %v1649_v20 = vmul.f32 %v6094_v32, %v5555_v7  ;;  %v6247_v32 = vld [vmem:[%s7058_s6] ss:$0 sm:$0xff] }
 0x201   : > { %v2314_v2 = vmul.f32 %v6237_v24, %v2292_v47  ;;  %v1218_v29 = vmax.f32 %v1164_v23, 0.0  ;;  %v1201_v0 = vmax.f32 %v1147_v21, 0.0  ;;  %v1219_v28 = vmax.f32 %v1165_v34, 0.0 }
 0x202   : > { %v2315_v8 = vmul.f32 %v6237_v24, %v2293_v51  ;;  %v4088_v33 = vpack.c.bf16 %v1271_v61, %v6157_v22  ;;  %v1254_v41 = vmin.f32 %v1200_v63, 6.0  ;;  %v1727_v56 = vmul.f32 %v6120_v27, %v5561_v16 }
 0x203   : > { %v2336_v18 = vadd.f32 %v6247_v32, %v2314_v2  ;;  %v1272_v36 = vmin.f32 %v1218_v29, 6.0  ;;  %v1255_v15 = vmin.f32 %v1201_v0, 6.0  ;;  %v1273_v9 = vmin.f32 %v1219_v28, 6.0 }
 0x204   : > { %v2337_v57 = vadd.f32 %v6247_v32, %v2315_v8  ;;  %4463 = vst [vmem:[#allocation4 + $0xc8] sm:$0xff] %v4088_v33   ;;  %v1728_v22 = vmul.f32 %v6186_v11, %v5561_v16  ;;  %v1743_v1 = vadd.f32 %v1727_v56, %v1648_v58  ;;  %v1804_v27 = vmul.f32 %v6132_v6, %v5572_v39 }
 0x205   : > { %v2352_v46 = vmax.f32 %v2336_v18, 0.0  ;;  %v6255_v62 = vpack.c.bf16 %v1255_v15, %v1254_v41  ;;  %v4093_v19 = vpack.c.bf16 %v1273_v9, %v1272_v36  ;;  %v1805_v43 = vmul.f32 %v6191_v10, %v5572_v39 }
 0x206   : > { %v2353_v42 = vmax.f32 %v2337_v57, 0.0  ;;  %v1744_v14 = vadd.f32 %v1728_v22, %v1649_v20  ;;  %v1820_v59 = vadd.f32 %v1804_v27, %v1743_v1  ;;  %v4178_v44 = vunpack.c.h.bf16 %v6162_v48 }
 0x207   : > { %v2368_v17 = vmin.f32 %v2352_v46, 6.0  ;;  %4464 = vst [vmem:[#allocation4 + $0xd0] sm:$0xff] %v4093_v19   ;;  %v4181_v11 = vunpack.c.l.bf16 %v4485_v4  ;;  %v4182_v45 = vunpack.c.h.bf16 %v4485_v4  ;;  %v6260_v30 = vunpack.c.l.bf16 %v4495_v5 }
 0x208   : > { %v2369_v6 = vmin.f32 %v2353_v42, 6.0  ;;  %v1821_v31 = vadd.f32 %v1805_v43, %v1744_v14  ;;  %v1889_v35 = vmul.f32 %v4178_v44, %v5574_v40  ;;  %v1915_v13 = vrot.slane %v4178_v44, 1 }
 0x209   : > { %v1890_v26 = vmul.f32 %v4181_v11, %v5574_v40  ;;  %v1923_v12 = vrot.slane %v4181_v11, 1  ;;  %v1931_v10 = vrot.slane %v4182_v45, 1  ;;  %v1991_v3 = vrot.slane %v4178_v44, 2 }
 0x20a   : > { %v2379_v58 = vpack.c.bf16 %v2369_v6, %v2368_v17  ;;  %v1905_v47 = vadd.f32 %v1889_v35, %v1820_v59  ;;  %v1999_v23 = vrot.slane %v4181_v11, 2  ;;  %v2007_v48 = vrot.slane %v4182_v45, 2  ;;  %v6309_v45 = vld [vmem:[#allocation4 + $0x68] sm:$0xff]  }
 0x20b   : > { %v1906_v21 = vadd.f32 %v1890_v26, %v1821_v31  ;;  %v1939_v34 = vsel %vm1694_vm1, %v1923_v12, %v1931_v10  ;;  %v1947_v51 = vsel %vm1694_vm1, %v1915_v13, %v1923_v12  ;;  %v6268_v61 = vunpack.c.h.bf16 %v4495_v5 }
 0x20c   : > { %4762 = vmatmul.mubr.bf16.gmra.mxu1 %v2379_v58  ;;  %v1965_v63 = vmul.f32 %v5580_v50, %v1947_v51  ;;  %v1966_v20 = vmul.f32 %v5580_v50, %v1939_v34  ;;  %v2015_v2 = vsel %vm1771_vm2, %v1999_v23, %v2007_v48  ;;  %v2023_v29 = vsel %vm1771_vm2, %v1991_v3, %v1999_v23 }
 0x20d   : > { %v2041_v0 = vmul.f32 %v5582_v52, %v2023_v29  ;;  %v2042_v28 = vmul.f32 %v5582_v52, %v2015_v2  ;;  %v4229_v8 = vunpack.c.l.bf16 %v6021_v25  ;;  %v2126_v33 = vmul.f32 %v6260_v30, %v5584_v53 }
 0x20e   : > { %v1981_v41 = vadd.f32 %v1965_v63, %v1905_v47  ;;  %v1982_v56 = vadd.f32 %v1966_v20, %v1906_v21  ;;  %v2127_v18 = vmul.f32 %v6268_v61, %v5584_v53  ;;  %v2152_v36 = vrot.slane %v6260_v30, 1 }
 0x20f   : > { %v6285_v15 = vrot.slane %v6268_v61, 1  ;;  %v2168_v9 = vrot.slane %v4229_v8, 1  ;;  %v2228_v57 = vrot.slane %v6260_v30, 2  ;;  %v6289_v22 = vrot.slane %v6268_v61, 2 }
 0x210   : > { %v2057_v1 = vadd.f32 %v2041_v0, %v1981_v41  ;;  %v2058_v27 = vadd.f32 %v2042_v28, %v1982_v56  ;;  %v2244_v4 = vrot.slane %v4229_v8, 2  ;;  %v1650_v5 = vmul.f32 %v4178_v44, %v5555_v7 }
 0x211   : > { %v2176_v46 = vsel %vm1694_vm1, %v6285_v15, %v2168_v9  ;;  %v6298_v19 = vsel %vm1694_vm1, %v2152_v36, %v6285_v15  ;;  %v6303_v43 = vsel %vm1771_vm2, %v2228_v57, %v6289_v22  ;;  %v1651_v42 = vmul.f32 %v4181_v11, %v5555_v7 }
 0x212   : > { %v2142_v14 = vadd.f32 %v2126_v33, %v2057_v1  ;;  %v2143_v59 = vadd.f32 %v2127_v18, %v2058_v27  ;;  %v2202_v44 = vmul.f32 %v5586_v54, %v6298_v19  ;;  %v2203_v17 = vmul.f32 %v5586_v54, %v2176_v46 }
 0x213   : > { %v2252_v6 = vsel %vm1771_vm2, %v6289_v22, %v2244_v4  ;;  %v2278_v31 = vmul.f32 %v6213_v60, %v6303_v43  ;;  %v1729_v35 = vmul.f32 %v1947_v51, %v5561_v16  ;;  %v1730_v11 = vmul.f32 %v1939_v34, %v5561_v16 }
 0x214   : > { %v2218_v13 = vadd.f32 %v2202_v44, %v2142_v14  ;;  %v2219_v26 = vadd.f32 %v2203_v17, %v2143_v59  ;;  %v2279_v12 = vmul.f32 %v6213_v60, %v2252_v6  ;;  %v1806_v10 = vmul.f32 %v2023_v29, %v5572_v39 }
 0x215   : > { %v1745_v3 = vadd.f32 %v1729_v35, %v1650_v5  ;;  %v1746_v58 = vadd.f32 %v1730_v11, %v1651_v42  ;;  %v1807_v47 = vmul.f32 %v2015_v2, %v5572_v39  ;;  %v1872_v23 = vunpack.c.l.bf16 %v6309_v45 }
 0x216   : > { %v2294_v48 = vadd.f32 %v2278_v31, %v2218_v13  ;;  %v2295_v21 = vadd.f32 %v2279_v12, %v2219_v26  ;;  %v1891_v63 = vmul.f32 %v6260_v30, %v5574_v40  ;;  %v1892_v34 = vmul.f32 %v6268_v61, %v5574_v40 }
 0x217   : > { %v1822_v51 = vadd.f32 %v1806_v10, %v1745_v3  ;;  %v1823_v20 = vadd.f32 %v1807_v47, %v1746_v58  ;;  %v1932_v0 = vrot.slane %v1872_v23, 1  ;;  %v1967_v29 = vmul.f32 %v6298_v19, %v5580_v50  ;;  %v4505_v10 = vld [vmem:[#allocation4 + $0x68] sm:$0xff]  }
 0x218   : > { %v2316_v28 = vmul.f32 %v6237_v24, %v2294_v48  ;;  %v2317_v2 = vmul.f32 %v6237_v24, %v2295_v21  ;;  %v2008_v8 = vrot.slane %v1872_v23, 2  ;;  %v2043_v33 = vmul.f32 %v6303_v43, %v5582_v52 }
 0x219   : > { %v1907_v41 = vadd.f32 %v1891_v63, %v1822_v51  ;;  %v1908_v56 = vadd.f32 %v1892_v34, %v1823_v20  ;;  %v1940_v18 = vsel %vm1694_vm1, %v6285_v15, %v1932_v0  ;;  %v4230_v36 = vunpack.c.h.bf16 %v6021_v25 }
 0x21a   : > { %v2338_v9 = vadd.f32 %v6247_v32, %v2316_v28  ;;  %v2339_v57 = vadd.f32 %v6247_v32, %v2317_v2  ;;  %v1968_v1 = vmul.f32 %v5580_v50, %v1940_v18  ;;  %v2016_v27 = vsel %vm1771_vm2, %v6289_v22, %v2008_v8 }
 0x21b   : > { %v1983_v4 = vadd.f32 %v1967_v29, %v1907_v41  ;;  %v2044_v5 = vmul.f32 %v5582_v52, %v2016_v27  ;;  %v6344_v46 = vunpack.c.l.bf16 %v6043_v55  ;;  %v4234_v42 = vunpack.c.h.bf16 %v6043_v55 }
 0x21c   : > { %v2354_v14 = vmax.f32 %v2338_v9, 0.0  ;;  %v2355_v25 = vmax.f32 %v2339_v57, 0.0  ;;  %v1984_v59 = vadd.f32 %v1968_v1, %v1908_v56  ;;  %v2128_v44 = vmul.f32 %v4230_v36, %v5584_v53 }
 0x21d   : > { %v2059_v17 = vadd.f32 %v2043_v33, %v1983_v4  ;;  %v2129_v6 = vmul.f32 %v6344_v46, %v5584_v53  ;;  %v2153_v31 = vrot.slane %v4230_v36, 1  ;;  %v6351_v35 = vrot.slane %v6344_v46, 1 }
 0x21e   : > { %v2370_v11 = vmin.f32 %v2354_v14, 6.0  ;;  %v2371_v13 = vmin.f32 %v2355_v25, 6.0  ;;  %v2060_v26 = vadd.f32 %v2044_v5, %v1984_v59  ;;  %v2169_v12 = vrot.slane %v4234_v42, 1 }
 0x21f   : > { %v2144_v3 = vadd.f32 %v2128_v44, %v2059_v17  ;;  %v2185_v55 = vsel %vm1694_vm1, %v2153_v31, %v6351_v35  ;;  %v2229_v58 = vrot.slane %v4230_v36, 2  ;;  %v6357_v47 = vrot.slane %v6344_v46, 2 }
 0x220   : > { %v2380_v23 = vpack.c.bf16 %v2371_v13, %v2370_v11  ;;  %v2145_v48 = vadd.f32 %v2129_v6, %v2060_v26  ;;  %v6362_v21 = vsel %vm1694_vm1, %v6351_v35, %v2169_v12  ;;  %v2204_v63 = vmul.f32 %v5586_v54, %v2185_v55 }
 0x221   : > { %v2205_v34 = vmul.f32 %v5586_v54, %v6362_v21  ;;  %v2245_v51 = vrot.slane %v4234_v42, 2  ;;  %v2261_v20 = vsel %vm1771_vm2, %v2229_v58, %v6357_v47  ;;  %v4273_v0 = vunpack.c.l.bf16 %v4505_v10 }
 0x222   : > { %4765 = vmatprep.mubr.bf16.mxu1 %v2380_v23  ;;  %v2220_v29 = vadd.f32 %v2204_v63, %v2144_v3  ;;  %v2280_v28 = vmul.f32 %v6213_v60, %v2261_v20  ;;  %v6371_v2 = vunpack.c.h.bf16 %v4505_v10  ;;  %v2684_v8 = vmul.f32 %v6260_v30, %v5555_v7 }
 0x223   : > { %v2221_v33 = vadd.f32 %v2205_v34, %v2145_v48  ;;  %v6378_v41 = vsel %vm1771_vm2, %v6357_v47, %v2245_v51  ;;  %v2685_v56 = vmul.f32 %v6268_v61, %v5555_v7  ;;  %v2732_v18 = vrot.slane %v4273_v0, 1 }
 0x224   : > { %v2281_v36 = vmul.f32 %v6213_v60, %v6378_v41  ;;  %v2296_v9 = vadd.f32 %v2280_v28, %v2220_v29  ;;  %v2717_v57 = vrot.slane %v6371_v2, 1  ;;  %v2756_v1 = vmul.f32 %v6298_v19, %v5561_v16 }
 0x225   : > { %v2740_v30 = vsel %vm1694_vm1, %v6285_v15, %v2732_v18  ;;  %v2804_v27 = vrot.slane %v4273_v0, 2  ;;  %v2828_v4 = vmul.f32 %v6303_v43, %v5572_v39  ;;  %v2885_v61 = vunpack.c.h.bf16 %v6309_v45 }
 0x226   : > { %v2297_v5 = vadd.f32 %v2281_v36, %v2221_v33  ;;  %v2318_v42 = vmul.f32 %v6237_v24, %v2296_v9  ;;  %v2757_v14 = vmul.f32 %v2740_v30, %v5561_v16  ;;  %v2772_v25 = vadd.f32 %v2756_v1, %v2684_v8 }
 0x227   : > { %v2812_v19 = vsel %vm1771_vm2, %v6289_v22, %v2804_v27  ;;  %v2909_v59 = vmul.f32 %v2885_v61, %v5574_v40  ;;  %v2910_v15 = vmul.f32 %v6344_v46, %v5574_v40  ;;  %v2941_v44 = vrot.slane %v2885_v61, 1 }
 0x228   : > { %v2319_v43 = vmul.f32 %v6237_v24, %v2297_v5  ;;  %v2340_v45 = vadd.f32 %v6247_v32, %v2318_v42  ;;  %v2773_v17 = vadd.f32 %v2757_v14, %v2685_v56  ;;  %v2829_v6 = vmul.f32 %v2812_v19, %v5572_v39 }
 0x229   : > { %v2844_v31 = vadd.f32 %v2828_v4, %v2772_v25  ;;  %v2973_v11 = vsel %vm1694_vm1, %v2941_v44, %v6351_v35  ;;  %v2982_v22 = vmul.f32 %v6362_v21, %v5580_v50  ;;  %v3013_v13 = vrot.slane %v2885_v61, 2 }
 0x22a   : > { %v2341_v26 = vadd.f32 %v6247_v32, %v2319_v43  ;;  %v2356_v12 = vmax.f32 %v2340_v45, 0.0  ;;  %v2845_v10 = vadd.f32 %v2829_v6, %v2773_v17  ;;  %v2981_v3 = vmul.f32 %v2973_v11, %v5580_v50 }
 0x22b   : > { %v2925_v55 = vadd.f32 %v2909_v59, %v2844_v31  ;;  %v3045_v58 = vsel %vm1771_vm2, %v3013_v13, %v6357_v47  ;;  %v3054_v23 = vmul.f32 %v6378_v41, %v5582_v52  ;;  %v4361_v48 = vunpack.c.l.bf16 %v6082_v37  ;;  %v4517_v31 = vld [vmem:[#allocation4 + $0x78] sm:$0xff]  }
 0x22c   : > { %v2357_v63 = vmax.f32 %v2341_v26, 0.0  ;;  %v2372_v34 = vmin.f32 %v2356_v12, 6.0  ;;  %v2926_v51 = vadd.f32 %v2910_v15, %v2845_v10  ;;  %v3053_v20 = vmul.f32 %v3045_v58, %v5582_v52 }
 0x22d   : > { %v2997_v0 = vadd.f32 %v2981_v3, %v2925_v55  ;;  %v4362_v29 = vunpack.c.h.bf16 %v6082_v37  ;;  %v4365_v28 = vunpack.c.l.bf16 %v6171_v38  ;;  %v6421_v8 = vunpack.c.h.bf16 %v6171_v38 }
 0x22e   : > { %v2373_v33 = vmin.f32 %v2357_v63, 6.0  ;;  %v2998_v56 = vadd.f32 %v2982_v22, %v2926_v51  ;;  %v3134_v18 = vmul.f32 %v4361_v48, %v5584_v53  ;;  %v3166_v36 = vrot.slane %v4361_v48, 1 }
 0x22f   : > { %v3069_v9 = vadd.f32 %v3053_v20, %v2997_v0  ;;  %v3135_v1 = vmul.f32 %v4362_v29, %v5584_v53  ;;  %v3167_v30 = vrot.slane %v6421_v8, 1  ;;  %v3174_v27 = vrot.slane %v4362_v29, 1 }
 0x230   : > { %v2381_v4 = vpack.c.bf16 %v2373_v33, %v2372_v34  ;;  %v3070_v61 = vadd.f32 %v3054_v23, %v2998_v56  ;;  %v3182_v5 = vrot.slane %v4365_v28, 1  ;;  %v3238_v37 = vrot.slane %v4361_v48, 2 }
 0x231   : > { %v3150_v42 = vadd.f32 %v3134_v18, %v3069_v9  ;;  %v3198_v38 = vsel %vm1694_vm1, %v3166_v36, %v3174_v27  ;;  %v3246_v14 = vrot.slane %v4362_v29, 2  ;;  %v3254_v25 = vrot.slane %v4365_v28, 2 }
 0x232   : > { %4766 = vmatmul.mubr.bf16.gmra.mxu1 %v2381_v4  ;;  %v3151_v19 = vadd.f32 %v3135_v1, %v3070_v61  ;;  %v3190_v59 = vsel %vm1694_vm1, %v3174_v27, %v3182_v5  ;;  %v3206_v15 = vmul.f32 %v3198_v38, %v5586_v54  ;;  %v2686_v44 = vmul.f32 %v6371_v2, %v5555_v7 }
 0x233   : > { %v3207_v43 = vmul.f32 %v3190_v59, %v5586_v54  ;;  %v3262_v45 = vsel %vm1771_vm2, %v3246_v14, %v3254_v25  ;;  %v3270_v17 = vsel %vm1771_vm2, %v3238_v37, %v3246_v14  ;;  %v2687_v6 = vmul.f32 %v6344_v46, %v5555_v7 }
 0x234   : > { %v3222_v11 = vadd.f32 %v3206_v15, %v3150_v42  ;;  %v3278_v22 = vmul.f32 %v6213_v60, %v3270_v17  ;;  %v3279_v13 = vmul.f32 %v6213_v60, %v3262_v45  ;;  %v2749_v26 = vsel %vm1694_vm1, %v2717_v57, %v6351_v35 }
 0x235   : > { %v3223_v12 = vadd.f32 %v3207_v43, %v3151_v19  ;;  %v2758_v10 = vmul.f32 %v2749_v26, %v5561_v16  ;;  %v2759_v3 = vmul.f32 %v6362_v21, %v5561_v16  ;;  %v2789_v46 = vrot.slane %v6371_v2, 2 }
 0x236   : > { %v3294_v55 = vadd.f32 %v3278_v22, %v3222_v11  ;;  %v2831_v58 = vmul.f32 %v6378_v41, %v5572_v39  ;;  %v4321_v23 = vunpack.c.l.bf16 %v4517_v31  ;;  %v4322_v48 = vunpack.c.h.bf16 %v4517_v31 }
 0x237   : > { %v3295_v63 = vadd.f32 %v3279_v13, %v3223_v12  ;;  %v2774_v34 = vadd.f32 %v2758_v10, %v2686_v44  ;;  %v2775_v51 = vadd.f32 %v2759_v3, %v2687_v6  ;;  %v2821_v35 = vsel %vm1771_vm2, %v2789_v46, %v6357_v47 }
 0x238   : > { %v3310_v57 = vmul.f32 %v6237_v24, %v3294_v55  ;;  %v2830_v20 = vmul.f32 %v2821_v35, %v5572_v39  ;;  %v2911_v21 = vmul.f32 %v4321_v23, %v5574_v40  ;;  %v2912_v2 = vmul.f32 %v4322_v48, %v5574_v40 }
 0x239   : > { %v3311_v0 = vmul.f32 %v6237_v24, %v3295_v63  ;;  %v2847_v41 = vadd.f32 %v2831_v58, %v2775_v51  ;;  %v2942_v29 = vrot.slane %v4321_v23, 1  ;;  %v2950_v28 = vrot.slane %v4322_v48, 1 }
 0x23a   : > { %v3326_v33 = vadd.f32 %v6247_v32, %v3310_v57  ;;  %v2846_v56 = vadd.f32 %v2830_v20, %v2774_v34  ;;  %v3014_v18 = vrot.slane %v4321_v23, 2  ;;  %v3022_v36 = vrot.slane %v4322_v48, 2 }
 0x23b   : > { %v3327_v47 = vadd.f32 %v6247_v32, %v3311_v0  ;;  %v2928_v9 = vadd.f32 %v2912_v2, %v2847_v41  ;;  %v2966_v1 = vsel %vm1694_vm1, %v2950_v28, %v3182_v5  ;;  %v2974_v27 = vsel %vm1694_vm1, %v2942_v29, %v2950_v28 }
 0x23c   : > { %v3342_v4 = vmax.f32 %v3326_v33, 0.0  ;;  %v2927_v61 = vadd.f32 %v2911_v21, %v2846_v56  ;;  %v2983_v37 = vmul.f32 %v2974_v27, %v5580_v50  ;;  %v2984_v42 = vmul.f32 %v2966_v1, %v5580_v50 }
 0x23d   : > { %v3343_v38 = vmax.f32 %v3327_v47, 0.0  ;;  %v3038_v14 = vsel %vm1771_vm2, %v3022_v36, %v3254_v25  ;;  %v3046_v19 = vsel %vm1771_vm2, %v3014_v18, %v3022_v36  ;;  %v6474_v59 = vunpack.c.l.bf16 %v6255_v62 }
 0x23e   : > { %v3358_v5 = vmin.f32 %v3342_v4, 6.0  ;;  %v2999_v15 = vadd.f32 %v2983_v37, %v2927_v61  ;;  %v3000_v44 = vadd.f32 %v2984_v42, %v2928_v9  ;;  %v3055_v43 = vmul.f32 %v3046_v19, %v5582_v52  ;;  %v4529_v9 = vld [vmem:[#allocation4 + $0x90] sm:$0xff]   ;;  %v6522_v4 = vld [vmem:[#allocation4 + $0x98] sm:$0xff]  }
 0x23f   : > { %v3359_v45 = vmin.f32 %v3343_v38, 6.0  ;;  %v3056_v17 = vmul.f32 %v3038_v14, %v5582_v52  ;;  %v4370_v6 = vunpack.c.h.bf16 %v6255_v62  ;;  %v3136_v31 = vmul.f32 %v6421_v8, %v5584_v53 }
 0x240   : > { %v3071_v25 = vadd.f32 %v3055_v43, %v2999_v15  ;;  %v3137_v11 = vmul.f32 %v6474_v59, %v5584_v53  ;;  %v3175_v22 = vrot.slane %v6474_v59, 1  ;;  %v3239_v13 = vrot.slane %v6421_v8, 2 }
 0x241   : > { %v3374_v26 = vpack.c.bf16 %v3359_v45, %v3358_v5  ;;  %v3072_v12 = vadd.f32 %v3056_v17, %v3000_v44  ;;  %v3183_v10 = vrot.slane %v4370_v6, 1  ;;  %v3247_v3 = vrot.slane %v6474_v59, 2 }
 0x242   : > { %v3152_v46 = vadd.f32 %v3136_v31, %v3071_v25  ;;  %v6490_v62 = vsel %vm1694_vm1, %v3167_v30, %v3175_v22  ;;  %v3255_v55 = vrot.slane %v4370_v6, 2  ;;  %v2688_v58 = vmul.f32 %v4321_v23, %v5555_v7 }
 0x243   : > { %4785 = vmatprep.mubr.bf16.mxu1 %v3374_v26  ;;  %v3153_v63 = vadd.f32 %v3137_v11, %v3072_v12  ;;  %v6495_v34 = vsel %vm1694_vm1, %v3175_v22, %v3183_v10  ;;  %v3208_v51 = vmul.f32 %v6490_v62, %v5586_v54  ;;  %v6501_v35 = vsel %vm1771_vm2, %v3239_v13, %v3247_v3 }
 0x244   : > { %v3209_v30 = vmul.f32 %v6495_v34, %v5586_v54  ;;  %v6507_v57 = vsel %vm1771_vm2, %v3247_v3, %v3255_v55  ;;  %v3280_v23 = vmul.f32 %v6213_v60, %v6501_v35  ;;  %v2689_v20 = vmul.f32 %v4322_v48, %v5555_v7 }
 0x245   : > { %v3224_v21 = vadd.f32 %v3208_v51, %v3152_v46  ;;  %v3281_v2 = vmul.f32 %v6213_v60, %v6507_v57  ;;  %v2760_v0 = vmul.f32 %v2974_v27, %v5561_v16  ;;  %v2761_v41 = vmul.f32 %v2966_v1, %v5561_v16 }
 0x246   : > { %v3225_v29 = vadd.f32 %v3209_v30, %v3153_v63  ;;  %v2832_v28 = vmul.f32 %v3046_v19, %v5572_v39  ;;  %v2833_v33 = vmul.f32 %v3038_v14, %v5572_v39  ;;  %v2913_v56 = vmul.f32 %v6421_v8, %v5574_v40 }
 0x247   : > { %v3296_v18 = vadd.f32 %v3280_v23, %v3224_v21  ;;  %v2776_v36 = vadd.f32 %v2760_v0, %v2688_v58  ;;  %v2777_v47 = vadd.f32 %v2761_v41, %v2689_v20  ;;  %v2914_v48 = vmul.f32 %v6474_v59, %v5574_v40 }
 0x248   : > { %v3297_v27 = vadd.f32 %v3281_v2, %v3225_v29  ;;  %v2985_v1 = vmul.f32 %v6490_v62, %v5580_v50  ;;  %v2986_v61 = vmul.f32 %v6495_v34, %v5580_v50  ;;  %v3057_v37 = vmul.f32 %v6501_v35, %v5582_v52 }
 0x249   : > { %v3312_v42 = vmul.f32 %v6237_v24, %v3296_v18  ;;  %v2848_v38 = vadd.f32 %v2832_v28, %v2776_v36  ;;  %v2849_v14 = vadd.f32 %v2833_v33, %v2777_v47  ;;  %v3058_v19 = vmul.f32 %v6507_v57, %v5582_v52 }
 0x24a   : > { %v3313_v5 = vmul.f32 %v6237_v24, %v3297_v27  ;;  %v6534_v15 = vunpack.c.l.bf16 %v4529_v9  ;;  %v6536_v44 = vunpack.c.h.bf16 %v4529_v9  ;;  %v4377_v43 = vunpack.c.l.bf16 %v6522_v4 }
 0x24b   : > { %v3328_v45 = vadd.f32 %v6247_v32, %v3312_v42  ;;  %v2929_v17 = vadd.f32 %v2913_v56, %v2848_v38  ;;  %v2930_v6 = vadd.f32 %v2914_v48, %v2849_v14  ;;  %v2690_v31 = vmul.f32 %v6421_v8, %v5555_v7 }
 0x24c   : > { %v3329_v25 = vadd.f32 %v6247_v32, %v3313_v5  ;;  %v3138_v11 = vmul.f32 %v6534_v15, %v5584_v53  ;;  %v3139_v22 = vmul.f32 %v6536_v44, %v5584_v53  ;;  %v3168_v13 = vrot.slane %v6534_v15, 1 }
 0x24d   : > { %v3344_v26 = vmax.f32 %v3328_v45, 0.0  ;;  %v3001_v12 = vadd.f32 %v2985_v1, %v2929_v17  ;;  %v3002_v10 = vadd.f32 %v2986_v61, %v2930_v6  ;;  %v3176_v3 = vrot.slane %v6536_v44, 1 }
 0x24e   : > { %v3345_v46 = vmax.f32 %v3329_v25, 0.0  ;;  %v3184_v55 = vrot.slane %v4377_v43, 1  ;;  %v3240_v58 = vrot.slane %v6534_v15, 2  ;;  %v3248_v8 = vrot.slane %v6536_v44, 2 }
 0x24f   : > { %v3360_v63 = vmin.f32 %v3344_v26, 6.0  ;;  %v3073_v51 = vadd.f32 %v3057_v37, %v3001_v12  ;;  %v3074_v30 = vadd.f32 %v3058_v19, %v3002_v10  ;;  %v6553_v23 = vsel %vm1694_vm1, %v3168_v13, %v3176_v3 }
 0x250   : > { %v3361_v20 = vmin.f32 %v3345_v46, 6.0  ;;  %v6557_v21 = vsel %vm1694_vm1, %v3176_v3, %v3184_v55  ;;  %v3210_v2 = vmul.f32 %v6553_v23, %v5586_v54  ;;  %v3256_v0 = vrot.slane %v4377_v43, 2 }
 0x251   : > { %v3154_v41 = vadd.f32 %v3138_v11, %v3073_v51  ;;  %v3155_v29 = vadd.f32 %v3139_v22, %v3074_v30  ;;  %v3211_v28 = vmul.f32 %v6557_v21, %v5586_v54  ;;  %v6565_v33 = vsel %vm1771_vm2, %v3240_v58, %v3248_v8 }
 0x252   : > { %v3375_v56 = vpack.c.bf16 %v3361_v20, %v3360_v63  ;;  %v6569_v18 = vsel %vm1771_vm2, %v3248_v8, %v3256_v0  ;;  %v3282_v36 = vmul.f32 %v6213_v60, %v6565_v33  ;;  %v2691_v47 = vmul.f32 %v6474_v59, %v5555_v7 }
 0x253   : > { %v3226_v48 = vadd.f32 %v3210_v2, %v3154_v41  ;;  %v3227_v9 = vadd.f32 %v3211_v28, %v3155_v29  ;;  %v3283_v27 = vmul.f32 %v6213_v60, %v6569_v18  ;;  %v2762_v1 = vmul.f32 %v6490_v62, %v5561_v16  ;;  %v4531_v62 = vld [vmem:[#allocation4 + $0xa0] sm:$0xff]  }
 0x254   : > { %4786 = vmatmul.mubr.bf16.vlgmr.msra.gmra.mxu1 %v3375_v56  ;;  %v2763_v61 = vmul.f32 %v6495_v34, %v5561_v16  ;;  %v2834_v37 = vmul.f32 %v6501_v35, %v5572_v39  ;;  %v2835_v42 = vmul.f32 %v6507_v57, %v5572_v39  ;;  %v2915_v59 = vmul.f32 %v6534_v15, %v5574_v40 }
 0x255   : > { %v3298_v38 = vadd.f32 %v3282_v36, %v3226_v48  ;;  %v3299_v14 = vadd.f32 %v3283_v27, %v3227_v9  ;;  %v2778_v19 = vadd.f32 %v2762_v1, %v2690_v31  ;;  %v2916_v5 = vmul.f32 %v6536_v44, %v5574_v40 }
 0x256   : > { %v2779_v43 = vadd.f32 %v2763_v61, %v2691_v47  ;;  %v2987_v34 = vmul.f32 %v6553_v23, %v5580_v50  ;;  %v2988_v35 = vmul.f32 %v6557_v21, %v5580_v50  ;;  %v3059_v57 = vmul.f32 %v6565_v33, %v5582_v52 }
 0x257   : > { %v3314_v45 = vmul.f32 %v6237_v24, %v3298_v38  ;;  %v3315_v17 = vmul.f32 %v6237_v24, %v3299_v14  ;;  %v2850_v6 = vadd.f32 %v2834_v37, %v2778_v19  ;;  %v3060_v31 = vmul.f32 %v6569_v18, %v5582_v52 }
 0x258   : > { %v2851_v25 = vadd.f32 %v2835_v42, %v2779_v43  ;;  %v6600_v11 = vunpack.c.h.bf16 %v6522_v4  ;;  %v6602_v22 = vunpack.c.l.bf16 %v4531_v62  ;;  %v4382_v13 = vunpack.c.h.bf16 %v4531_v62 }
 0x259   : > { %v3330_v26 = vadd.f32 %v6247_v32, %v3314_v45  ;;  %v3331_v12 = vadd.f32 %v6247_v32, %v3315_v17  ;;  %v2931_v10 = vadd.f32 %v2915_v59, %v2850_v6  ;;  %v2692_v3 = vmul.f32 %v6534_v15, %v5555_v7 }
 0x25a   : > { %v2932_v46 = vadd.f32 %v2916_v5, %v2851_v25  ;;  %v3140_v55 = vmul.f32 %v6600_v11, %v5584_v53  ;;  %v3141_v58 = vmul.f32 %v6602_v22, %v5584_v53  ;;  %v3169_v4 = vrot.slane %v6600_v11, 1  ;;  %v6654_v25 = vld [vmem:[#allocation4 + $0xb0] sm:$0xff]  }
 0x25b   : > { %v3346_v8 = vmax.f32 %v3330_v26, 0.0  ;;  %v3347_v63 = vmax.f32 %v3331_v12, 0.0  ;;  %v3003_v51 = vadd.f32 %v2987_v34, %v2931_v10  ;;  %v3177_v30 = vrot.slane %v6602_v22, 1 }
 0x25c   : > { %v3004_v20 = vadd.f32 %v2988_v35, %v2932_v46  ;;  %v3185_v2 = vrot.slane %v4382_v13, 1  ;;  %v3241_v0 = vrot.slane %v6600_v11, 2  ;;  %v3249_v15 = vrot.slane %v6602_v22, 2 }
 0x25d   : > { %v3362_v41 = vmin.f32 %v3346_v8, 6.0  ;;  %v3363_v29 = vmin.f32 %v3347_v63, 6.0  ;;  %v3075_v28 = vadd.f32 %v3059_v57, %v3003_v51  ;;  %v6618_v56 = vsel %vm1694_vm1, %v3169_v4, %v3177_v30 }
 0x25e   : > { %v3076_v36 = vadd.f32 %v3060_v31, %v3004_v20  ;;  %v6622_v47 = vsel %vm1694_vm1, %v3177_v30, %v3185_v2  ;;  %v3212_v48 = vmul.f32 %v6618_v56, %v5586_v54  ;;  %v3257_v9 = vrot.slane %v4382_v13, 2 }
 0x25f   : > { %v3376_v27 = vpack.c.bf16 %v3363_v29, %v3362_v41  ;;  %v3156_v1 = vadd.f32 %v3140_v55, %v3075_v28  ;;  %v3213_v61 = vmul.f32 %v6622_v47, %v5586_v54  ;;  %v6630_v37 = vsel %vm1771_vm2, %v3241_v0, %v3249_v15 }
 0x260   : > { %v3157_v42 = vadd.f32 %v3141_v58, %v3076_v36  ;;  %v6634_v59 = vsel %vm1771_vm2, %v3249_v15, %v3257_v9  ;;  %v3284_v38 = vmul.f32 %v6213_v60, %v6630_v37  ;;  %v2693_v14 = vmul.f32 %v6536_v44, %v5555_v7 }
 0x261   : > { %4789 = vmatprep.mubr.bf16.mxu1 %v3376_v27  ;;  %v3228_v19 = vadd.f32 %v3212_v48, %v3156_v1  ;;  %v3285_v5 = vmul.f32 %v6213_v60, %v6634_v59  ;;  %v2764_v62 = vmul.f32 %v6553_v23, %v5561_v16  ;;  %v2765_v43 = vmul.f32 %v6557_v21, %v5561_v16  ;;  %v4532_v23 = vld [vmem:[#allocation4 + $0xa8] sm:$0xff]  }
 0x262   : > { %v3229_v34 = vadd.f32 %v3213_v61, %v3157_v42  ;;  %v2836_v35 = vmul.f32 %v6565_v33, %v5572_v39  ;;  %v2837_v57 = vmul.f32 %v6569_v18, %v5572_v39  ;;  %v2917_v44 = vmul.f32 %v6600_v11, %v5574_v40 }
 0x263   : > { %v3300_v45 = vadd.f32 %v3284_v38, %v3228_v19  ;;  %v2780_v17 = vadd.f32 %v2764_v62, %v2692_v3  ;;  %v2781_v6 = vadd.f32 %v2765_v43, %v2693_v14  ;;  %v2918_v31 = vmul.f32 %v6602_v22, %v5574_v40 }
 0x264   : > { %v3301_v21 = vadd.f32 %v3285_v5, %v3229_v34  ;;  %v2989_v13 = vmul.f32 %v6618_v56, %v5580_v50  ;;  %v2990_v33 = vmul.f32 %v6622_v47, %v5580_v50  ;;  %v3061_v18 = vmul.f32 %v6630_v37, %v5582_v52 }
 0x265   : > { %v3316_v26 = vmul.f32 %v6237_v24, %v3300_v45  ;;  %v2852_v12 = vadd.f32 %v2836_v35, %v2780_v17  ;;  %v2853_v10 = vadd.f32 %v2837_v57, %v2781_v6  ;;  %v3062_v3 = vmul.f32 %v6634_v59, %v5582_v52 }
 0x266   : > { %v3317_v46 = vmul.f32 %v6237_v24, %v3301_v21  ;;  %v6666_v55 = vunpack.c.l.bf16 %v4532_v23  ;;  %v6668_v58 = vunpack.c.h.bf16 %v4532_v23  ;;  %v4389_v4 = vunpack.c.l.bf16 %v6654_v25 }
 0x267   : > { %v3332_v8 = vadd.f32 %v6247_v32, %v3316_v26  ;;  %v2933_v63 = vadd.f32 %v2917_v44, %v2852_v12  ;;  %v2934_v51 = vadd.f32 %v2918_v31, %v2853_v10  ;;  %v2694_v30 = vmul.f32 %v6600_v11, %v5555_v7 }
 0x268   : > { %v3333_v20 = vadd.f32 %v6247_v32, %v3317_v46  ;;  %v3142_v2 = vmul.f32 %v6666_v55, %v5584_v53  ;;  %v3143_v0 = vmul.f32 %v6668_v58, %v5584_v53  ;;  %v3170_v15 = vrot.slane %v6666_v55, 1 }
 0x269   : > { %v3348_v41 = vmax.f32 %v3332_v8, 0.0  ;;  %v3005_v29 = vadd.f32 %v2989_v13, %v2933_v63  ;;  %v3006_v28 = vadd.f32 %v2990_v33, %v2934_v51  ;;  %v3178_v36 = vrot.slane %v6668_v58, 1 }
 0x26a   : > { %v3349_v48 = vmax.f32 %v3333_v20, 0.0  ;;  %v3186_v9 = vrot.slane %v4389_v4, 1  ;;  %v3242_v27 = vrot.slane %v6666_v55, 2  ;;  %v3250_v11 = vrot.slane %v6668_v58, 2 }
 0x26b   : > { %v3364_v1 = vmin.f32 %v3348_v41, 6.0  ;;  %v3077_v61 = vadd.f32 %v3061_v18, %v3005_v29  ;;  %v3078_v42 = vadd.f32 %v3062_v3, %v3006_v28  ;;  %v6685_v38 = vsel %vm1694_vm1, %v3170_v15, %v3178_v36 }
 0x26c   : > { %v3365_v14 = vmin.f32 %v3349_v48, 6.0  ;;  %v6689_v19 = vsel %vm1694_vm1, %v3178_v36, %v3186_v9  ;;  %v3214_v5 = vmul.f32 %v6685_v38, %v5586_v54  ;;  %v3258_v62 = vrot.slane %v4389_v4, 2 }
 0x26d   : > { %v3158_v43 = vadd.f32 %v3142_v2, %v3077_v61  ;;  %v3159_v34 = vadd.f32 %v3143_v0, %v3078_v42  ;;  %v3215_v35 = vmul.f32 %v6689_v19, %v5586_v54  ;;  %v6697_v57 = vsel %vm1771_vm2, %v3242_v27, %v3250_v11 }
 0x26e   : > { %v3377_v44 = vpack.c.bf16 %v3365_v14, %v3364_v1  ;;  %v6701_v45 = vsel %vm1771_vm2, %v3250_v11, %v3258_v62  ;;  %v3286_v17 = vmul.f32 %v6213_v60, %v6697_v57  ;;  %v2695_v6 = vmul.f32 %v6602_v22, %v5555_v7 }
 0x26f   : > { %v3230_v31 = vadd.f32 %v3214_v5, %v3158_v43  ;;  %v3231_v23 = vadd.f32 %v3215_v35, %v3159_v34  ;;  %v3287_v21 = vmul.f32 %v6213_v60, %v6701_v45  ;;  %v2766_v13 = vmul.f32 %v6618_v56, %v5561_v16  ;;  %v4534_v56 = vld [vmem:[#allocation4 + $0xb8] sm:$0xff]  }
 0x270   : > { %4790 = vmatmul.mubr.bf16.gmra.mxu1 %v3377_v44  ;;  %v2767_v33 = vmul.f32 %v6622_v47, %v5561_v16  ;;  %v2838_v18 = vmul.f32 %v6630_v37, %v5572_v39  ;;  %v2839_v26 = vmul.f32 %v6634_v59, %v5572_v39  ;;  %v2919_v22 = vmul.f32 %v6666_v55, %v5574_v40 }
 0x271   : > { %v3302_v12 = vadd.f32 %v3286_v17, %v3230_v31  ;;  %v3303_v10 = vadd.f32 %v3287_v21, %v3231_v23  ;;  %v2782_v3 = vadd.f32 %v2766_v13, %v2694_v30  ;;  %v2920_v60 = vmul.f32 %v6668_v58, %v5574_v40 }
 0x272   : > { %v2783_v46 = vadd.f32 %v2767_v33, %v2695_v6  ;;  %v2991_v47 = vmul.f32 %v6685_v38, %v5580_v50  ;;  %v2992_v37 = vmul.f32 %v6689_v19, %v5580_v50  ;;  %v3063_v59 = vmul.f32 %v6697_v57, %v5582_v52 }
 0x273   : > { %v3318_v4 = vmul.f32 %v6237_v24, %v3302_v12  ;;  %v3319_v8 = vmul.f32 %v6237_v24, %v3303_v10  ;;  %v2854_v63 = vadd.f32 %v2838_v18, %v2782_v3  ;;  %v3064_v51 = vmul.f32 %v6701_v45, %v5582_v52  ;;  %v6768_v18 = vld [vmem:[#allocation8 + $0x8] ss:$0 sm:$0xff] }
 0x274   : > { %v2855_v30 = vadd.f32 %v2839_v26, %v2783_v46  ;;  %v6732_v20 = vunpack.c.h.bf16 %v6654_v25  ;;  %v6734_v2 = vunpack.c.l.bf16 %v4534_v56  ;;  %v4394_v0 = vunpack.c.h.bf16 %v4534_v56 }
 0x275   : > { %v3334_v15 = vadd.f32 %v6247_v32, %v3318_v4  ;;  %v3335_v41 = vadd.f32 %v6247_v32, %v3319_v8  ;;  %v2935_v29 = vadd.f32 %v2919_v22, %v2854_v63  ;;  %v2696_v28 = vmul.f32 %v6666_v55, %v5555_v7  ;;  %v6788_v63 = vld [vmem:[#allocation4 + $0xc8] sm:$0xff]  }
 0x276   : > { %v2936_v24 = vadd.f32 %v2920_v60, %v2855_v30  ;;  %v3144_v36 = vmul.f32 %v6732_v20, %v5584_v53  ;;  %v3145_v48 = vmul.f32 %v6734_v2, %v5584_v53  ;;  %v3171_v25 = vrot.slane %v6732_v20, 1  ;;  %v6799_v30 = vld [vmem:[%s7057_s5] ss:$0 sm:$0xff] }
 0x277   : > { %v3350_v9 = vmax.f32 %v3334_v15, 0.0  ;;  %v3351_v27 = vmax.f32 %v3335_v41, 0.0  ;;  %v3007_v11 = vadd.f32 %v2991_v47, %v2935_v29  ;;  %v3179_v1 = vrot.slane %v6734_v2, 1 }
 0x278   : > { %v3008_v61 = vadd.f32 %v2992_v37, %v2936_v24  ;;  %v3187_v32 = vrot.slane %v4394_v0, 1  ;;  %v3243_v42 = vrot.slane %v6732_v20, 2  ;;  %v3251_v55 = vrot.slane %v6734_v2, 2 }
 0x279   : > { %v3366_v14 = vmin.f32 %v3350_v9, 6.0  ;;  %v3367_v5 = vmin.f32 %v3351_v27, 6.0  ;;  %v3079_v62 = vadd.f32 %v3063_v59, %v3007_v11  ;;  %v6750_v43 = vsel %vm1694_vm1, %v3171_v25, %v3179_v1  ;;  %v6809_v25 = vld [vmem:[%s7058_s6] ss:$0 sm:$0xff] }
 0x27a   : > { %v3080_v34 = vadd.f32 %v3064_v51, %v3008_v61  ;;  %v6754_v35 = vsel %vm1694_vm1, %v3179_v1, %v3187_v32  ;;  %v3216_v44 = vmul.f32 %v6750_v43, %v5586_v54  ;;  %v3259_v17 = vrot.slane %v4394_v0, 2 }
 0x27b   : > { %v3378_v6 = vpack.c.bf16 %v3367_v5, %v3366_v14  ;;  %v3160_v31 = vadd.f32 %v3144_v36, %v3079_v62  ;;  %v3217_v23 = vmul.f32 %v6754_v35, %v5586_v54  ;;  %v6762_v21 = vsel %vm1771_vm2, %v3243_v42, %v3251_v55 }
 0x27c   : > { %v3161_v13 = vadd.f32 %v3145_v48, %v3080_v34  ;;  %v6766_v33 = vsel %vm1771_vm2, %v3251_v55, %v3259_v17  ;;  %v3288_v26 = vmul.f32 %v6768_v18, %v6762_v21  ;;  %v2697_v22 = vmul.f32 %v6668_v58, %v5555_v7 }
 0x27d   : > { %4793 = vmatprep.mubr.bf16.mxu1 %v3378_v6  ;;  %v3232_v12 = vadd.f32 %v3216_v44, %v3160_v31  ;;  %v3289_v10 = vmul.f32 %v6768_v18, %v6766_v33  ;;  %v2768_v3 = vmul.f32 %v6685_v38, %v5561_v16  ;;  %v2769_v60 = vmul.f32 %v6689_v19, %v5561_v16  ;;  %v4535_v38 = vld [vmem:[#allocation4 + $0xc0] sm:$0xff]  }
 0x27e   : > { %v3233_v56 = vadd.f32 %v3217_v23, %v3161_v13  ;;  %v2840_v46 = vmul.f32 %v6697_v57, %v5572_v39  ;;  %v2841_v47 = vmul.f32 %v6701_v45, %v5572_v39  ;;  %v2921_v58 = vmul.f32 %v6732_v20, %v5574_v40 }
 0x27f   : > { %v3304_v37 = vadd.f32 %v3288_v26, %v3232_v12  ;;  %v2784_v59 = vadd.f32 %v2768_v3, %v2696_v28  ;;  %v2785_v4 = vadd.f32 %v2769_v60, %v2697_v22  ;;  %v2922_v8 = vmul.f32 %v6734_v2, %v5574_v40 }
 0x280   : > { %v3305_v19 = vadd.f32 %v3289_v10, %v3233_v56  ;;  %v2993_v51 = vmul.f32 %v6750_v43, %v5580_v50  ;;  %v2994_v57 = vmul.f32 %v6754_v35, %v5580_v50  ;;  %v3065_v45 = vmul.f32 %v6762_v21, %v5582_v52 }
 0x281   : > { %v3320_v0 = vmul.f32 %v6799_v30, %v3304_v37  ;;  %v2856_v15 = vadd.f32 %v2840_v46, %v2784_v59  ;;  %v2857_v41 = vadd.f32 %v2841_v47, %v2785_v4  ;;  %v3066_v29 = vmul.f32 %v6766_v33, %v5582_v52 }
 0x282   : > { %v3321_v28 = vmul.f32 %v6799_v30, %v3305_v19  ;;  %v4397_v24 = vunpack.c.l.bf16 %v4535_v38  ;;  %v4398_v36 = vunpack.c.h.bf16 %v4535_v38  ;;  %v4401_v48 = vunpack.c.l.bf16 %v6788_v63  ;;  %v6830_v38 = vpop.f32.mrf.mxu1 }
 0x283   : > { %v3336_v9 = vadd.f32 %v6809_v25, %v3320_v0  ;;  %v2937_v27 = vadd.f32 %v2921_v58, %v2856_v15  ;;  %v2938_v11 = vadd.f32 %v2922_v8, %v2857_v41  ;;  %v2698_v1 = vmul.f32 %v6732_v20, %v5555_v7  ;;  %v2884_v58 = vld [vmem:[#allocation4 + $0xc8] sm:$0xf] }
 0x284   : > { %v3337_v61 = vadd.f32 %v6809_v25, %v3321_v28  ;;  %v3146_v32 = vmul.f32 %v4397_v24, %v5584_v53  ;;  %v3147_v42 = vmul.f32 %v4398_v36, %v5584_v53  ;;  %v3172_v55 = vrot.slane %v4397_v24, 1 }
 0x285   : > { %v3352_v14 = vmax.f32 %v3336_v9, 0.0  ;;  %v3009_v5 = vadd.f32 %v2993_v51, %v2937_v27  ;;  %v3010_v62 = vadd.f32 %v2994_v57, %v2938_v11  ;;  %v3180_v34 = vrot.slane %v4398_v36, 1 }
 0x286   : > { %v3353_v44 = vmax.f32 %v3337_v61, 0.0  ;;  %v3188_v17 = vrot.slane %v4401_v48, 1  ;;  %v3244_v6 = vrot.slane %v4397_v24, 2  ;;  %v3252_v31 = vrot.slane %v4398_v36, 2  ;;  %v2464_v61 = vpop.f32.mrf.mxu1 }
 0x287   : > { %v3368_v23 = vmin.f32 %v3352_v14, 6.0  ;;  %v3081_v13 = vadd.f32 %v3065_v45, %v3009_v5  ;;  %v3082_v26 = vadd.f32 %v3066_v29, %v3010_v62  ;;  %v3204_v20 = vsel %vm1694_vm1, %v3172_v55, %v3180_v34 }
 0x288   : > { %v3369_v22 = vmin.f32 %v3353_v44, 6.0  ;;  %v3196_v12 = vsel %vm1694_vm1, %v3180_v34, %v3188_v17  ;;  %v3218_v10 = vmul.f32 %v3204_v20, %v5586_v54  ;;  %v3260_v3 = vrot.slane %v4401_v48, 2 }
 0x289   : > { %v3162_v60 = vadd.f32 %v3146_v32, %v3081_v13  ;;  %v3163_v56 = vadd.f32 %v3147_v42, %v3082_v26  ;;  %v3219_v46 = vmul.f32 %v3196_v12, %v5586_v54  ;;  %v3276_v47 = vsel %vm1771_vm2, %v3244_v6, %v3252_v31  ;;  %v4756_v6 = vpop.f32.mrf.mxu1 }
 0x28a   : > { %v3379_v37 = vpack.c.bf16 %v3369_v22, %v3368_v23  ;;  %v3268_v59 = vsel %vm1771_vm2, %v3252_v31, %v3260_v3  ;;  %v3290_v4 = vmul.f32 %v6768_v18, %v3276_v47  ;;  %v2699_v8 = vmul.f32 %v6734_v2, %v5555_v7 }
 0x28b   : > { %v3234_v19 = vadd.f32 %v3218_v10, %v3162_v60  ;;  %v3235_v51 = vadd.f32 %v3219_v46, %v3163_v56  ;;  %v3291_v57 = vmul.f32 %v6768_v18, %v3268_v59  ;;  %v2770_v45 = vmul.f32 %v6750_v43, %v5561_v16 }
 0x28c   : > { %4794 = vmatmul.mubr.bf16.gmra.mxu1 %v3379_v37  ;;  %v2771_v0 = vmul.f32 %v6754_v35, %v5561_v16  ;;  %v2842_v15 = vmul.f32 %v6762_v21, %v5572_v39  ;;  %v2843_v41 = vmul.f32 %v6766_v33, %v5572_v39  ;;  %v2908_v7 = vunpack.c.l.bf16 %v2884_v58  ;;  %v4537_v39 = vld [vmem:[#allocation4 + $0xd0] sm:$0xff]   ;;  %v2467_v58 = vpop.f32.mrf.mxu1 }
 0x28d   : > { %v3306_v2 = vadd.f32 %v3290_v4, %v3234_v19  ;;  %v3307_v29 = vadd.f32 %v3291_v57, %v3235_v51  ;;  %v2786_v28 = vadd.f32 %v2770_v45, %v2698_v1  ;;  %v2923_v48 = vmul.f32 %v4397_v24, %v5574_v40 }
 0x28e   : > { %v2787_v9 = vadd.f32 %v2771_v0, %v2699_v8  ;;  %v2924_v27 = vmul.f32 %v4398_v36, %v5574_v40  ;;  %v2964_v43 = vrot.slane %v2908_v7, 1  ;;  %v2995_v11 = vmul.f32 %v3204_v20, %v5580_v50  ;;  %v4498_v8 = vld [vmem:[%s5423_s29 + $0x8] sm:$0xff]  }
 0x28f   : > { %v3322_v16 = vmul.f32 %v6799_v30, %v3306_v2  ;;  %v3323_v35 = vmul.f32 %v6799_v30, %v3307_v29  ;;  %v2858_v21 = vadd.f32 %v2842_v15, %v2786_v28  ;;  %v3036_v32 = vrot.slane %v2908_v7, 2  ;;  %v6874_v0 = vld [vmem:[%s7061_s9] ss:$0 sm:$0xff]  ;;  %v4236_v15 = vld [vmem:[%s5423_s29] sm:$0xff]  }
 0x290   : > { %v2859_v33 = vadd.f32 %v2843_v41, %v2787_v9  ;;  %v2972_v1 = vsel %vm1694_vm1, %v3180_v34, %v2964_v43  ;;  %v3067_v24 = vmul.f32 %v3276_v47, %v5582_v52  ;;  %v4402_v42 = vunpack.c.h.bf16 %v6788_v63 }
 0x291   : > { %v3338_v40 = vadd.f32 %v6809_v25, %v3322_v16  ;;  %v3339_v36 = vadd.f32 %v6809_v25, %v3323_v35  ;;  %v2939_v55 = vadd.f32 %v2923_v48, %v2858_v21  ;;  %v2996_v14 = vmul.f32 %v2972_v1, %v5580_v50 }
 0x292   : > { %v2940_v5 = vadd.f32 %v2924_v27, %v2859_v33  ;;  %v3044_v62 = vsel %vm1771_vm2, %v3252_v31, %v3036_v32  ;;  %v4405_v44 = vunpack.c.l.bf16 %v4537_v39  ;;  %v4406_v17 = vunpack.c.h.bf16 %v4537_v39  ;;  %v4500_v33 = vld [vmem:[%s5423_s29 + $0x18] sm:$0xff]  }
 0x293   : > { %v3354_v23 = vmax.f32 %v3338_v40, 0.0  ;;  %v3355_v34 = vmax.f32 %v3339_v36, 0.0  ;;  %v3011_v13 = vadd.f32 %v2995_v11, %v2939_v55  ;;  %v3068_v26 = vmul.f32 %v3044_v62, %v5582_v52  ;;  %v6861_v52 = vld [vmem:[%s7060_s8] ss:$0 sm:$0xff]  ;;  %v4499_v40 = vld [vmem:[%s5423_s29 + $0x10] sm:$0xff]  }
 0x294   : > { %v3012_v63 = vadd.f32 %v2996_v14, %v2940_v5  ;;  %v3148_v20 = vmul.f32 %v4402_v42, %v5584_v53  ;;  %v3149_v22 = vmul.f32 %v4405_v44, %v5584_v53  ;;  %v3173_v12 = vrot.slane %v4402_v42, 1 }
 0x295   : > { %v3370_v50 = vmin.f32 %v3354_v23, 6.0  ;;  %v3371_v10 = vmin.f32 %v3355_v34, 6.0  ;;  %v3083_v3 = vadd.f32 %v3067_v24, %v3011_v13  ;;  %v3181_v60 = vrot.slane %v4405_v44, 1 }
 0x296   : > { %v3084_v31 = vadd.f32 %v3068_v26, %v3012_v63  ;;  %v3189_v56 = vrot.slane %v4406_v17, 1  ;;  %v3245_v46 = vrot.slane %v4402_v42, 2  ;;  %v3253_v47 = vrot.slane %v4405_v44, 2 }
 0x297   : > { %v3380_v37 = vpack.c.bf16 %v3371_v10, %v3370_v50  ;;  %v3164_v59 = vadd.f32 %v3148_v20, %v3083_v3  ;;  %v3205_v53 = vsel %vm1694_vm1, %v3173_v12, %v3181_v60  ;;  %v3261_v4 = vrot.slane %v4406_v17, 2 }
 0x298   : > { %v3165_v19 = vadd.f32 %v3149_v22, %v3084_v31  ;;  %v3197_v51 = vsel %vm1694_vm1, %v3181_v60, %v3189_v56  ;;  %v3220_v57 = vmul.f32 %v3205_v53, %v5586_v54  ;;  %v3277_v45 = vsel %vm1771_vm2, %v3245_v46, %v3253_v47  ;;  %v4759_v41 = vpop.f32.mrf.mxu1 }
 0x299   : > { %4797 = vmatprep.mubr.bf16.mxu1 %v3380_v37  ;;  %v3221_v7 = vmul.f32 %v3197_v51, %v5586_v54  ;;  %v3269_v2 = vsel %vm1771_vm2, %v3253_v47, %v3261_v4  ;;  %v3292_v29 = vmul.f32 %v6768_v18, %v3277_v45  ;;  %v2535_v28 = vmul.f32 %v6830_v38, %v6861_v52  ;;  %v4502_v4 = vld [vmem:[%s5423_s29 + $0x28] sm:$0xff]  }
 0x29a   : > { %v3236_v48 = vadd.f32 %v3220_v57, %v3164_v59  ;;  %v3293_v9 = vmul.f32 %v6768_v18, %v3269_v2  ;;  %v4241_v27 = vunpack.c.l.bf16 %v4498_v8  ;;  %v2533_v43 = vmul.f32 %v6861_v52, %v2464_v61  ;;  %v2480_v11 = vpop.f32.mrf.mxu1 }
 0x29b   : > { %v3237_v16 = vadd.f32 %v3221_v7, %v3165_v19  ;;  %v2557_v54 = vadd.f32 %v6874_v0, %v2535_v28  ;;  %v4237_v35 = vunpack.c.l.bf16 %v4236_v15  ;;  %v2536_v49 = vmul.f32 %v4756_v6, %v6861_v52  ;;  %v4501_v19 = vld [vmem:[%s5423_s29 + $0x20] sm:$0xff]  }
 0x29c   : > { %v3308_v21 = vadd.f32 %v3292_v29, %v3236_v48  ;;  %v2555_v32 = vadd.f32 %v6874_v0, %v2533_v43  ;;  %v4242_v39 = vunpack.c.h.bf16 %v4498_v8  ;;  %v2534_v38 = vmul.f32 %v6861_v52, %v2467_v58  ;;  %v4760_v18 = vpop.f32.mrf.mxu1 }
 0x29d   : > { %v3309_v1 = vadd.f32 %v3293_v9, %v3237_v16  ;;  %v2605_v61 = vadd.f32 %v4241_v27, %v2557_v54  ;;  %v2558_v24 = vadd.f32 %v6874_v0, %v2536_v49  ;;  %v4238_v42 = vunpack.c.h.bf16 %v4236_v15 }
 0x29e   : > { %v3324_v36 = vmul.f32 %v6799_v30, %v3308_v21  ;;  %v2603_v55 = vadd.f32 %v4237_v35, %v2555_v32  ;;  %v2556_v14 = vadd.f32 %v6874_v0, %v2534_v38  ;;  %v2539_v5 = vmul.f32 %v4759_v41, %v6861_v52  ;;  %v2483_v23 = vpop.f32.mrf.mxu1  ;;  %v4504_v32 = vld [vmem:[%s5423_s29 + $0x38] sm:$0xff]   ;;  %v4503_v38 = vld [vmem:[%s5423_s29 + $0x30] sm:$0xff]  }
 0x29f   : > { %v3325_v62 = vmul.f32 %v6799_v30, %v3309_v1  ;;  %2621 = vst [vmem:[%s5440_s25 + $0x10] sm:$0xff] %v2605_v61  ;;  %v2606_v44 = vadd.f32 %v4242_v39, %v2558_v24  ;;  %v4249_v17 = vunpack.c.l.bf16 %v4500_v33  ;;  %v2537_v6 = vmul.f32 %v6861_v52, %v2480_v11 }
 0x2a0   : > { %v3340_v34 = vadd.f32 %v6809_v25, %v3324_v36  ;;  %2619 = vst [vmem:[%s5440_s25] sm:$0xff] %v2603_v55  ;;  %v2604_v13 = vadd.f32 %v4238_v42, %v2556_v14  ;;  %v2561_v26 = vadd.f32 %v6874_v0, %v2539_v5  ;;  %v4245_v63 = vunpack.c.l.bf16 %v4499_v40 }
 0x2a1   : > { %v3341_v20 = vadd.f32 %v6809_v25, %v3325_v62  ;;  %2622 = vst [vmem:[%s5440_s25 + $0x18] sm:$0xff] %v2606_v44  ;;  %v2559_v30 = vadd.f32 %v6874_v0, %v2537_v6  ;;  %v2540_v22 = vmul.f32 %v4760_v18, %v6861_v52  ;;  %v4250_v12 = vunpack.c.h.bf16 %v4500_v33 }
 0x2a2   : > { %v3356_v50 = vmax.f32 %v3340_v34, 0.0  ;;  %2620 = vst [vmem:[%s5440_s25 + $0x8] sm:$0xff] %v2604_v13  ;;  %v2609_v10 = vadd.f32 %v4249_v17, %v2561_v26  ;;  %v2538_v3 = vmul.f32 %v6861_v52, %v2483_v23  ;;  %v4246_v60 = vunpack.c.h.bf16 %v4499_v40 }
 0x2a3   : > { %v3357_v31 = vmax.f32 %v3341_v20, 0.0  ;;  %v2607_v56 = vadd.f32 %v4245_v63, %v2559_v30  ;;  %v2562_v25 = vadd.f32 %v6874_v0, %v2540_v22  ;;  %v4257_v57 = vunpack.c.l.bf16 %v4502_v4  ;;  %v4539_v63 = vld [vmem:[%s5423_s29 + $0x48] sm:$0xff]   ;;  %v4538_v30 = vld [vmem:[%s5423_s29 + $0x40] sm:$0xff]  }
 0x2a4   : > { %v3372_v46 = vmin.f32 %v3356_v50, 6.0  ;;  %2625 = vst [vmem:[%s5440_s25 + $0x30] sm:$0xff] %v2609_v10  ;;  %v2560_v47 = vadd.f32 %v6874_v0, %v2538_v3  ;;  %v4253_v7 = vunpack.c.l.bf16 %v4501_v19  ;;  %v4258_v9 = vunpack.c.h.bf16 %v4502_v4 }
 0x2a5   : > { %v3373_v58 = vmin.f32 %v3357_v31, 6.0  ;;  %2623 = vst [vmem:[%s5440_s25 + $0x20] sm:$0xff] %v2607_v56  ;;  %v2610_v37 = vadd.f32 %v4250_v12, %v2562_v25  ;;  %v4254_v54 = vunpack.c.h.bf16 %v4501_v19  ;;  %v4265_v18 = vunpack.c.l.bf16 %v4504_v32 }
 0x2a6   : > { %v2608_v59 = vadd.f32 %v4246_v60, %v2560_v47  ;;  %v4261_v42 = vunpack.c.l.bf16 %v4503_v38  ;;  %v4266_v5 = vunpack.c.h.bf16 %v4504_v32  ;;  %v4262_v23 = vunpack.c.h.bf16 %v4503_v38 }
 0x2a7   : > { %v3381_v53 = vpack.c.bf16 %v3373_v58, %v3372_v46  ;;  %2626 = vst [vmem:[%s5440_s25 + $0x38] sm:$0xff] %v2610_v37  ;;  %v4413_v12 = vunpack.c.l.bf16 %v4539_v63  ;;  %v4409_v60 = vunpack.c.l.bf16 %v4538_v30  ;;  %v4414_v47 = vunpack.c.h.bf16 %v4539_v63 }
 0x2a8   : > { %2624 = vst [vmem:[%s5440_s25 + $0x28] sm:$0xff] %v2608_v59  ;;  %v4410_v4 = vunpack.c.h.bf16 %v4538_v30 }
 0x2a9   : > { %4798 = vmatmul.mubr.bf16.gmra.mxu1 %v3381_v53 }
 0x2cc   : > { %v4763_v8 = vpop.f32.mrf.mxu1 }
 0x2cd   : > { %v2543_v51 = vmul.f32 %v4763_v8, %v6861_v52 }
 0x2ce   : > { %v2496_v45 = vpop.f32.mrf.mxu1 }
 0x2cf   : > { %v2565_v15 = vadd.f32 %v6874_v0, %v2543_v51  ;;  %v2541_v41 = vmul.f32 %v6861_v52, %v2496_v45 }
 0x2d0   : > { %v4764_v2 = vpop.f32.mrf.mxu1 }
 0x2d1   : > { %v2613_v29 = vadd.f32 %v4257_v57, %v2565_v15  ;;  %v2563_v28 = vadd.f32 %v6874_v0, %v2541_v41  ;;  %v2544_v48 = vmul.f32 %v4764_v2, %v6861_v52  ;;  %v4541_v57 = vld [vmem:[%s5423_s29 + $0x58] sm:$0xff]   ;;  %v4540_v15 = vld [vmem:[%s5423_s29 + $0x50] sm:$0xff]  }
 0x2d2   : > { %v2499_v27 = vpop.f32.mrf.mxu1  ;;  %v4418_v32 = vunpack.c.h.bf16 %v4540_v15 }
 0x2d3   : > { %2629 = vst [vmem:[%s5440_s25 + $0x50] sm:$0xff] %v2613_v29  ;;  %v2611_v43 = vadd.f32 %v4253_v7, %v2563_v28  ;;  %v2566_v11 = vadd.f32 %v6874_v0, %v2544_v48  ;;  %v2542_v16 = vmul.f32 %v6861_v52, %v2499_v27  ;;  %v4421_v7 = vunpack.c.l.bf16 %v4541_v57 }
 0x2d4   : > { %v4417_v48 = vunpack.c.l.bf16 %v4540_v15 }
 0x2d5   : > { %2627 = vst [vmem:[%s5440_s25 + $0x40] sm:$0xff] %v2611_v43  ;;  %v2614_v35 = vadd.f32 %v4258_v9, %v2566_v11  ;;  %v2564_v49 = vadd.f32 %v6874_v0, %v2542_v16  ;;  %v4422_v16 = vunpack.c.h.bf16 %v4541_v57 }
 0x2d7   : > { %2630 = vst [vmem:[%s5440_s25 + $0x58] sm:$0xff] %v2614_v35  ;;  %v2612_v21 = vadd.f32 %v4254_v54, %v2564_v49 }
 0x2d9   : > { %2628 = vst [vmem:[%s5440_s25 + $0x48] sm:$0xff] %v2612_v21 }
 0x2f2   : > { %v4767_v39 = vpop.f32.mrf.mxu1 }
 0x2f3   : > { %v2547_v33 = vmul.f32 %v4767_v39, %v6861_v52 }
 0x2f4   : > { %v2512_v1 = vpop.f32.mrf.mxu1 }
 0x2f5   : > { %v2569_v61 = vadd.f32 %v6874_v0, %v2547_v33  ;;  %v2545_v24 = vmul.f32 %v6861_v52, %v2512_v1 }
 0x2f6   : > { %v4768_v40 = vpop.f32.mrf.mxu1 }
 0x2f7   : > { %v2617_v36 = vadd.f32 %v4265_v18, %v2569_v61  ;;  %v2567_v55 = vadd.f32 %v6874_v0, %v2545_v24  ;;  %v2548_v14 = vmul.f32 %v4768_v40, %v6861_v52  ;;  %v4543_v18 = vld [vmem:[%s5423_s29 + $0x68] sm:$0xff]   ;;  %v4542_v61 = vld [vmem:[%s5423_s29 + $0x60] sm:$0xff]  }
 0x2f8   : > { %v2515_v62 = vpop.f32.mrf.mxu1  ;;  %v4426_v63 = vunpack.c.h.bf16 %v4542_v61 }
 0x2f9   : > { %2633 = vst [vmem:[%s5440_s25 + $0x70] sm:$0xff] %v2617_v36  ;;  %v2615_v44 = vadd.f32 %v4261_v42, %v2567_v55  ;;  %v2570_v17 = vadd.f32 %v6874_v0, %v2548_v14  ;;  %v2546_v6 = vmul.f32 %v6861_v52, %v2515_v62  ;;  %v4429_v42 = vunpack.c.l.bf16 %v4543_v18 }
 0x2fa   : > { %v4425_v14 = vunpack.c.l.bf16 %v4542_v61 }
 0x2fb   : > { %2631 = vst [vmem:[%s5440_s25 + $0x60] sm:$0xff] %v2615_v44  ;;  %v2618_v34 = vadd.f32 %v4266_v5, %v2570_v17  ;;  %v2568_v13 = vadd.f32 %v6874_v0, %v2546_v6  ;;  %v4430_v6 = vunpack.c.h.bf16 %v4543_v18 }
 0x2fd   : > { %2634 = vst [vmem:[%s5440_s25 + $0x78] sm:$0xff] %v2618_v34  ;;  %v2616_v26 = vadd.f32 %v4262_v23, %v2568_v13 }
 0x2ff   : > { %2632 = vst [vmem:[%s5440_s25 + $0x68] sm:$0xff] %v2616_v26 }
 0x314   : > { %v4787_v20 = vpop.f32.mrf.mxu1 }
 0x315   : > { %v3481_v22 = vmul.f32 %v4787_v20, %v6861_v52 }
 0x316   : > { %v3416_v50 = vpop.f32.mrf.mxu1 }
 0x317   : > { %v3497_v10 = vadd.f32 %v6874_v0, %v3481_v22  ;;  %v3479_v3 = vmul.f32 %v6861_v52, %v3416_v50 }
 0x318   : > { %v4788_v31 = vpop.f32.mrf.mxu1 }
 0x319   : > { %v3546_v56 = vadd.f32 %v4413_v12, %v3497_v10  ;;  %v3495_v25 = vadd.f32 %v6874_v0, %v3479_v3  ;;  %v3482_v46 = vmul.f32 %v4788_v31, %v6861_v52  ;;  %v4545_v12 = vld [vmem:[%s5423_s29 + $0x78] sm:$0xff]   ;;  %v4544_v10 = vld [vmem:[%s5423_s29 + $0x70] sm:$0xff]   ;;  %s3959_s29 = sshll.u32 %s5184_s20, 12  ;;  %s5102_s20 = scalar_lea.vmem %s7002_s17, 4096 }
 0x31a   : > { %v3419_v58 = vpop.f32.mrf.mxu1  ;;  %v4434_v57 = vunpack.c.h.bf16 %v4544_v10  ;;  %s7000_s16 = scalar_lea.hbm %s7097_s11, %s3959_s29  ;;  %p5103_p6 = scmp.ne.s32.totalorder %s7002_s17, %s5102_s20 }
 0x31b   : > { %3882 = vst [vmem:[%s5440_s25 + $0x90] sm:$0xff] %v3546_v56  ;;  %v3544_v37 = vadd.f32 %v4409_v60, %v3495_v25  ;;  %v3498_v59 = vadd.f32 %v6874_v0, %v3482_v46  ;;  %v3480_v53 = vmul.f32 %v6861_v52, %v3419_v58  ;;  %v4437_v60 = vunpack.c.l.bf16 %v4545_v12  ;;  %p5110_p3 = scmp.lt.s32.totalorder %s5108_s28, %s5102_s20 }
 0x31c   : > { %v4433_v46 = vunpack.c.l.bf16 %v4544_v10  ;;  %p5104_p7 = pnand %p5103_p6, %p5380_p4 }
 0x31d   : > { %3880 = vst [vmem:[%s5440_s25 + $0x80] sm:$0xff] %v3544_v37  ;;  %v3547_v8 = vadd.f32 %v4414_v47, %v3498_v59  ;;  %v3496_v19 = vadd.f32 %v6874_v0, %v3480_v53  ;;  %v4438_v53 = vunpack.c.h.bf16 %v4545_v12  ;;  %p5111_p11 = por %p5110_p3, %p5109_p1 }
 0x31e   : > { %p5105_p8 = pneg %p5104_p7 }
 0x31f   : > { %3883 = vst [vmem:[%s5440_s25 + $0x98] sm:$0xff] %v3547_v8  ;;  %v3545_v51 = vadd.f32 %v4410_v4, %v3496_v19 }
 0x320   : > { %p5112_p2 = pnand %p5111_p11, %p5105_p8 }
 0x321   : > { %3881 = vst [vmem:[%s5440_s25 + $0x88] sm:$0xff] %v3545_v51 }
 0x330   : > { %v4791_v45 = vpop.f32.mrf.mxu1 }
 0x331   : > { %v3485_v41 = vmul.f32 %v4791_v45, %v6861_v52 }
 0x332   : > { %v3432_v2 = vpop.f32.mrf.mxu1 }
 0x333   : > { %v3501_v29 = vadd.f32 %v6874_v0, %v3485_v41  ;;  %v3483_v28 = vmul.f32 %v6861_v52, %v3432_v2 }
 0x334   : > { %v4792_v9 = vpop.f32.mrf.mxu1 }
 0x335   : > { %v3550_v27 = vadd.f32 %v4421_v7, %v3501_v29  ;;  %v3499_v43 = vadd.f32 %v6874_v0, %v3483_v28  ;;  %v3486_v11 = vmul.f32 %v4792_v9, %v6861_v52 }
 0x336   : > { %v3435_v54 = vpop.f32.mrf.mxu1 }
 0x337   : > { %3886 = vst [vmem:[%s5440_s25 + $0xb0] sm:$0xff] %v3550_v27  ;;  %v3548_v35 = vadd.f32 %v4417_v48, %v3499_v43  ;;  %v3502_v49 = vadd.f32 %v6874_v0, %v3486_v11  ;;  %v3484_v21 = vmul.f32 %v6861_v52, %v3435_v54 }
 0x339   : > { %3884 = vst [vmem:[%s5440_s25 + $0xa0] sm:$0xff] %v3548_v35  ;;  %v3551_v39 = vadd.f32 %v4422_v16, %v3502_v49  ;;  %v3500_v38 = vadd.f32 %v6874_v0, %v3484_v21 }
 0x33b   : > { %3887 = vst [vmem:[%s5440_s25 + $0xb8] sm:$0xff] %v3551_v39  ;;  %v3549_v33 = vadd.f32 %v4418_v32, %v3500_v38 }
 0x33d   : > { %3885 = vst [vmem:[%s5440_s25 + $0xa8] sm:$0xff] %v3549_v33 }
 0x34c   : > { %v4795_v1 = vpop.f32.mrf.mxu1 }
 0x34d   : > { %v3489_v24 = vmul.f32 %v4795_v1, %v6861_v52 }
 0x34e   : > { %v3448_v40 = vpop.f32.mrf.mxu1 }
 0x34f   : > { %v3505_v36 = vadd.f32 %v6874_v0, %v3489_v24  ;;  %v3487_v55 = vmul.f32 %v6861_v52, %v3448_v40 }
 0x350   : > { %v4796_v5 = vpop.f32.mrf.mxu1 }
 0x351   : > { %v3554_v62 = vadd.f32 %v4429_v42, %v3505_v36  ;;  %v3503_v44 = vadd.f32 %v6874_v0, %v3487_v55  ;;  %v3490_v17 = vmul.f32 %v4796_v5, %v6861_v52 }
 0x352   : > { %v3451_v23 = vpop.f32.mrf.mxu1 }
 0x353   : > { %3890 = vst [vmem:[%s5440_s25 + $0xd0] sm:$0xff] %v3554_v62  ;;  %v3552_v34 = vadd.f32 %v4425_v14, %v3503_v44  ;;  %v3506_v13 = vadd.f32 %v6874_v0, %v3490_v17  ;;  %v3488_v26 = vmul.f32 %v6861_v52, %v3451_v23 }
 0x355   : > { %3888 = vst [vmem:[%s5440_s25 + $0xc0] sm:$0xff] %v3552_v34  ;;  %v3555_v20 = vadd.f32 %v4430_v6, %v3506_v13  ;;  %v3504_v30 = vadd.f32 %v6874_v0, %v3488_v26 }
 0x357   : > { %3891 = vst [vmem:[%s5440_s25 + $0xd8] sm:$0xff] %v3555_v20  ;;  %v3553_v22 = vadd.f32 %v4426_v63, %v3504_v30 }
 0x359   : > { %3889 = vst [vmem:[%s5440_s25 + $0xc8] sm:$0xff] %v3553_v22 }
 0x369   : > { %v4799_v50 = vpop.f32.mrf.mxu1 }
 0x36a   : > { %v3493_v3 = vmul.f32 %v4799_v50, %v6861_v52 }
 0x36b   : > { %v3464_v31 = vpop.f32.mrf.mxu1 }
 0x36c   : > { %v3509_v56 = vadd.f32 %v6874_v0, %v3493_v3  ;;  %v3491_v25 = vmul.f32 %v6861_v52, %v3464_v31 }
 0x36d   : > { %v4800_v47 = vpop.f32.mrf.mxu1 }
 0x36e   : > { %v3558_v58 = vadd.f32 %v4437_v60, %v3509_v56  ;;  %v3507_v37 = vadd.f32 %v6874_v0, %v3491_v25  ;;  %v3494_v59 = vmul.f32 %v4800_v47, %v6861_v52 }
 0x36f   : > { %v3467_v4 = vpop.f32.mrf.mxu1 }
 0x370   : > { %3894 = vst [vmem:[%s5440_s25 + $0xf0] sm:$0xff] %v3558_v58  ;;  %v3556_v8 = vadd.f32 %v4433_v46, %v3507_v37  ;;  %v3510_v19 = vadd.f32 %v6874_v0, %v3494_v59  ;;  %v3492_v51 = vmul.f32 %v6861_v52, %v3467_v4 }
 0x372   : > { %3892 = vst [vmem:[%s5440_s25 + $0xe0] sm:$0xff] %v3556_v8  ;;  %v3559_v45 = vadd.f32 %v4438_v53, %v3510_v19  ;;  %v3508_v15 = vadd.f32 %v6874_v0, %v3492_v51 }
 0x374   : > { %3895 = vst [vmem:[%s5440_s25 + $0xf8] sm:$0xff] %v3559_v45  ;;  %v3557_v41 = vadd.f32 %v4434_v57, %v3508_v15 }
 0x376   : > { %3893 = vst [vmem:[%s5440_s25 + $0xe8] sm:$0xff] %v3557_v41 }
 0x377   : > { %5115 = shalt.err (!%p5112_p2)
}
 0x378   : > { %s5116_s25 = scalar_lea.hbm %s7000_s16, 4096  ;;  %s5120_s13 = scalar_lea.hbm %s7097_s11, 8192 }
 0x379   : > { %p5117_p9 = scmp.ne.s32.totalorder %s7000_s16, %s5116_s25  ;;  %p5121_p5 = scmp.lt.s32.totalorder %s7000_s16, %s7097_s11 }
 0x37a   : > { %p5122_p12 = scmp.lt.s32.totalorder %s5120_s13, %s5116_s25 }
 0x37b   : > { %p5118_p13 = pnand %p5117_p9, %p5380_p4 }
 0x37c   : > { %p5123_p10 = por %p5122_p12, %p5121_p5 }
 0x37d   : > { %p5119_p0 = pneg %p5118_p13 }
 0x37f   : > { %p5124_p6 = pnand %p5123_p10, %p5119_p0 }
 0x381   : > { %5127 = shalt.err (!%p5124_p6)
}
 0x382   : > { %s5206_s29 = smov 128   ;;  %s5207_s27 = smov 8  }
 0x383   : > { %4831 = dma.vmem_to_hbm [thread:$0]  (%p5380_p4), %s7002_s17, 4096, %s7000_s16, %s3578_s12, %s5206_s29, %s5206_s29, %s5207_s27  }
 0x384 PF: > { %s7098_s4 = sld [smem:[#allocation25_spill]]  ;;  %p7101_p8 = scmp.ge.s32.totalorder %s5192_s22, 2 }
 0x385   : > { %s7099_s20 = sld [smem:[#allocation27_spill]] }
 0x38a   : > { %s3609_s23 = sand.u32 1, %s7098_s4  }
 0x38b   : > { %p7100_p7 = scmp.ne.s32.totalorder %s7099_s20, 0  ;;  %s3610_s30 = scalar_lea.sflag [#allocation7], %s3609_s23 }
 0x38d   : > { %p4848_p1 = pnand %p7101_p8, %p7100_p7 }
 0x38f   : > { %p4849_p3 = pneg %p4848_p1 }
 0x391   : > { %5167 = dma.done.wait (%p4849_p3), %s3610_s30, 4096  }
 0x392   : > { %5169 = vsyncadd (%p4849_p3), %s3610_s30, 4294963200  ;;  %s29_s22 = sadd.s32 1, %s5192_s22   ;;  %s7102_s20 = sld [smem:[#allocation26_spill]] }
 0x393   : > { %p26_p11 = scmp.ge.s32.totalorder %s29_s22, 4   ;;  %s7103_s21 = sld [smem:[#allocation28_spill]] }
 0x394   : > { %s7104_s17 = smov %s5176_s18  ;;  %s7105_s18 = smov %s5180_s19 }
 0x395   : > { %s7106_s19 = smov %s5389_s15  ;;  %28 = sbr.rel (!%p26_p11) target bundleno = 13 (0xd), region = 150 }
 0x39a   :  { %3615 = vsyncpa [#allocation6], 1 }
 0x39b   :  { %3617 = vsyncpa [#allocation6 + $0x1], 1 }
 0x39c   :  { %3618 = vsyncpa [#allocation9], 1 }
 0x39d   :  { %3619 = vsyncpa [#allocation12], 1 }
 0x39e   :  { %3621 = vsyncpa [#allocation12 + $0x1], 1 }
 0x39f   :  { %3622 = vsyncpa [#allocation7], 1 }
 0x3a0   :  { %3624 = vsyncpa [#allocation7 + $0x1], 1 }
 0x3a1   :  { %3625 = vsyncmov [#allocation3] }
 0x3a4   :  { %s3626_s24 = vpop.sfrf %3625 }
 0x3a5   :  { %p3901_p4 = scmp.ne.s32.totalorder %s3626_s24, 0 }
 0x3a7   :  { %3630 = shalt.err (%p3901_p4)  }
 0x3a8   :  { %3632 = vsyncmov [#allocation3 + $0x1] }
 0x3ab   :  { %s3633_s15 = vpop.sfrf %3632 }
 0x3ac   :  { %p3902_p2 = scmp.ne.s32.totalorder %s3633_s15, 0 }
 0x3ae   :  { %3637 = shalt.err (%p3902_p2)  }

</bundles_post_ra>
